<compile_context>
chip_gen: v6e
topology: v6e:2x2x1
jax: 0.10.0
libtpu: 0.0.40
codegen_flags: <defaults>
</compile_context>

<pallas_src>
import functools
import math

import jax
import jax.numpy as jnp
from jax.experimental import pallas as pl
from jax.experimental.pallas import tpu as pltpu

LATENT_DIM = 128          # small, lane-aligned stand-in for the real 512
NUM_LAYERS = 8
LR_MULT = 0.01
LEAKY_SLOPE = 0.2
PIXELNORM_EPS = 1e-8


def _round_up(x: int, m: int) -> int:
    return -(-x // m) * m


def _tpu_kind() -> str:
    try:
        return jax.devices()[0].device_kind.lower()
    except Exception:
        return ""


def _hw_config():
    """(two_tensorcores, bf16_elementwise, max_batch_tile) from the device kind."""
    kind = _tpu_kind()
    is_v7 = ("v7" in kind) or ("7x" in kind)
    has_bf16_vpu = is_v7 or ("v6" in kind)
    # v5e and older: no bf16 VALU, single vector-store slot -> cap tile at 512.
    max_tile = 1024 if has_bf16_vpu else 512
    return is_v7, has_bf16_vpu, max_tile


def _choose_batch_tile(batch: int, *, two_tensorcores: bool, max_tile: int) -> int:
    """Sublane-aligned batch tile; big MXU M-dim; pad waste < 8 rows per step."""
    padded = _round_up(batch, 8)
    if two_tensorcores and padded > 16:
        # Force an even-ish grid of >= 2 steps so the "parallel" axis actually
        # shards across v7x's two TensorCores.
        n_steps = max(2, pl.cdiv(padded, max_tile))
    else:
        # Single TC (v5e/v6e): extra grid steps are pure per-step overhead.
        n_steps = pl.cdiv(padded, max_tile)
    return _round_up(pl.cdiv(padded, n_steps), 8)


def _make_mapping_kernel(elem_dtype):
    def mapping_kernel(x_ref, w_ref, b_ref, o_ref):
        # x_ref: (TILE, D) f32        latent tile
        # w_ref: (L, D, D) bf16       pre-scaled weights  (W * lr_mult / sqrt(D))
        # b_ref: (L, 1, D) elem_dtype pre-scaled biases   (b * lr_mult)
        # o_ref: (TILE, D) f32
        x = x_ref[...].astype(jnp.float32)

        # --- PixelNorm over the feature dim (always f32) ---
        ms = jnp.mean(x * x, axis=-1, keepdims=True)
        x = x * jax.lax.rsqrt(ms + PIXELNORM_EPS)

        # --- 8 x (EqualizedLinear + LeakyReLU(0.2)); statically unrolled ---
        for l in range(NUM_LAYERS):
            lhs = x.astype(jnp.bfloat16)      # no-op after layer 0 on the bf16 path
            y = jnp.dot(lhs, w_ref[l], preferred_element_type=elem_dtype)
            y = y + b_ref[l]                  # (1, D) broadcast, elem_dtype
            x = jnp.where(y >= 0, y, LEAKY_SLOPE * y)   # LeakyReLU(0.2)

        o_ref[...] = x.astype(o_ref.dtype)

    return mapping_kernel


@functools.partial(jax.jit, static_argnames=("tile", "use_bf16_elementwise"))
def _mapping_forward(latent, weights, biases, *, tile, use_bf16_elementwise):
    B, D = latent.shape
    L = weights.shape[0]
    elem_dtype = jnp.bfloat16 if use_bf16_elementwise else jnp.float32

    # Fold the runtime equalization gains into the parameters once per call
    # (tiny XLA ops, grid-invariant); matmul operand stored in bf16.
    w_gain = LR_MULT / math.sqrt(D)
    w_scaled = (weights.astype(jnp.float32) * w_gain).astype(jnp.bfloat16)
    b_scaled = (biases.astype(jnp.float32) * LR_MULT).astype(elem_dtype)

    grid_n = pl.cdiv(_round_up(B, 8), tile)
    padded_b = grid_n * tile
    x = latent
    if padded_b != B:
        # Zero rows are PixelNorm-safe (0 * rsqrt(eps) = 0): no Inf/NaN in pads.
        x = jnp.pad(latent, ((0, padded_b - B), (0, 0)))

    out = pl.pallas_call(
        _make_mapping_kernel(elem_dtype),
        out_shape=jax.ShapeDtypeStruct((padded_b, D), latent.dtype),
        grid=(grid_n,),
        in_specs=[
            pl.BlockSpec((tile, D), lambda i: (i, 0)),      # latent tile
            pl.BlockSpec((L, D, D), lambda i: (0, 0, 0)),   # weights (grid-invariant)
            pl.BlockSpec((L, 1, D), lambda i: (0, 0, 0)),   # biases  (grid-invariant)
        ],
        out_specs=pl.BlockSpec((tile, D), lambda i: (i, 0)),
        compiler_params=pltpu.CompilerParams(
            dimension_semantics=("parallel",)),
        cost_estimate=pl.CostEstimate(
            flops=2 * padded_b * D * D * L,
            transcendentals=0,
            bytes_accessed=(2 * padded_b * D * 4          # latent in + out (f32)
                            + L * D * D * 2               # bf16 weights
                            + L * D * jnp.dtype(elem_dtype).itemsize)),
    )(x, w_scaled, b_scaled)

    return out[:B] if padded_b != B else out


def mapping_network(latent, weights, biases):
    """latent: (B, D) f32; weights: (L, D, D) stored params; biases: (L, 1, D)."""
    B, D = latent.shape
    assert D == LATENT_DIM and weights.shape[0] == NUM_LAYERS
    two_tc, bf16_elem, max_tile = _hw_config()
    tile = _choose_batch_tile(B, two_tensorcores=two_tc, max_tile=max_tile)
    return _mapping_forward(latent, weights, biases,
                            tile=tile, use_bf16_elementwise=bf16_elem)


def reference(latent, weights, biases):
    x = latent.astype(jnp.float32)
    x = x * jax.lax.rsqrt(jnp.mean(x * x, axis=-1, keepdims=True) + PIXELNORM_EPS)
    w_gain = LR_MULT / math.sqrt(LATENT_DIM)
    for l in range(NUM_LAYERS):
        x = x @ (weights[l].astype(jnp.float32) * w_gain) + biases[l, 0] * LR_MULT
        x = jnp.where(x >= 0, x, LEAKY_SLOPE * x)
    return x.astype(latent.dtype)


if __name__ == "__main__":
    key = jax.random.PRNGKey(0)
    k_lat, k_w, k_b = jax.random.split(key, 3)

    B = 203                                   # ragged batch -> exercises padding
    latent = jax.random.normal(k_lat, (B, LATENT_DIM), dtype=jnp.float32)

    # EqualizedLinear storage: weight ~ N(0, 1) / lr_mult; bias is the stored param.
    weights = (jax.random.normal(k_w, (NUM_LAYERS, LATENT_DIM, LATENT_DIM),
                                 dtype=jnp.float32) / LR_MULT)
    biases = jax.random.normal(k_b, (NUM_LAYERS, 1, LATENT_DIM), dtype=jnp.float32)

    out = jax.block_until_ready(mapping_network(latent, weights, biases))
    ref = reference(latent, weights, biases)

    assert out.shape == (B, LATENT_DIM)
    # bf16 MXU operands (and bf16 elementwise on v6e/v7x) across 8 chained layers:
    # tolerance relaxed vs the pure-f32 reference.
    assert jnp.allclose(out, ref, atol=3e-2, rtol=3e-2), (
        float(jnp.max(jnp.abs(out - ref))))

    print("KERNEL_OK")
</pallas_src>

<mosaic_0001>
module attributes {stable_mosaic.version = 11 : i64} {
  func.func @mapping_kernel(%arg0: i32, %arg1: memref<208x128xf32, #tpu.memory_space<vmem>>, %arg2: memref<8x128x128xbf16, #tpu.memory_space<vmem>>, %arg3: memref<8x1x128xf32, #tpu.memory_space<vmem>>, %arg4: memref<208x128xf32, #tpu.memory_space<vmem>>) attributes {dimension_semantics = [#tpu.dimension_semantics<parallel>], iteration_bounds = array<i64: 1>, scalar_prefetch = 0 : i64, scratch_operands = 0 : i64, tpu.core_type = #tpu.core_type<tc>, window_params = [{transform_indices = @transform_0, window_bounds = array<i64: 208, 128>}, {pipeline_mode = #tpu.pipeline_mode<synchronous>, transform_indices = @transform_1, window_bounds = array<i64: 8, 128, 128>}, {pipeline_mode = #tpu.pipeline_mode<synchronous>, transform_indices = @transform_2, window_bounds = array<i64: 8, 1, 128>}, {transform_indices = @transform_3, window_bounds = array<i64: 208, 128>}]} {
    %c0 = arith.constant 0 : index
    %c0_0 = arith.constant 0 : index
    %0 = vector.load %arg1[%c0, %c0_0] : memref<208x128xf32, #tpu.memory_space<vmem>>, vector<208x128xf32>
    %1 = arith.mulf %0, %0 : vector<208x128xf32>
    %cst = arith.constant dense<0.000000e+00> : vector<208xf32>
    %2 = vector.multi_reduction <add>, %1, %cst [1] : vector<208x128xf32> to vector<208xf32>
    %3 = vector.shape_cast %2 : vector<208xf32> to vector<208x1xf32>
    %cst_1 = arith.constant 1.280000e+02 : f32
    %4 = vector.broadcast %cst_1 : f32 to vector<208x1xf32>
    %5 = arith.divf %3, %4 : vector<208x1xf32>
    %cst_2 = arith.constant 9.99999993E-9 : f32
    %6 = vector.broadcast %cst_2 : f32 to vector<208x1xf32>
    %7 = arith.addf %5, %6 : vector<208x1xf32>
    %8 = math.rsqrt %7 : vector<208x1xf32>
    %9 = vector.broadcast %8 : vector<208x1xf32> to vector<208x128xf32>
    %10 = arith.mulf %0, %9 : vector<208x128xf32>
    %11 = arith.truncf %10 : vector<208x128xf32> to vector<208x128xbf16>
    %c0_3 = arith.constant 0 : index
    %c0_4 = arith.constant 0 : index
    %c0_5 = arith.constant 0 : index
    %12 = vector.load %arg2[%c0_3, %c0_4, %c0_5] : memref<8x128x128xbf16, #tpu.memory_space<vmem>>, vector<1x128x128xbf16>
    %13 = vector.shape_cast %12 : vector<1x128x128xbf16> to vector<128x128xbf16>
    %cst_6 = arith.constant dense<0.000000e+00> : vector<208x128xf32>
    %14 = tpu.matmul %11, %13, %cst_6 {dimension_numbers = #tpu.dot_dimension_numbers<[1], [0], [0], [1], [0, 0, 1, 1], [], []>} : vector<208x128xbf16>, vector<128x128xbf16>, vector<208x128xf32> -> vector<208x128xf32>
    %c0_7 = arith.constant 0 : index
    %c0_8 = arith.constant 0 : index
    %c0_9 = arith.constant 0 : index
    %15 = vector.load %arg3[%c0_7, %c0_8, %c0_9] : memref<8x1x128xf32, #tpu.memory_space<vmem>>, vector<1x1x128xf32>
    %16 = vector.shape_cast %15 : vector<1x1x128xf32> to vector<1x128xf32>
    %17 = vector.broadcast %16 : vector<1x128xf32> to vector<208x128xf32>
    %18 = arith.addf %14, %17 : vector<208x128xf32>
    %cst_10 = arith.constant 0.000000e+00 : f32
    %19 = vector.broadcast %cst_10 : f32 to vector<208x128xf32>
    %20 = arith.cmpf oge, %18, %19 : vector<208x128xf32>
    %cst_11 = arith.constant 2.000000e-01 : f32
    %21 = vector.broadcast %cst_11 : f32 to vector<208x128xf32>
    %22 = arith.mulf %21, %18 : vector<208x128xf32>
    %23 = arith.select %20, %18, %22 : vector<208x128xi1>, vector<208x128xf32>
    %24 = arith.truncf %23 : vector<208x128xf32> to vector<208x128xbf16>
    %c1 = arith.constant 1 : index
    %c0_12 = arith.constant 0 : index
    %c0_13 = arith.constant 0 : index
    %25 = vector.load %arg2[%c1, %c0_12, %c0_13] : memref<8x128x128xbf16, #tpu.memory_space<vmem>>, vector<1x128x128xbf16>
    %26 = vector.shape_cast %25 : vector<1x128x128xbf16> to vector<128x128xbf16>
    %cst_14 = arith.constant dense<0.000000e+00> : vector<208x128xf32>
    %27 = tpu.matmul %24, %26, %cst_14 {dimension_numbers = #tpu.dot_dimension_numbers<[1], [0], [0], [1], [0, 0, 1, 1], [], []>} : vector<208x128xbf16>, vector<128x128xbf16>, vector<208x128xf32> -> vector<208x128xf32>
    %c1_15 = arith.constant 1 : index
    %c0_16 = arith.constant 0 : index
    %c0_17 = arith.constant 0 : index
    %28 = vector.load %arg3[%c1_15, %c0_16, %c0_17] : memref<8x1x128xf32, #tpu.memory_space<vmem>>, vector<1x1x128xf32>
    %29 = vector.shape_cast %28 : vector<1x1x128xf32> to vector<1x128xf32>
    %30 = vector.broadcast %29 : vector<1x128xf32> to vector<208x128xf32>
    %31 = arith.addf %27, %30 : vector<208x128xf32>
    %cst_18 = arith.constant 0.000000e+00 : f32
    %32 = vector.broadcast %cst_18 : f32 to vector<208x128xf32>
    %33 = arith.cmpf oge, %31, %32 : vector<208x128xf32>
    %cst_19 = arith.constant 2.000000e-01 : f32
    %34 = vector.broadcast %cst_19 : f32 to vector<208x128xf32>
    %35 = arith.mulf %34, %31 : vector<208x128xf32>
    %36 = arith.select %33, %31, %35 : vector<208x128xi1>, vector<208x128xf32>
    %37 = arith.truncf %36 : vector<208x128xf32> to vector<208x128xbf16>
    %c2 = arith.constant 2 : index
    %c0_20 = arith.constant 0 : index
    %c0_21 = arith.constant 0 : index
    %38 = vector.load %arg2[%c2, %c0_20, %c0_21] : memref<8x128x128xbf16, #tpu.memory_space<vmem>>, vector<1x128x128xbf16>
    %39 = vector.shape_cast %38 : vector<1x128x128xbf16> to vector<128x128xbf16>
    %cst_22 = arith.constant dense<0.000000e+00> : vector<208x128xf32>
    %40 = tpu.matmul %37, %39, %cst_22 {dimension_numbers = #tpu.dot_dimension_numbers<[1], [0], [0], [1], [0, 0, 1, 1], [], []>} : vector<208x128xbf16>, vector<128x128xbf16>, vector<208x128xf32> -> vector<208x128xf32>
    %c2_23 = arith.constant 2 : index
    %c0_24 = arith.constant 0 : index
    %c0_25 = arith.constant 0 : index
    %41 = vector.load %arg3[%c2_23, %c0_24, %c0_25] : memref<8x1x128xf32, #tpu.memory_space<vmem>>, vector<1x1x128xf32>
    %42 = vector.shape_cast %41 : vector<1x1x128xf32> to vector<1x128xf32>
    %43 = vector.broadcast %42 : vector<1x128xf32> to vector<208x128xf32>
    %44 = arith.addf %40, %43 : vector<208x128xf32>
    %cst_26 = arith.constant 0.000000e+00 : f32
    %45 = vector.broadcast %cst_26 : f32 to vector<208x128xf32>
    %46 = arith.cmpf oge, %44, %45 : vector<208x128xf32>
    %cst_27 = arith.constant 2.000000e-01 : f32
    %47 = vector.broadcast %cst_27 : f32 to vector<208x128xf32>
    %48 = arith.mulf %47, %44 : vector<208x128xf32>
    %49 = arith.select %46, %44, %48 : vector<208x128xi1>, vector<208x128xf32>
    %50 = arith.truncf %49 : vector<208x128xf32> to vector<208x128xbf16>
    %c3 = arith.constant 3 : index
    %c0_28 = arith.constant 0 : index
    %c0_29 = arith.constant 0 : index
    %51 = vector.load %arg2[%c3, %c0_28, %c0_29] : memref<8x128x128xbf16, #tpu.memory_space<vmem>>, vector<1x128x128xbf16>
    %52 = vector.shape_cast %51 : vector<1x128x128xbf16> to vector<128x128xbf16>
    %cst_30 = arith.constant dense<0.000000e+00> : vector<208x128xf32>
    %53 = tpu.matmul %50, %52, %cst_30 {dimension_numbers = #tpu.dot_dimension_numbers<[1], [0], [0], [1], [0, 0, 1, 1], [], []>} : vector<208x128xbf16>, vector<128x128xbf16>, vector<208x128xf32> -> vector<208x128xf32>
    %c3_31 = arith.constant 3 : index
    %c0_32 = arith.constant 0 : index
    %c0_33 = arith.constant 0 : index
    %54 = vector.load %arg3[%c3_31, %c0_32, %c0_33] : memref<8x1x128xf32, #tpu.memory_space<vmem>>, vector<1x1x128xf32>
    %55 = vector.shape_cast %54 : vector<1x1x128xf32> to vector<1x128xf32>
    %56 = vector.broadcast %55 : vector<1x128xf32> to vector<208x128xf32>
    %57 = arith.addf %53, %56 : vector<208x128xf32>
    %cst_34 = arith.constant 0.000000e+00 : f32
    %58 = vector.broadcast %cst_34 : f32 to vector<208x128xf32>
    %59 = arith.cmpf oge, %57, %58 : vector<208x128xf32>
    %cst_35 = arith.constant 2.000000e-01 : f32
    %60 = vector.broadcast %cst_35 : f32 to vector<208x128xf32>
    %61 = arith.mulf %60, %57 : vector<208x128xf32>
    %62 = arith.select %59, %57, %61 : vector<208x128xi1>, vector<208x128xf32>
    %63 = arith.truncf %62 : vector<208x128xf32> to vector<208x128xbf16>
    %c4 = arith.constant 4 : index
    %c0_36 = arith.constant 0 : index
    %c0_37 = arith.constant 0 : index
    %64 = vector.load %arg2[%c4, %c0_36, %c0_37] : memref<8x128x128xbf16, #tpu.memory_space<vmem>>, vector<1x128x128xbf16>
    %65 = vector.shape_cast %64 : vector<1x128x128xbf16> to vector<128x128xbf16>
    %cst_38 = arith.constant dense<0.000000e+00> : vector<208x128xf32>
    %66 = tpu.matmul %63, %65, %cst_38 {dimension_numbers = #tpu.dot_dimension_numbers<[1], [0], [0], [1], [0, 0, 1, 1], [], []>} : vector<208x128xbf16>, vector<128x128xbf16>, vector<208x128xf32> -> vector<208x128xf32>
    %c4_39 = arith.constant 4 : index
    %c0_40 = arith.constant 0 : index
    %c0_41 = arith.constant 0 : index
    %67 = vector.load %arg3[%c4_39, %c0_40, %c0_41] : memref<8x1x128xf32, #tpu.memory_space<vmem>>, vector<1x1x128xf32>
    %68 = vector.shape_cast %67 : vector<1x1x128xf32> to vector<1x128xf32>
    %69 = vector.broadcast %68 : vector<1x128xf32> to vector<208x128xf32>
    %70 = arith.addf %66, %69 : vector<208x128xf32>
    %cst_42 = arith.constant 0.000000e+00 : f32
    %71 = vector.broadcast %cst_42 : f32 to vector<208x128xf32>
    %72 = arith.cmpf oge, %70, %71 : vector<208x128xf32>
    %cst_43 = arith.constant 2.000000e-01 : f32
    %73 = vector.broadcast %cst_43 : f32 to vector<208x128xf32>
    %74 = arith.mulf %73, %70 : vector<208x128xf32>
    %75 = arith.select %72, %70, %74 : vector<208x128xi1>, vector<208x128xf32>
    %76 = arith.truncf %75 : vector<208x128xf32> to vector<208x128xbf16>
    %c5 = arith.constant 5 : index
    %c0_44 = arith.constant 0 : index
    %c0_45 = arith.constant 0 : index
    %77 = vector.load %arg2[%c5, %c0_44, %c0_45] : memref<8x128x128xbf16, #tpu.memory_space<vmem>>, vector<1x128x128xbf16>
    %78 = vector.shape_cast %77 : vector<1x128x128xbf16> to vector<128x128xbf16>
    %cst_46 = arith.constant dense<0.000000e+00> : vector<208x128xf32>
    %79 = tpu.matmul %76, %78, %cst_46 {dimension_numbers = #tpu.dot_dimension_numbers<[1], [0], [0], [1], [0, 0, 1, 1], [], []>} : vector<208x128xbf16>, vector<128x128xbf16>, vector<208x128xf32> -> vector<208x128xf32>
    %c5_47 = arith.constant 5 : index
    %c0_48 = arith.constant 0 : index
    %c0_49 = arith.constant 0 : index
    %80 = vector.load %arg3[%c5_47, %c0_48, %c0_49] : memref<8x1x128xf32, #tpu.memory_space<vmem>>, vector<1x1x128xf32>
    %81 = vector.shape_cast %80 : vector<1x1x128xf32> to vector<1x128xf32>
    %82 = vector.broadcast %81 : vector<1x128xf32> to vector<208x128xf32>
    %83 = arith.addf %79, %82 : vector<208x128xf32>
    %cst_50 = arith.constant 0.000000e+00 : f32
    %84 = vector.broadcast %cst_50 : f32 to vector<208x128xf32>
    %85 = arith.cmpf oge, %83, %84 : vector<208x128xf32>
    %cst_51 = arith.constant 2.000000e-01 : f32
    %86 = vector.broadcast %cst_51 : f32 to vector<208x128xf32>
    %87 = arith.mulf %86, %83 : vector<208x128xf32>
    %88 = arith.select %85, %83, %87 : vector<208x128xi1>, vector<208x128xf32>
    %89 = arith.truncf %88 : vector<208x128xf32> to vector<208x128xbf16>
    %c6 = arith.constant 6 : index
    %c0_52 = arith.constant 0 : index
    %c0_53 = arith.constant 0 : index
    %90 = vector.load %arg2[%c6, %c0_52, %c0_53] : memref<8x128x128xbf16, #tpu.memory_space<vmem>>, vector<1x128x128xbf16>
    %91 = vector.shape_cast %90 : vector<1x128x128xbf16> to vector<128x128xbf16>
    %cst_54 = arith.constant dense<0.000000e+00> : vector<208x128xf32>
    %92 = tpu.matmul %89, %91, %cst_54 {dimension_numbers = #tpu.dot_dimension_numbers<[1], [0], [0], [1], [0, 0, 1, 1], [], []>} : vector<208x128xbf16>, vector<128x128xbf16>, vector<208x128xf32> -> vector<208x128xf32>
    %c6_55 = arith.constant 6 : index
    %c0_56 = arith.constant 0 : index
    %c0_57 = arith.constant 0 : index
    %93 = vector.load %arg3[%c6_55, %c0_56, %c0_57] : memref<8x1x128xf32, #tpu.memory_space<vmem>>, vector<1x1x128xf32>
    %94 = vector.shape_cast %93 : vector<1x1x128xf32> to vector<1x128xf32>
    %95 = vector.broadcast %94 : vector<1x128xf32> to vector<208x128xf32>
    %96 = arith.addf %92, %95 : vector<208x128xf32>
    %cst_58 = arith.constant 0.000000e+00 : f32
    %97 = vector.broadcast %cst_58 : f32 to vector<208x128xf32>
    %98 = arith.cmpf oge, %96, %97 : vector<208x128xf32>
    %cst_59 = arith.constant 2.000000e-01 : f32
    %99 = vector.broadcast %cst_59 : f32 to vector<208x128xf32>
    %100 = arith.mulf %99, %96 : vector<208x128xf32>
    %101 = arith.select %98, %96, %100 : vector<208x128xi1>, vector<208x128xf32>
    %102 = arith.truncf %101 : vector<208x128xf32> to vector<208x128xbf16>
    %c7 = arith.constant 7 : index
    %c0_60 = arith.constant 0 : index
    %c0_61 = arith.constant 0 : index
    %103 = vector.load %arg2[%c7, %c0_60, %c0_61] : memref<8x128x128xbf16, #tpu.memory_space<vmem>>, vector<1x128x128xbf16>
    %104 = vector.shape_cast %103 : vector<1x128x128xbf16> to vector<128x128xbf16>
    %cst_62 = arith.constant dense<0.000000e+00> : vector<208x128xf32>
    %105 = tpu.matmul %102, %104, %cst_62 {dimension_numbers = #tpu.dot_dimension_numbers<[1], [0], [0], [1], [0, 0, 1, 1], [], []>} : vector<208x128xbf16>, vector<128x128xbf16>, vector<208x128xf32> -> vector<208x128xf32>
    %c7_63 = arith.constant 7 : index
    %c0_64 = arith.constant 0 : index
    %c0_65 = arith.constant 0 : index
    %106 = vector.load %arg3[%c7_63, %c0_64, %c0_65] : memref<8x1x128xf32, #tpu.memory_space<vmem>>, vector<1x1x128xf32>
    %107 = vector.shape_cast %106 : vector<1x1x128xf32> to vector<1x128xf32>
    %108 = vector.broadcast %107 : vector<1x128xf32> to vector<208x128xf32>
    %109 = arith.addf %105, %108 : vector<208x128xf32>
    %cst_66 = arith.constant 0.000000e+00 : f32
    %110 = vector.broadcast %cst_66 : f32 to vector<208x128xf32>
    %111 = arith.cmpf oge, %109, %110 : vector<208x128xf32>
    %cst_67 = arith.constant 2.000000e-01 : f32
    %112 = vector.broadcast %cst_67 : f32 to vector<208x128xf32>
    %113 = arith.mulf %112, %109 : vector<208x128xf32>
    %114 = arith.select %111, %109, %113 : vector<208x128xi1>, vector<208x128xf32>
    %c0_68 = arith.constant 0 : index
    %c0_69 = arith.constant 0 : index
    %115 = vector.load %arg4[%c0_68, %c0_69] : memref<208x128xf32, #tpu.memory_space<vmem>>, vector<208x128xf32>
    tpu.vector_store %arg4[%c0_68, %c0_69], %114 {strides = array<i32>} : memref<208x128xf32, #tpu.memory_space<vmem>>, vector<208x128xf32>,
    return
  }
  func.func @transform_0(%arg0: i32) -> (i32, i32) {
    %c0_i32 = arith.constant 0 : i32
    %c0_i32_0 = arith.constant 0 : i32
    return %arg0, %c0_i32 : i32, i32
  }
  func.func @transform_1(%arg0: i32) -> (i32, i32, i32) {
    %c0_i32 = arith.constant 0 : i32
    %c0_i32_0 = arith.constant 0 : i32
    %c0_i32_1 = arith.constant 0 : i32
    %c0_i32_2 = arith.constant 0 : i32
    return %c0_i32, %c0_i32_0, %c0_i32_1 : i32, i32, i32
  }
  func.func @transform_2(%arg0: i32) -> (i32, i32, i32) {
    %c0_i32 = arith.constant 0 : i32
    %c0_i32_0 = arith.constant 0 : i32
    %c0_i32_1 = arith.constant 0 : i32
    %c0_i32_2 = arith.constant 0 : i32
    return %c0_i32, %c0_i32_0, %c0_i32_1 : i32, i32, i32
  }
  func.func @transform_3(%arg0: i32) -> (i32, i32) {
    %c0_i32 = arith.constant 0 : i32
    %c0_i32_0 = arith.constant 0 : i32
    return %arg0, %c0_i32 : i32, i32
  }
}

</mosaic_0001>

<bundles_post_ra>
// kernel: _mapping_forward.1
= control target key start
LH: loop header
LB: loop body
LE: loop exit
PB: predicated region body
PF: predicated region fallthrough
CT: control target
= control target key end

     0   :  { %v3719_v6 = vmov 0.0   ;;  %vm3720_vm0 = vmmov 0   ;;  %s4667_s0 = inlined_call_operand.vmem [shape: f32[208,128], index: 0, kind: input, shape index: {}]   ;;  %s4668_s1 = inlined_call_operand.vmem [shape: bf16[8,128,128], index: 1, kind: input, shape index: {}]   ;;  %s4669_s2 = inlined_call_operand.vmem [shape: f32[8,1,128], index: 2, kind: input, shape index: {}]   ;;  %s4670_s3 = inlined_call_operand.hbm [shape: f32[208,128], index: 3, kind: output, shape index: {}]  }
   0x1   :  { %v3747_v0 = vld [vmem:[%s4667_s0] sm:$0xff]  ;;  %v3752_v1 = vld [vmem:[%s4667_s0 + $0x10] sm:$0xff]  ;;  %v3757_v2 = vld [vmem:[%s4667_s0 + $0x8] sm:$0xff]  ;;  %3032 = vmatprep.subr.bf16.mxu0 %v3719_v6  ;;  %3100 = vmatprep.subr.bf16.mxu1 %v3719_v6 }
   0x2   :  { %v42_v3 = vmul.f32 %v3747_v0, %v3747_v0  ;;  %v44_v4 = vmul.f32 %v3752_v1, %v3752_v1  ;;  %v3766_v5 = vld [vmem:[%s4667_s0 + $0x18] sm:$0xff]  ;;  %v43_v7 = vmul.f32 %v3757_v2, %v3757_v2  ;;  %v3777_v9 = vld [vmem:[%s4667_s0 + $0x28] sm:$0xff]  ;;  %v3782_v10 = vld [vmem:[%s4667_s0 + $0x20] sm:$0xff]  ;;  %3048 = vmatprep.mubr.msk.bf16.mxu0 %vm3720_vm0, %v3719_v6  ;;  %3116 = vmatprep.mubr.msk.bf16.mxu1 %vm3720_vm0, %v3719_v6 }
   0x3   :  { %v45_v8 = vmul.f32 %v3766_v5, %v3766_v5  ;;  %v47_v11 = vmul.f32 %v3777_v9, %v3777_v9  ;;  %v46_v12 = vmul.f32 %v3782_v10, %v3782_v10  ;;  %v3791_v13 = vld [vmem:[%s4667_s0 + $0x38] sm:$0xff]  ;;  %v3796_v14 = vld [vmem:[%s4667_s0 + $0x30] sm:$0xff]  ;;  %v3804_v16 = vld [vmem:[%s4667_s0 + $0x48] sm:$0xff] }
   0x4   :  { %68 = vadd.xlane.f32.xlu0 %v42_v3  ;;  %72 = vadd.xlane.f32.xlu1 %v44_v4  ;;  %v3581_v15 = vld [vmem:[%s4668_s1 + $0x38] sm:$0xff]   ;;  %v3809_v17 = vld [vmem:[%s4667_s0 + $0x40] sm:$0xff]  ;;  %v3582_v18 = vld [vmem:[%s4668_s1 + $0x30] sm:$0xff]   ;;  %v49_v19 = vmul.f32 %v3791_v13, %v3791_v13  ;;  %v48_v20 = vmul.f32 %v3796_v14, %v3796_v14  ;;  %v51_v24 = vmul.f32 %v3804_v16, %v3804_v16 }
   0x5   :  { %3033 = vmatpush3.bf16.msra.mxu0 %v3581_v15  ;;  %v3822_v21 = vld [vmem:[%s4667_s0 + $0x58] sm:$0xff]  ;;  %v3827_v22 = vld [vmem:[%s4667_s0 + $0x50] sm:$0xff]  ;;  %v3583_v23 = vld [vmem:[%s4668_s1 + $0x28] sm:$0xff]   ;;  %v50_v25 = vmul.f32 %v3809_v17, %v3809_v17 }
   0x6   :  { %3034 = vmatprep.subr.bf16.mxu0 %v3719_v6  ;;  %v3840_v26 = vld [vmem:[%s4667_s0 + $0x68] sm:$0xff]  ;;  %v3845_v27 = vld [vmem:[%s4667_s0 + $0x60] sm:$0xff]  ;;  %v53_v29 = vmul.f32 %v3822_v21, %v3822_v21  ;;  %v52_v30 = vmul.f32 %v3827_v22, %v3827_v22  ;;  %v3858_v31 = vld [vmem:[%s4667_s0 + $0x78] sm:$0xff] }
   0x7   :  { %v3584_v28 = vld [vmem:[%s4668_s1 + $0x20] sm:$0xff]   ;;  %v3863_v32 = vld [vmem:[%s4667_s0 + $0x70] sm:$0xff]  ;;  %v3585_v33 = vld [vmem:[%s4668_s1 + $0x18] sm:$0xff]   ;;  %v55_v34 = vmul.f32 %v3840_v26, %v3840_v26  ;;  %v54_v35 = vmul.f32 %v3845_v27, %v3845_v27  ;;  %v57_v39 = vmul.f32 %v3858_v31, %v3858_v31 }
   0x8   :  { %70 = vadd.xlane.f32.xlu0 %v43_v7  ;;  %74 = vadd.xlane.f32.xlu1 %v45_v8  ;;  %v3876_v36 = vld [vmem:[%s4667_s0 + $0x88] sm:$0xff]  ;;  %v3881_v37 = vld [vmem:[%s4667_s0 + $0x80] sm:$0xff]  ;;  %v3586_v38 = vld [vmem:[%s4668_s1 + $0x10] sm:$0xff]   ;;  %v56_v40 = vmul.f32 %v3863_v32, %v3863_v32 }
   0x9   :  { %3035 = vmatpush3.bf16.msra.mxu0 %v3582_v18  ;;  %v3898_v41 = vld [vmem:[%s4667_s0 + $0x98] sm:$0xff]  ;;  %v3903_v42 = vld [vmem:[%s4667_s0 + $0x90] sm:$0xff]  ;;  %v3587_v43 = vld [vmem:[%s4668_s1 + $0x8] sm:$0xff]   ;;  %v59_v44 = vmul.f32 %v3876_v36, %v3876_v36  ;;  %v58_v45 = vmul.f32 %v3881_v37, %v3881_v37 }
   0xa   :  { %3036 = vmatprep.subr.bf16.mxu0 %v3719_v6  ;;  %v3916_v46 = vld [vmem:[%s4667_s0 + $0xa8] sm:$0xff]  ;;  %v3921_v47 = vld [vmem:[%s4667_s0 + $0xa0] sm:$0xff]  ;;  %v61_v49 = vmul.f32 %v3898_v41, %v3898_v41  ;;  %v60_v50 = vmul.f32 %v3903_v42, %v3903_v42  ;;  %v3934_v51 = vld [vmem:[%s4667_s0 + $0xb8] sm:$0xff] }
   0xb   :  { %v3588_v48 = vld [vmem:[%s4668_s1] sm:$0xff]   ;;  %v3939_v52 = vld [vmem:[%s4667_s0 + $0xb0] sm:$0xff]  ;;  %v63_v53 = vmul.f32 %v3916_v46, %v3916_v46  ;;  %v62_v54 = vmul.f32 %v3921_v47, %v3921_v47  ;;  %v3949_v55 = vld [vmem:[%s4667_s0 + $0xc8] sm:$0xff]  ;;  %v65_v57 = vmul.f32 %v3934_v51, %v3934_v51 }
   0xc   :  { %78 = vadd.xlane.f32.xlu1 %v47_v11  ;;  %76 = vadd.xlane.f32.xlu0 %v46_v12  ;;  %v3954_v56 = vld [vmem:[%s4667_s0 + $0xc0] sm:$0xff]  ;;  %v64_v58 = vmul.f32 %v3939_v52, %v3939_v52  ;;  %v67_v59 = vmul.f32 %v3949_v55, %v3949_v55 }
   0xd   :  { %3037 = vmatpush3.bf16.msra.mxu0 %v3583_v23  ;;  %v66_v60 = vmul.f32 %v3954_v56, %v3954_v56 }
   0xe   :  { %3038 = vmatprep.subr.bf16.mxu0 %v3719_v6 }
  0x10   :  { %82 = vadd.xlane.f32.xlu1 %v49_v19  ;;  %80 = vadd.xlane.f32.xlu0 %v48_v20 }
  0x11   :  { %3039 = vmatpush3.bf16.msra.mxu0 %v3584_v28 }
  0x12   :  { %3040 = vmatprep.subr.bf16.mxu0 %v3719_v6 }
  0x14   :  { %86 = vadd.xlane.f32.xlu1 %v51_v24  ;;  %84 = vadd.xlane.f32.xlu0 %v50_v25 }
  0x15   :  { %3041 = vmatpush3.bf16.msra.mxu0 %v3585_v33 }
  0x16   :  { %3042 = vmatprep.subr.bf16.mxu0 %v3719_v6 }
  0x18   :  { %90 = vadd.xlane.f32.xlu1 %v53_v29  ;;  %88 = vadd.xlane.f32.xlu0 %v52_v30 }
  0x19   :  { %3043 = vmatpush3.bf16.msra.mxu0 %v3586_v38 }
  0x1a   :  { %3044 = vmatprep.subr.bf16.mxu0 %v3719_v6 }
  0x1c   :  { %94 = vadd.xlane.f32.xlu1 %v55_v34  ;;  %92 = vadd.xlane.f32.xlu0 %v54_v35 }
  0x1d   :  { %3045 = vmatpush3.bf16.msra.mxu0 %v3587_v43 }
  0x1e   :  { %3046 = vmatprep.subr.bf16.mxu0 %v3719_v6 }
  0x20   :  { %98 = vadd.xlane.f32.xlu1 %v57_v39  ;;  %96 = vadd.xlane.f32.xlu0 %v56_v40 }
  0x21   :  { %3047 = vmatpush3.bf16.msra.mxu0 %v3588_v48 }
  0x22   :  { %3168 = vmatprep.subr.bf16.mxu0 %v3719_v6 }
  0x24   :  { %102 = vadd.xlane.f32.xlu1 %v59_v44  ;;  %100 = vadd.xlane.f32.xlu0 %v58_v45 }
  0x28   :  { %106 = vadd.xlane.f32.xlu1 %v61_v49  ;;  %104 = vadd.xlane.f32.xlu0 %v60_v50 }
  0x2c   :  { %110 = vadd.xlane.f32.xlu1 %v63_v53  ;;  %108 = vadd.xlane.f32.xlu0 %v62_v54 }
  0x30   :  { %114 = vadd.xlane.f32.xlu1 %v65_v57  ;;  %112 = vadd.xlane.f32.xlu0 %v64_v58 }
  0x34   :  { %118 = vadd.xlane.f32.xlu1 %v67_v59  ;;  %116 = vadd.xlane.f32.xlu0 %v66_v60 }
  0x35   :  { %8 = vsyncpa [#allocation3], 0  ;;  %v3589_v61 = vld [vmem:[%s4668_s1 + $0x78] sm:$0xff]   ;;  %v3590_v62 = vld [vmem:[%s4668_s1 + $0x70] sm:$0xff]  }
  0x36   :  { %3101 = vmatpush3.bf16.msra.mxu1 %v3589_v61  ;;  %v3591_v7 = vld [vmem:[%s4668_s1 + $0x68] sm:$0xff]   ;;  %v3592_v20 = vld [vmem:[%s4668_s1 + $0x60] sm:$0xff]   ;;  %v3593_v30 = vld [vmem:[%s4668_s1 + $0x58] sm:$0xff]  }
  0x37   :  { %3102 = vmatprep.subr.bf16.mxu1 %v3719_v6 }
  0x3a   :  { %3103 = vmatpush3.bf16.msra.mxu1 %v3590_v62 }
  0x3b   :  { %3104 = vmatprep.subr.bf16.mxu1 %v3719_v6 }
  0x3e   :  { %3105 = vmatpush3.bf16.msra.mxu1 %v3591_v7 }
  0x3f   :  { %3106 = vmatprep.subr.bf16.mxu1 %v3719_v6 }
  0x42   :  { %3107 = vmatpush3.bf16.msra.mxu1 %v3592_v20 }
  0x43   :  { %3108 = vmatprep.subr.bf16.mxu1 %v3719_v6 }
  0x46   :  { %3109 = vmatpush3.bf16.msra.mxu1 %v3593_v30 }
  0x47   :  { %3110 = vmatprep.subr.bf16.mxu1 %v3719_v6 }
  0x8d   :  { %v69_v63 = vpop.xlane.xlu0 %68  ;;  %v73_v3 = vpop.xlane.xlu1 %72 }
  0x8e   :  { %v121_v4 = vmul.f32 0.0078125, %v69_v63  ;;  %v123_v11 = vmul.f32 0.0078125, %v73_v3 }
  0x90   :  { %v147_v8 = vadd.f32 1e-08, %v121_v4  ;;  %v149_v24 = vadd.f32 1e-08, %v123_v11 }
  0x91   :  { %v71_v12 = vpop.xlane.xlu0 %70  ;;  %v75_v15 = vpop.xlane.xlu1 %74 }
  0x92   :  { %v122_v18 = vmul.f32 0.0078125, %v71_v12  ;;  %v124_v19 = vmul.f32 0.0078125, %v75_v15  ;;  %3645 = vrsqrt.f32 %v147_v8 }
  0x94   :  { %v148_v23 = vadd.f32 1e-08, %v122_v18  ;;  %v150_v29 = vadd.f32 1e-08, %v124_v19 }
  0x95   :  { %v79_v25 = vpop.xlane.xlu1 %78  ;;  %v77_v28 = vpop.xlane.xlu0 %76 }
  0x96   :  { %3647 = vrsqrt.f32 %v148_v23  ;;  %v126_v33 = vmul.f32 0.0078125, %v79_v25  ;;  %v125_v34 = vmul.f32 0.0078125, %v77_v28 }
  0x97   :  { %3649 = vrsqrt.f32 %v149_v24 }
  0x98   :  { %3651 = vrsqrt.f32 %v150_v29  ;;  %v152_v35 = vadd.f32 1e-08, %v126_v33  ;;  %v151_v38 = vadd.f32 1e-08, %v125_v34 }
  0x99   :  { %v83_v39 = vpop.xlane.xlu1 %82  ;;  %v81_v40 = vpop.xlane.xlu0 %80 }
  0x9a   :  { %3653 = vrsqrt.f32 %v152_v35  ;;  %v128_v43 = vmul.f32 0.0078125, %v83_v39  ;;  %v127_v44 = vmul.f32 0.0078125, %v81_v40 }
  0x9b   :  { %3655 = vrsqrt.f32 %v151_v38 }
  0x9c   :  { %v154_v49 = vadd.f32 1e-08, %v128_v43  ;;  %v153_v54 = vadd.f32 1e-08, %v127_v44 }
  0x9d   :  { %v87_v57 = vpop.xlane.xlu1 %86  ;;  %v85_v58 = vpop.xlane.xlu0 %84 }
  0x9e   :  { %3657 = vrsqrt.f32 %v154_v49  ;;  %v130_v62 = vmul.f32 0.0078125, %v87_v57  ;;  %v129_v63 = vmul.f32 0.0078125, %v85_v58 }
  0x9f   :  { %v3646_v45 = vpop.eup %3645  ;;  %3659 = vrsqrt.f32 %v153_v54 }
  0xa0   :  { %v199_v50 = vmul.f32 %v3646_v45, %v3747_v0  ;;  %v156_v4 = vadd.f32 1e-08, %v130_v62  ;;  %v155_v7 = vadd.f32 1e-08, %v129_v63 }
  0xa1   :  { %v91_v8 = vpop.xlane.xlu1 %90  ;;  %v89_v12 = vpop.xlane.xlu0 %88 }
  0xa2   :  { %3661 = vrsqrt.f32 %v156_v4  ;;  %v132_v18 = vmul.f32 0.0078125, %v91_v8  ;;  %v131_v23 = vmul.f32 0.0078125, %v89_v12 }
  0xa3   :  { %v3648_v48 = vpop.eup %3647  ;;  %3663 = vrsqrt.f32 %v155_v7 }
  0xa4   :  { %v200_v53 = vmul.f32 %v3648_v48, %v3757_v2  ;;  %v3650_v59 = vpop.eup %3649  ;;  %v157_v25 = vadd.f32 1e-08, %v131_v23 }
  0xa5   :  { %v3652_v61 = vpop.eup %3651  ;;  %v201_v3 = vmul.f32 %v3650_v59, %v3752_v1  ;;  %v158_v1 = vadd.f32 1e-08, %v132_v18  ;;  %v95_v28 = vpop.xlane.xlu1 %94 }
  0xa6   :  { %v225_v60 = vpack.c.bf16 %v200_v53, %v199_v50  ;;  %v202_v0 = vmul.f32 %v3652_v61, %v3766_v5  ;;  %v93_v30 = vpop.xlane.xlu0 %92  ;;  %v134_v33 = vmul.f32 0.0078125, %v95_v28 }
  0xa7   :  { %v3654_v2 = vpop.eup %3653  ;;  %3665 = vrsqrt.f32 %v158_v1 }
  0xa8   :  { %3049 = vmatmul.mubr.bf16.vlgmr.msra.gmra.mxu0 %v225_v60  ;;  %v3656_v11 = vpop.eup %3655  ;;  %v226_v15 = vpack.c.bf16 %v202_v0, %v201_v3  ;;  %v204_v20 = vmul.f32 %v3654_v2, %v3777_v9  ;;  %3667 = vrsqrt.f32 %v157_v25  ;;  %v133_v9 = vmul.f32 0.0078125, %v93_v30 }
  0xa9   :  { %3052 = vmatprep.mubr.msk.bf16.mxu0 %vm3720_vm0, %v3719_v6  ;;  %v203_v19 = vmul.f32 %v3656_v11, %v3782_v10  ;;  %v160_v35 = vadd.f32 1e-08, %v134_v33  ;;  %v99_v43 = vpop.xlane.xlu1 %98 }
  0xaa   :  { %v159_v40 = vadd.f32 1e-08, %v133_v9  ;;  %v97_v45 = vpop.xlane.xlu0 %96  ;;  %v136_v48 = vmul.f32 0.0078125, %v99_v43 }
  0xab   :  { %v3658_v5 = vpop.eup %3657  ;;  %v227_v24 = vpack.c.bf16 %v204_v20, %v203_v19  ;;  %3669 = vrsqrt.f32 %v160_v35 }
  0xac   :  { %v3660_v29 = vpop.eup %3659  ;;  %v206_v10 = vmul.f32 %v3658_v5, %v3791_v13  ;;  %3671 = vrsqrt.f32 %v159_v40  ;;  %v135_v13 = vmul.f32 0.0078125, %v97_v45  ;;  %v162_v50 = vadd.f32 1e-08, %v136_v48 }
  0xad   :  { %v205_v34 = vmul.f32 %v3660_v29, %v3796_v14  ;;  %v103_v58 = vpop.xlane.xlu1 %102 }
  0xae   :  { %v161_v57 = vadd.f32 1e-08, %v135_v13  ;;  %v101_v60 = vpop.xlane.xlu0 %100  ;;  %3673 = vrsqrt.f32 %v162_v50  ;;  %v138_v61 = vmul.f32 0.0078125, %v103_v58  ;;  %v3594_v13 = vld [vmem:[%s4668_s1 + $0x50] sm:$0xff]  }
  0xaf   :  { %v3662_v38 = vpop.eup %3661  ;;  %v228_v39 = vpack.c.bf16 %v206_v10, %v205_v34  ;;  %3111 = vmatpush3.bf16.msra.mxu1 %v3594_v13 }
  0xb0   :  { %3053 = vmatmul.mubr.bf16.gmra.mxu0 %v226_v15  ;;  %v3664_v44 = vpop.eup %3663  ;;  %v208_v14 = vmul.f32 %v3662_v38, %v3804_v16  ;;  %3675 = vrsqrt.f32 %v161_v57  ;;  %v137_v16 = vmul.f32 0.0078125, %v101_v60  ;;  %v164_v63 = vadd.f32 1e-08, %v138_v61  ;;  %3112 = vmatprep.subr.bf16.mxu1 %v3719_v6 }
  0xb1   :  { %3056 = vmatprep.mubr.msk.bf16.mxu0 %vm3720_vm0, %v3719_v6  ;;  %v207_v49 = vmul.f32 %v3664_v44, %v3809_v17  ;;  %v107_v2 = vpop.xlane.xlu1 %106 }
  0xb2   :  { %v163_v4 = vadd.f32 1e-08, %v137_v16  ;;  %v105_v8 = vpop.xlane.xlu0 %104  ;;  %3677 = vrsqrt.f32 %v164_v63  ;;  %v140_v11 = vmul.f32 0.0078125, %v107_v2 }
  0xb3   :  { %v229_v54 = vpack.c.bf16 %v208_v14, %v207_v49 }
  0xb4   :  { %v3666_v53 = vpop.eup %3665  ;;  %3679 = vrsqrt.f32 %v163_v4  ;;  %v166_v15 = vadd.f32 1e-08, %v140_v11  ;;  %v4070_v11 = vld [vmem:[%s4669_s2] ss:$0 sm:$0xff] }
  0xb5   :  { %v3668_v59 = vpop.eup %3667  ;;  %v210_v17 = vmul.f32 %v3666_v53, %v3822_v21  ;;  %v139_v21 = vmul.f32 0.0078125, %v105_v8  ;;  %v111_v23 = vpop.xlane.xlu1 %110  ;;  %v3601_v8 = vld [vmem:[%s4668_s1 + $0x98] sm:$0xff]  }
  0xb6   :  { %v209_v62 = vmul.f32 %v3668_v59, %v3827_v22  ;;  %v109_v5 = vpop.xlane.xlu0 %108  ;;  %3681 = vrsqrt.f32 %v166_v15 }
  0xb7   :  { %v165_v20 = vadd.f32 1e-08, %v139_v21 }
  0xb8   :  { %3057 = vmatmul.mubr.bf16.gmra.mxu0 %v227_v24  ;;  %v3670_v3 = vpop.eup %3669  ;;  %v230_v0 = vpack.c.bf16 %v210_v17, %v209_v62  ;;  %v142_v24 = vmul.f32 0.0078125, %v111_v23 }
  0xb9   :  { %3060 = vmatprep.mubr.msk.bf16.mxu0 %vm3720_vm0, %v3719_v6  ;;  %v3672_v7 = vpop.eup %3671  ;;  %v212_v22 = vmul.f32 %v3670_v3, %v3840_v26  ;;  %3683 = vrsqrt.f32 %v165_v20  ;;  %v141_v26 = vmul.f32 0.0078125, %v109_v5  ;;  %v115_v34 = vpop.xlane.xlu1 %114  ;;  %v3604_v5 = vld [vmem:[%s4668_s1 + $0x80] sm:$0xff]  }
  0xba   :  { %v211_v12 = vmul.f32 %v3672_v7, %v3845_v27  ;;  %v168_v28 = vadd.f32 1e-08, %v142_v24  ;;  %v113_v9 = vpop.xlane.xlu0 %112  ;;  %v144_v35 = vmul.f32 0.0078125, %v115_v34 }
  0xbb   :  { %v3674_v18 = vpop.eup %3673  ;;  %v167_v33 = vadd.f32 1e-08, %v141_v26 }
  0xbc   :  { %v231_v19 = vpack.c.bf16 %v212_v22, %v211_v12  ;;  %v214_v27 = vmul.f32 %v3674_v18, %v3858_v31  ;;  %3685 = vrsqrt.f32 %v168_v28  ;;  %v143_v31 = vmul.f32 0.0078125, %v113_v9  ;;  %v3602_v12 = vld [vmem:[%s4668_s1 + $0x90] sm:$0xff]   ;;  %v3603_v18 = vld [vmem:[%s4668_s1 + $0x88] sm:$0xff]  }
  0xbd   :  { %v3676_v1 = vpop.eup %3675  ;;  %3687 = vrsqrt.f32 %v167_v33  ;;  %v119_v45 = vpop.xlane.xlu1 %118 }
  0xbe   :  { %v213_v25 = vmul.f32 %v3676_v1, %v3863_v32  ;;  %v169_v44 = vadd.f32 1e-08, %v143_v31  ;;  %v117_v49 = vpop.xlane.xlu0 %116  ;;  %v146_v14 = vmul.f32 0.0078125, %v119_v45 }
  0xbf   :  { %v3678_v29 = vpop.eup %3677  ;;  %v145_v50 = vmul.f32 0.0078125, %v117_v49 }
  0xc0   :  { %3061 = vmatmul.mubr.bf16.gmra.mxu0 %v228_v39  ;;  %v232_v30 = vpack.c.bf16 %v214_v27, %v213_v25  ;;  %v216_v32 = vmul.f32 %v3678_v29, %v3876_v36  ;;  %v170_v39 = vadd.f32 1e-08, %v144_v35  ;;  %v172_v53 = vadd.f32 1e-08, %v146_v14 }
  0xc1   :  { %3064 = vmatprep.mubr.msk.bf16.mxu0 %vm3720_vm0, %v3719_v6  ;;  %v3680_v10 = vpop.eup %3679  ;;  %v171_v59 = vadd.f32 1e-08, %v145_v50 }
  0xc2   :  { %v215_v38 = vmul.f32 %v3680_v10, %v3881_v37  ;;  %3689 = vrsqrt.f32 %v170_v39 }
  0xc3   :  { %v3682_v40 = vpop.eup %3681  ;;  %3691 = vrsqrt.f32 %v169_v44 }
  0xc4   :  { %v233_v43 = vpack.c.bf16 %v216_v32, %v215_v38  ;;  %v218_v37 = vmul.f32 %v3682_v40, %v3898_v41  ;;  %3693 = vrsqrt.f32 %v172_v53  ;;  %v3596_v41 = vld [vmem:[%s4668_s1 + $0x40] sm:$0xff]  }
  0xc5   :  { %3695 = vrsqrt.f32 %v171_v59 }
  0xc6   :  { %v3684_v48 = vpop.eup %3683 }
  0xc7   :  { %v217_v36 = vmul.f32 %v3684_v48, %v3903_v42 }
  0xc8   :  { %3065 = vmatmul.mubr.bf16.gmra.mxu0 %v229_v54  ;;  %v3595_v54 = vld [vmem:[%s4668_s1 + $0x48] sm:$0xff]  }
  0xc9   :  { %3068 = vmatprep.mubr.msk.bf16.mxu0 %vm3720_vm0, %v3719_v6  ;;  %v3686_v57 = vpop.eup %3685  ;;  %v234_v58 = vpack.c.bf16 %v218_v37, %v217_v36  ;;  %3113 = vmatpush3.bf16.msra.mxu1 %v3595_v54 }
  0xca   :  { %v3688_v60 = vpop.eup %3687  ;;  %3114 = vmatprep.subr.bf16.mxu1 %v3719_v6  ;;  %v220_v61 = vmul.f32 %v3686_v57, %v3916_v46 }
  0xcb   :  { %v219_v42 = vmul.f32 %v3688_v60, %v3921_v47 }
  0xcd   :  { %3115 = vmatpush3.bf16.msra.mxu1 %v3596_v41  ;;  %v235_v17 = vpack.c.bf16 %v220_v61, %v219_v42 }
  0xce   :  { %3236 = vmatprep.subr.bf16.mxu1 %v3719_v6 }
  0xcf   :  { %v3690_v62 = vpop.eup %3689 }
  0xd0   :  { %3069 = vmatmul.mubr.bf16.gmra.mxu0 %v230_v0  ;;  %v3692_v16 = vpop.eup %3691  ;;  %v222_v3 = vmul.f32 %v3690_v62, %v3934_v51  ;;  %v3597_v51 = vld [vmem:[%s4668_s1 + $0xb8] sm:$0xff]  }
  0xd1   :  { %3072 = vmatprep.mubr.msk.bf16.mxu0 %vm3720_vm0, %v3719_v6  ;;  %v221_v63 = vmul.f32 %v3692_v16, %v3939_v52  ;;  %v3694_v47 = vpop.eup %3693  ;;  %3169 = vmatpush3.bf16.msra.mxu0 %v3597_v51  ;;  %v3598_v52 = vld [vmem:[%s4668_s1 + $0xb0] sm:$0xff]  }
  0xd2   :  { %v3696_v46 = vpop.eup %3695  ;;  %v224_v2 = vmul.f32 %v3694_v47, %v3949_v55  ;;  %3170 = vmatprep.subr.bf16.mxu0 %v3719_v6  ;;  %v3599_v55 = vld [vmem:[%s4668_s1 + $0xa8] sm:$0xff]  }
  0xd3   :  { %v236_v0 = vpack.c.bf16 %v222_v3, %v221_v63  ;;  %v223_v4 = vmul.f32 %v3696_v46, %v3954_v56  ;;  %v3600_v56 = vld [vmem:[%s4668_s1 + $0xa0] sm:$0xff]  }
  0xd5   :  { %v237_v7 = vpack.c.bf16 %v224_v2, %v223_v4  ;;  %3171 = vmatpush3.bf16.msra.mxu0 %v3598_v52 }
  0xd6   :  { %3172 = vmatprep.subr.bf16.mxu0 %v3719_v6 }
  0xd8   :  { %3073 = vmatmul.mubr.bf16.gmra.mxu0 %v231_v19 }
  0xd9   :  { %3076 = vmatprep.mubr.msk.bf16.mxu0 %vm3720_vm0, %v3719_v6  ;;  %3173 = vmatpush3.bf16.msra.mxu0 %v3599_v55 }
  0xda   :  { %3174 = vmatprep.subr.bf16.mxu0 %v3719_v6 }
  0xdd   :  { %3175 = vmatpush3.bf16.msra.mxu0 %v3600_v56 }
  0xde   :  { %3176 = vmatprep.subr.bf16.mxu0 %v3719_v6 }
  0xe0   :  { %3077 = vmatmul.mubr.bf16.gmra.mxu0 %v232_v30 }
  0xe1   :  { %3080 = vmatprep.mubr.msk.bf16.mxu0 %vm3720_vm0, %v3719_v6  ;;  %3177 = vmatpush3.bf16.msra.mxu0 %v3601_v8 }
  0xe2   :  { %3178 = vmatprep.subr.bf16.mxu0 %v3719_v6 }
  0xe5   :  { %3179 = vmatpush3.bf16.msra.mxu0 %v3602_v12 }
  0xe6   :  { %3180 = vmatprep.subr.bf16.mxu0 %v3719_v6 }
  0xe8   :  { %3081 = vmatmul.mubr.bf16.gmra.mxu0 %v233_v43 }
  0xe9   :  { %3084 = vmatprep.mubr.msk.bf16.mxu0 %vm3720_vm0, %v3719_v6  ;;  %3181 = vmatpush3.bf16.msra.mxu0 %v3603_v18 }
  0xea   :  { %3182 = vmatprep.subr.bf16.mxu0 %v3719_v6 }
  0xed   :  { %3183 = vmatpush3.bf16.msra.mxu0 %v3604_v5 }
  0xee   :  { %3304 = vmatprep.subr.bf16.mxu0 %v3719_v6 }
  0xf0   :  { %3085 = vmatmul.mubr.bf16.gmra.mxu0 %v234_v58 }
  0xf1   :  { %3088 = vmatprep.mubr.msk.bf16.mxu0 %vm3720_vm0, %v3719_v6 }
  0xf8   :  { %3089 = vmatmul.mubr.bf16.gmra.mxu0 %v235_v17 }
  0xf9   :  { %3092 = vmatprep.mubr.msk.bf16.mxu0 %vm3720_vm0, %v3719_v6 }
 0x100   :  { %3093 = vmatmul.mubr.bf16.gmra.mxu0 %v236_v0 }
 0x101   :  { %3096 = vmatprep.mubr.msk.bf16.mxu0 %vm3720_vm0, %v3719_v6 }
 0x108   :  { %3097 = vmatmul.mubr.bf16.gmra.mxu0 %v237_v7 }
 0x109   :  { %3184 = vmatprep.mubr.msk.bf16.mxu0 %vm3720_vm0, %v3719_v6 }
 0x168   :  { %v343_v22 = vpop.f32.mrf.mxu0 }
 0x169   :  { %v344_v21 = vadd.f32 %v4070_v11, %v343_v22 }
 0x16a   :  { %v3050_v15 = vpop.f32.mrf.mxu0 }
 0x16b   :  { %v472_v20 = vmul.f32 0.2, %v344_v21  ;;  %vm446_vm1 = vcmp.ge.f32.partialorder %v344_v21, 0.0 }
 0x16c   :  { %v346_v19 = vpop.f32.mrf.mxu0 }
 0x16d   :  { %v347_v23 = vadd.f32 %v4070_v11, %v346_v19  ;;  %v498_v26 = vsel %vm446_vm1, %v344_v21, %v472_v20 }
 0x16e   :  { %v3051_v1 = vpop.f32.mrf.mxu0 }
 0x16f   :  { %vm447_vm2 = vcmp.ge.f32.partialorder %v347_v23, 0.0  ;;  %v473_v24 = vmul.f32 0.2, %v347_v23 }
 0x170   :  { %v351_v25 = vpop.f32.mrf.mxu0 }
 0x171   :  { %v352_v27 = vadd.f32 %v4070_v11, %v351_v25  ;;  %v499_v28 = vsel %vm447_vm2, %v347_v23, %v473_v24 }
 0x172   :  { %v3054_v29 = vpop.f32.mrf.mxu0  ;;  %v524_v30 = vpack.c.bf16 %v499_v28, %v498_v26 }
 0x173   :  { %v474_v34 = vmul.f32 0.2, %v352_v27  ;;  %vm448_vm3 = vcmp.ge.f32.partialorder %v352_v27, 0.0 }
 0x174   :  { %v354_v33 = vpop.f32.mrf.mxu0  ;;  %3117 = vmatmul.mubr.bf16.vlgmr.msra.gmra.mxu1 %v524_v30 }
 0x175   :  { %v355_v10 = vadd.f32 %v4070_v11, %v354_v33  ;;  %3120 = vmatprep.mubr.msk.bf16.mxu1 %vm3720_vm0, %v3719_v6  ;;  %v500_v31 = vsel %vm448_vm3, %v352_v27, %v474_v34 }
 0x176   :  { %v3055_v9 = vpop.f32.mrf.mxu0 }
 0x177   :  { %vm449_vm4 = vcmp.ge.f32.partialorder %v355_v10, 0.0  ;;  %v475_v35 = vmul.f32 0.2, %v355_v10 }
 0x178   :  { %v359_v38 = vpop.f32.mrf.mxu0 }
 0x179   :  { %v360_v32 = vadd.f32 %v4070_v11, %v359_v38  ;;  %v501_v39 = vsel %vm449_vm4, %v355_v10, %v475_v35 }
 0x17a   :  { %v3058_v40 = vpop.f32.mrf.mxu0  ;;  %v525_v43 = vpack.c.bf16 %v501_v39, %v500_v31 }
 0x17b   :  { %v476_v45 = vmul.f32 0.2, %v360_v32  ;;  %vm450_vm5 = vcmp.ge.f32.partialorder %v360_v32, 0.0 }
 0x17c   :  { %v362_v44 = vpop.f32.mrf.mxu0  ;;  %3121 = vmatmul.mubr.bf16.gmra.mxu1 %v525_v43 }
 0x17d   :  { %v363_v48 = vadd.f32 %v4070_v11, %v362_v44  ;;  %3124 = vmatprep.mubr.msk.bf16.mxu1 %vm3720_vm0, %v3719_v6  ;;  %v502_v37 = vsel %vm450_vm5, %v360_v32, %v476_v45 }
 0x17e   :  { %v3059_v49 = vpop.f32.mrf.mxu0 }
 0x17f   :  { %vm451_vm6 = vcmp.ge.f32.partialorder %v363_v48, 0.0  ;;  %v477_v14 = vmul.f32 0.2, %v363_v48 }
 0x180   :  { %v367_v13 = vpop.f32.mrf.mxu0 }
 0x181   :  { %v368_v36 = vadd.f32 %v4070_v11, %v367_v13  ;;  %v503_v50 = vsel %vm451_vm6, %v363_v48, %v477_v14 }
 0x182   :  { %v3062_v53 = vpop.f32.mrf.mxu0  ;;  %v526_v54 = vpack.c.bf16 %v503_v50, %v502_v37 }
 0x183   :  { %v478_v58 = vmul.f32 0.2, %v368_v36  ;;  %vm452_vm7 = vcmp.ge.f32.partialorder %v368_v36, 0.0 }
 0x184   :  { %v370_v57 = vpop.f32.mrf.mxu0  ;;  %3125 = vmatmul.mubr.bf16.gmra.mxu1 %v526_v54 }
 0x185   :  { %v371_v59 = vadd.f32 %v4070_v11, %v370_v57  ;;  %3128 = vmatprep.mubr.msk.bf16.mxu1 %vm3720_vm0, %v3719_v6  ;;  %v504_v62 = vsel %vm452_vm7, %v368_v36, %v478_v58 }
 0x186   :  { %v3063_v60 = vpop.f32.mrf.mxu0 }
 0x187   :  { %vm453_vm8 = vcmp.ge.f32.partialorder %v371_v59, 0.0  ;;  %v479_v41 = vmul.f32 0.2, %v371_v59 }
 0x188   :  { %v375_v42 = vpop.f32.mrf.mxu0 }
 0x189   :  { %v376_v61 = vadd.f32 %v4070_v11, %v375_v42  ;;  %v505_v17 = vsel %vm453_vm8, %v371_v59, %v479_v41 }
 0x18a   :  { %v3066_v16 = vpop.f32.mrf.mxu0  ;;  %v527_v63 = vpack.c.bf16 %v505_v17, %v504_v62 }
 0x18b   :  { %v480_v47 = vmul.f32 0.2, %v376_v61  ;;  %vm454_vm9 = vcmp.ge.f32.partialorder %v376_v61, 0.0 }
 0x18c   :  { %v378_v3 = vpop.f32.mrf.mxu0  ;;  %3129 = vmatmul.mubr.bf16.gmra.mxu1 %v527_v63 }
 0x18d   :  { %v379_v0 = vadd.f32 %v4070_v11, %v378_v3  ;;  %3132 = vmatprep.mubr.msk.bf16.mxu1 %vm3720_vm0, %v3719_v6  ;;  %v506_v51 = vsel %vm454_vm9, %v376_v61, %v480_v47 }
 0x18e   :  { %v3067_v46 = vpop.f32.mrf.mxu0 }
 0x18f   :  { %vm455_vm10 = vcmp.ge.f32.partialorder %v379_v0, 0.0  ;;  %v481_v4 = vmul.f32 0.2, %v379_v0 }
 0x190   :  { %v383_v2 = vpop.f32.mrf.mxu0 }
 0x191   :  { %v384_v7 = vadd.f32 %v4070_v11, %v383_v2  ;;  %v507_v52 = vsel %vm455_vm10, %v379_v0, %v481_v4 }
 0x192   :  { %v3070_v55 = vpop.f32.mrf.mxu0  ;;  %v528_v56 = vpack.c.bf16 %v507_v52, %v506_v51 }
 0x193   :  { %v482_v12 = vmul.f32 0.2, %v384_v7  ;;  %vm456_vm11 = vcmp.ge.f32.partialorder %v384_v7, 0.0 }
 0x194   :  { %v386_v8 = vpop.f32.mrf.mxu0  ;;  %3133 = vmatmul.mubr.bf16.gmra.mxu1 %v528_v56 }
 0x195   :  { %v387_v22 = vadd.f32 %v4070_v11, %v386_v8  ;;  %3136 = vmatprep.mubr.msk.bf16.mxu1 %vm3720_vm0, %v3719_v6  ;;  %v508_v20 = vsel %vm456_vm11, %v384_v7, %v482_v12 }
 0x196   :  { %v3071_v21 = vpop.f32.mrf.mxu0 }
 0x197   :  { %vm457_vm12 = vcmp.ge.f32.partialorder %v387_v22, 0.0  ;;  %v483_v15 = vmul.f32 0.2, %v387_v22 }
 0x198   :  { %v391_v18 = vpop.f32.mrf.mxu0 }
 0x199   :  { %v392_v19 = vadd.f32 %v4070_v11, %v391_v18  ;;  %v509_v23 = vsel %vm457_vm12, %v387_v22, %v483_v15 }
 0x19a   :  { %v3074_v1 = vpop.f32.mrf.mxu0  ;;  %v529_v5 = vpack.c.bf16 %v509_v23, %v508_v20 }
 0x19b   :  { %v484_v25 = vmul.f32 0.2, %v392_v19  ;;  %vm458_vm13 = vcmp.ge.f32.partialorder %v392_v19, 0.0 }
 0x19c   :  { %v394_v24 = vpop.f32.mrf.mxu0  ;;  %3137 = vmatmul.mubr.bf16.gmra.mxu1 %v529_v5 }
 0x19d   :  { %v395_v27 = vadd.f32 %v4070_v11, %v394_v24  ;;  %3140 = vmatprep.mubr.msk.bf16.mxu1 %vm3720_vm0, %v3719_v6  ;;  %v510_v33 = vsel %vm458_vm13, %v392_v19, %v484_v25 }
 0x19e   :  { %v3075_v26 = vpop.f32.mrf.mxu0 }
 0x19f   :  { %vm459_vm14 = vcmp.ge.f32.partialorder %v395_v27, 0.0  ;;  %v485_v28 = vmul.f32 0.2, %v395_v27 }
 0x1a0   :  { %v399_v29 = vpop.f32.mrf.mxu0 }
 0x1a1   :  { %v400_v30 = vadd.f32 %v4070_v11, %v399_v29  ;;  %v511_v34 = vsel %vm459_vm14, %v395_v27, %v485_v28 }
 0x1a2   :  { %v3078_v10 = vpop.f32.mrf.mxu0  ;;  %v530_v9 = vpack.c.bf16 %v511_v34, %v510_v33 }
 0x1a3   :  { %v486_v38 = vmul.f32 0.2, %v400_v30  ;;  %vm460_vm15 = vcmp.ge.f32.partialorder %v400_v30, 0.0 }
 0x1a4   :  { %v402_v35 = vpop.f32.mrf.mxu0  ;;  %3141 = vmatmul.mubr.bf16.gmra.mxu1 %v530_v9 }
 0x1a5   :  { %v403_v32 = vadd.f32 %v4070_v11, %v402_v35  ;;  %3144 = vmatprep.mubr.msk.bf16.mxu1 %vm3720_vm0, %v3719_v6  ;;  %v512_v44 = vsel %vm460_vm15, %v400_v30, %v486_v38  ;;  %v3605_v38 = vld [vmem:[%s4668_s1 + $0xf8] sm:$0xff]  }
 0x1a6   :  { %v3079_v31 = vpop.f32.mrf.mxu0  ;;  %3237 = vmatpush3.bf16.msra.mxu1 %v3605_v38 }
 0x1a7   :  { %vm461_vm1 = vcmp.ge.f32.partialorder %v403_v32, 0.0  ;;  %v487_v39 = vmul.f32 0.2, %v403_v32  ;;  %3238 = vmatprep.subr.bf16.mxu1 %v3719_v6  ;;  %v3608_v31 = vld [vmem:[%s4668_s1 + $0xe0] sm:$0xff]  }
 0x1a8   :  { %v407_v40 = vpop.f32.mrf.mxu0 }
 0x1a9   :  { %v408_v43 = vadd.f32 %v4070_v11, %v407_v40  ;;  %v513_v45 = vsel %vm461_vm1, %v403_v32, %v487_v39  ;;  %v3607_v32 = vld [vmem:[%s4668_s1 + $0xe8] sm:$0xff]   ;;  %v3609_v39 = vld [vmem:[%s4668_s1 + $0xd8] sm:$0xff]   ;;  %v4159_v40 = vld [vmem:[%s4669_s2 + $0x1] ss:$0 sm:$0xff] }
 0x1aa   :  { %v3082_v48 = vpop.f32.mrf.mxu0  ;;  %v531_v49 = vpack.c.bf16 %v513_v45, %v512_v44 }
 0x1ab   :  { %v488_v13 = vmul.f32 0.2, %v408_v43  ;;  %vm462_vm2 = vcmp.ge.f32.partialorder %v408_v43, 0.0 }
 0x1ac   :  { %v410_v14 = vpop.f32.mrf.mxu0  ;;  %3145 = vmatmul.mubr.bf16.gmra.mxu1 %v531_v49  ;;  %v3611_v49 = vld [vmem:[%s4668_s1 + $0xc8] sm:$0xff]  }
 0x1ad   :  { %v411_v36 = vadd.f32 %v4070_v11, %v410_v14  ;;  %3148 = vmatprep.mubr.msk.bf16.mxu1 %vm3720_vm0, %v3719_v6  ;;  %v514_v57 = vsel %vm462_vm2, %v408_v43, %v488_v13  ;;  %v3610_v43 = vld [vmem:[%s4668_s1 + $0xd0] sm:$0xff]  }
 0x1ae   :  { %v3083_v37 = vpop.f32.mrf.mxu0 }
 0x1af   :  { %vm463_vm3 = vcmp.ge.f32.partialorder %v411_v36, 0.0  ;;  %v489_v50 = vmul.f32 0.2, %v411_v36 }
 0x1b0   :  { %v415_v53 = vpop.f32.mrf.mxu0 }
 0x1b1   :  { %v416_v54 = vadd.f32 %v4070_v11, %v415_v53  ;;  %v515_v58 = vsel %vm463_vm3, %v411_v36, %v489_v50  ;;  %v3612_v50 = vld [vmem:[%s4668_s1 + $0xc0] sm:$0xff]  }
 0x1b2   :  { %v3086_v59 = vpop.f32.mrf.mxu0  ;;  %v532_v60 = vpack.c.bf16 %v515_v58, %v514_v57 }
 0x1b3   :  { %v490_v42 = vmul.f32 0.2, %v416_v54  ;;  %vm464_vm4 = vcmp.ge.f32.partialorder %v416_v54, 0.0 }
 0x1b4   :  { %v418_v41 = vpop.f32.mrf.mxu0  ;;  %3149 = vmatmul.mubr.bf16.gmra.mxu1 %v532_v60 }
 0x1b5   :  { %v419_v61 = vadd.f32 %v4070_v11, %v418_v41  ;;  %3152 = vmatprep.mubr.msk.bf16.mxu1 %vm3720_vm0, %v3719_v6  ;;  %v516_v3 = vsel %vm464_vm4, %v416_v54, %v490_v42 }
 0x1b6   :  { %v3087_v62 = vpop.f32.mrf.mxu0 }
 0x1b7   :  { %vm465_vm5 = vcmp.ge.f32.partialorder %v419_v61, 0.0  ;;  %v491_v17 = vmul.f32 0.2, %v419_v61 }
 0x1b8   :  { %v423_v16 = vpop.f32.mrf.mxu0 }
 0x1b9   :  { %v424_v63 = vadd.f32 %v4070_v11, %v423_v16  ;;  %v517_v47 = vsel %vm465_vm5, %v419_v61, %v491_v17 }
 0x1ba   :  { %v3090_v0 = vpop.f32.mrf.mxu0  ;;  %v533_v46 = vpack.c.bf16 %v517_v47, %v516_v3 }
 0x1bb   :  { %v492_v2 = vmul.f32 0.2, %v424_v63  ;;  %vm466_vm6 = vcmp.ge.f32.partialorder %v424_v63, 0.0 }
 0x1bc   :  { %v426_v4 = vpop.f32.mrf.mxu0  ;;  %3153 = vmatmul.mubr.bf16.gmra.mxu1 %v533_v46 }
 0x1bd   :  { %v427_v7 = vadd.f32 %v4070_v11, %v426_v4  ;;  %3156 = vmatprep.mubr.msk.bf16.mxu1 %vm3720_vm0, %v3719_v6  ;;  %v518_v8 = vsel %vm466_vm6, %v424_v63, %v492_v2 }
 0x1be   :  { %v3091_v51 = vpop.f32.mrf.mxu0 }
 0x1bf   :  { %vm467_vm7 = vcmp.ge.f32.partialorder %v427_v7, 0.0  ;;  %v493_v52 = vmul.f32 0.2, %v427_v7 }
 0x1c0   :  { %v431_v55 = vpop.f32.mrf.mxu0 }
 0x1c1   :  { %v432_v56 = vadd.f32 %v4070_v11, %v431_v55  ;;  %v519_v12 = vsel %vm467_vm7, %v427_v7, %v493_v52 }
 0x1c2   :  { %v3094_v22 = vpop.f32.mrf.mxu0  ;;  %v534_v21 = vpack.c.bf16 %v519_v12, %v518_v8 }
 0x1c3   :  { %v494_v18 = vmul.f32 0.2, %v432_v56  ;;  %vm468_vm8 = vcmp.ge.f32.partialorder %v432_v56, 0.0 }
 0x1c4   :  { %v434_v15 = vpop.f32.mrf.mxu0  ;;  %3157 = vmatmul.mubr.bf16.gmra.mxu1 %v534_v21 }
 0x1c5   :  { %v435_v19 = vadd.f32 %v4070_v11, %v434_v15  ;;  %3160 = vmatprep.mubr.msk.bf16.mxu1 %vm3720_vm0, %v3719_v6  ;;  %v520_v24 = vsel %vm468_vm8, %v432_v56, %v494_v18 }
 0x1c6   :  { %v3095_v20 = vpop.f32.mrf.mxu0 }
 0x1c7   :  { %vm469_vm9 = vcmp.ge.f32.partialorder %v435_v19, 0.0  ;;  %v495_v23 = vmul.f32 0.2, %v435_v19 }
 0x1c8   :  { %v439_v1 = vpop.f32.mrf.mxu0 }
 0x1c9   :  { %v440_v5 = vadd.f32 %v4070_v11, %v439_v1  ;;  %v521_v25 = vsel %vm469_vm9, %v435_v19, %v495_v23 }
 0x1ca   :  { %v3098_v27 = vpop.f32.mrf.mxu0  ;;  %v535_v26 = vpack.c.bf16 %v521_v25, %v520_v24 }
 0x1cb   :  { %v496_v29 = vmul.f32 0.2, %v440_v5  ;;  %vm470_vm10 = vcmp.ge.f32.partialorder %v440_v5, 0.0 }
 0x1cc   :  { %v442_v28 = vpop.f32.mrf.mxu0  ;;  %3161 = vmatmul.mubr.bf16.gmra.mxu1 %v535_v26 }
 0x1cd   :  { %v443_v30 = vadd.f32 %v4070_v11, %v442_v28  ;;  %3164 = vmatprep.mubr.msk.bf16.mxu1 %vm3720_vm0, %v3719_v6  ;;  %v522_v10 = vsel %vm470_vm10, %v440_v5, %v496_v29  ;;  %v3606_v11 = vld [vmem:[%s4668_s1 + $0xf0] sm:$0xff]  }
 0x1ce   :  { %v3099_v33 = vpop.f32.mrf.mxu0  ;;  %3239 = vmatpush3.bf16.msra.mxu1 %v3606_v11 }
 0x1cf   :  { %vm471_vm11 = vcmp.ge.f32.partialorder %v443_v30, 0.0  ;;  %v497_v34 = vmul.f32 0.2, %v443_v30  ;;  %3240 = vmatprep.subr.bf16.mxu1 %v3719_v6 }
 0x1d1   :  { %v523_v9 = vsel %vm471_vm11, %v443_v30, %v497_v34 }
 0x1d2   :  { %v536_v35 = vpack.c.bf16 %v523_v9, %v522_v10  ;;  %3241 = vmatpush3.bf16.msra.mxu1 %v3607_v32 }
 0x1d3   :  { %3242 = vmatprep.subr.bf16.mxu1 %v3719_v6 }
 0x1d4   :  { %3165 = vmatmul.mubr.bf16.gmra.mxu1 %v536_v35 }
 0x1d5   :  { %3252 = vmatprep.mubr.msk.bf16.mxu1 %vm3720_vm0, %v3719_v6 }
 0x1d6   :  { %3243 = vmatpush3.bf16.msra.mxu1 %v3608_v31 }
 0x1d7   :  { %3244 = vmatprep.subr.bf16.mxu1 %v3719_v6 }
 0x1da   :  { %3245 = vmatpush3.bf16.msra.mxu1 %v3609_v39 }
 0x1db   :  { %3246 = vmatprep.subr.bf16.mxu1 %v3719_v6 }
 0x1de   :  { %3247 = vmatpush3.bf16.msra.mxu1 %v3610_v43 }
 0x1df   :  { %3248 = vmatprep.subr.bf16.mxu1 %v3719_v6 }
 0x1e2   :  { %3249 = vmatpush3.bf16.msra.mxu1 %v3611_v49 }
 0x1e3   :  { %3250 = vmatprep.subr.bf16.mxu1 %v3719_v6 }
 0x1e6   :  { %3251 = vmatpush3.bf16.msra.mxu1 %v3612_v50 }
 0x1e7   :  { %3372 = vmatprep.subr.bf16.mxu1 %v3719_v6 }
 0x234   :  { %v644_v44 = vpop.f32.mrf.mxu1 }
 0x235   :  { %v645_v45 = vadd.f32 %v4159_v40, %v644_v44 }
 0x236   :  { %v3118_v48 = vpop.f32.mrf.mxu1 }
 0x237   :  { %v773_v13 = vmul.f32 0.2, %v645_v45  ;;  %vm747_vm12 = vcmp.ge.f32.partialorder %v645_v45, 0.0 }
 0x238   :  { %v647_v14 = vpop.f32.mrf.mxu1 }
 0x239   :  { %v648_v36 = vadd.f32 %v4159_v40, %v647_v14  ;;  %v799_v57 = vsel %vm747_vm12, %v645_v45, %v773_v13 }
 0x23a   :  { %v3119_v37 = vpop.f32.mrf.mxu1 }
 0x23b   :  { %vm748_vm13 = vcmp.ge.f32.partialorder %v648_v36, 0.0  ;;  %v774_v53 = vmul.f32 0.2, %v648_v36 }
 0x23c   :  { %v652_v54 = vpop.f32.mrf.mxu1 }
 0x23d   :  { %v800_v58 = vsel %vm748_vm13, %v648_v36, %v774_v53  ;;  %v653_v59 = vadd.f32 %v4159_v40, %v652_v54 }
 0x23e   :  { %v825_v60 = vpack.c.bf16 %v800_v58, %v799_v57  ;;  %v3122_v41 = vpop.f32.mrf.mxu1 }
 0x23f   :  { %v775_v61 = vmul.f32 0.2, %v653_v59  ;;  %vm749_vm14 = vcmp.ge.f32.partialorder %v653_v59, 0.0 }
 0x240   :  { %v655_v42 = vpop.f32.mrf.mxu1  ;;  %3185 = vmatmul.mubr.bf16.vlgmr.msra.gmra.mxu0 %v825_v60 }
 0x241   :  { %v656_v62 = vadd.f32 %v4159_v40, %v655_v42  ;;  %3188 = vmatprep.mubr.msk.bf16.mxu0 %vm3720_vm0, %v3719_v6  ;;  %v801_v47 = vsel %vm749_vm14, %v653_v59, %v775_v61 }
 0x242   :  { %v3123_v17 = vpop.f32.mrf.mxu1 }
 0x243   :  { %vm750_vm15 = vcmp.ge.f32.partialorder %v656_v62, 0.0  ;;  %v776_v16 = vmul.f32 0.2, %v656_v62 }
 0x244   :  { %v660_v63 = vpop.f32.mrf.mxu1 }
 0x245   :  { %v661_v3 = vadd.f32 %v4159_v40, %v660_v63  ;;  %v802_v0 = vsel %vm750_vm15, %v656_v62, %v776_v16 }
 0x246   :  { %v3126_v46 = vpop.f32.mrf.mxu1  ;;  %v826_v4 = vpack.c.bf16 %v802_v0, %v801_v47 }
 0x247   :  { %v777_v7 = vmul.f32 0.2, %v661_v3  ;;  %vm751_vm1 = vcmp.ge.f32.partialorder %v661_v3, 0.0 }
 0x248   :  { %v663_v2 = vpop.f32.mrf.mxu1  ;;  %3189 = vmatmul.mubr.bf16.gmra.mxu0 %v826_v4 }
 0x249   :  { %v664_v51 = vadd.f32 %v4159_v40, %v663_v2  ;;  %3192 = vmatprep.mubr.msk.bf16.mxu0 %vm3720_vm0, %v3719_v6  ;;  %v803_v12 = vsel %vm751_vm1, %v661_v3, %v777_v7 }
 0x24a   :  { %v3127_v52 = vpop.f32.mrf.mxu1 }
 0x24b   :  { %vm752_vm2 = vcmp.ge.f32.partialorder %v664_v51, 0.0  ;;  %v778_v55 = vmul.f32 0.2, %v664_v51 }
 0x24c   :  { %v668_v56 = vpop.f32.mrf.mxu1 }
 0x24d   :  { %v669_v8 = vadd.f32 %v4159_v40, %v668_v56  ;;  %v804_v22 = vsel %vm752_vm2, %v664_v51, %v778_v55 }
 0x24e   :  { %v3130_v21 = vpop.f32.mrf.mxu1  ;;  %v827_v15 = vpack.c.bf16 %v804_v22, %v803_v12 }
 0x24f   :  { %v779_v19 = vmul.f32 0.2, %v669_v8  ;;  %vm753_vm3 = vcmp.ge.f32.partialorder %v669_v8, 0.0 }
 0x250   :  { %v671_v18 = vpop.f32.mrf.mxu1  ;;  %3193 = vmatmul.mubr.bf16.gmra.mxu0 %v827_v15 }
 0x251   :  { %v672_v20 = vadd.f32 %v4159_v40, %v671_v18  ;;  %3196 = vmatprep.mubr.msk.bf16.mxu0 %vm3720_vm0, %v3719_v6  ;;  %v805_v25 = vsel %vm753_vm3, %v669_v8, %v779_v19 }
 0x252   :  { %v3131_v23 = vpop.f32.mrf.mxu1 }
 0x253   :  { %vm754_vm4 = vcmp.ge.f32.partialorder %v672_v20, 0.0  ;;  %v780_v1 = vmul.f32 0.2, %v672_v20 }
 0x254   :  { %v676_v5 = vpop.f32.mrf.mxu1 }
 0x255   :  { %v677_v24 = vadd.f32 %v4159_v40, %v676_v5  ;;  %v806_v27 = vsel %vm754_vm4, %v672_v20, %v780_v1 }
 0x256   :  { %v3134_v26 = vpop.f32.mrf.mxu1  ;;  %v828_v28 = vpack.c.bf16 %v806_v27, %v805_v25 }
 0x257   :  { %v781_v30 = vmul.f32 0.2, %v677_v24  ;;  %vm755_vm5 = vcmp.ge.f32.partialorder %v677_v24, 0.0 }
 0x258   :  { %v679_v29 = vpop.f32.mrf.mxu1  ;;  %3197 = vmatmul.mubr.bf16.gmra.mxu0 %v828_v28 }
 0x259   :  { %v680_v33 = vadd.f32 %v4159_v40, %v679_v29  ;;  %3200 = vmatprep.mubr.msk.bf16.mxu0 %vm3720_vm0, %v3719_v6  ;;  %v807_v38 = vsel %vm755_vm5, %v677_v24, %v781_v30 }
 0x25a   :  { %v3135_v34 = vpop.f32.mrf.mxu1 }
 0x25b   :  { %vm756_vm6 = vcmp.ge.f32.partialorder %v680_v33, 0.0  ;;  %v782_v10 = vmul.f32 0.2, %v680_v33 }
 0x25c   :  { %v684_v9 = vpop.f32.mrf.mxu1 }
 0x25d   :  { %v685_v35 = vadd.f32 %v4159_v40, %v684_v9  ;;  %v808_v11 = vsel %vm756_vm6, %v680_v33, %v782_v10 }
 0x25e   :  { %v3138_v32 = vpop.f32.mrf.mxu1  ;;  %v829_v31 = vpack.c.bf16 %v808_v11, %v807_v38 }
 0x25f   :  { %v783_v43 = vmul.f32 0.2, %v685_v35  ;;  %vm757_vm7 = vcmp.ge.f32.partialorder %v685_v35, 0.0 }
 0x260   :  { %v687_v39 = vpop.f32.mrf.mxu1  ;;  %3201 = vmatmul.mubr.bf16.gmra.mxu0 %v829_v31 }
 0x261   :  { %v688_v44 = vadd.f32 %v4159_v40, %v687_v39  ;;  %3204 = vmatprep.mubr.msk.bf16.mxu0 %vm3720_vm0, %v3719_v6  ;;  %v809_v13 = vsel %vm757_vm7, %v685_v35, %v783_v43 }
 0x262   :  { %v3139_v45 = vpop.f32.mrf.mxu1 }
 0x263   :  { %vm758_vm8 = vcmp.ge.f32.partialorder %v688_v44, 0.0  ;;  %v784_v48 = vmul.f32 0.2, %v688_v44 }
 0x264   :  { %v692_v49 = vpop.f32.mrf.mxu1 }
 0x265   :  { %v693_v14 = vadd.f32 %v4159_v40, %v692_v49  ;;  %v810_v36 = vsel %vm758_vm8, %v688_v44, %v784_v48 }
 0x266   :  { %v3142_v37 = vpop.f32.mrf.mxu1  ;;  %v830_v50 = vpack.c.bf16 %v810_v36, %v809_v13 }
 0x267   :  { %v785_v54 = vmul.f32 0.2, %v693_v14  ;;  %vm759_vm9 = vcmp.ge.f32.partialorder %v693_v14, 0.0 }
 0x268   :  { %v695_v53 = vpop.f32.mrf.mxu1  ;;  %3205 = vmatmul.mubr.bf16.gmra.mxu0 %v830_v50 }
 0x269   :  { %v696_v57 = vadd.f32 %v4159_v40, %v695_v53  ;;  %3208 = vmatprep.mubr.msk.bf16.mxu0 %vm3720_vm0, %v3719_v6  ;;  %v811_v42 = vsel %vm759_vm9, %v693_v14, %v785_v54 }
 0x26a   :  { %v3143_v58 = vpop.f32.mrf.mxu1 }
 0x26b   :  { %vm760_vm10 = vcmp.ge.f32.partialorder %v696_v57, 0.0  ;;  %v786_v59 = vmul.f32 0.2, %v696_v57 }
 0x26c   :  { %v700_v60 = vpop.f32.mrf.mxu1 }
 0x26d   :  { %v701_v41 = vadd.f32 %v4159_v40, %v700_v60  ;;  %v812_v61 = vsel %vm760_vm10, %v696_v57, %v786_v59 }
 0x26e   :  { %v3146_v62 = vpop.f32.mrf.mxu1  ;;  %v831_v17 = vpack.c.bf16 %v812_v61, %v811_v42 }
 0x26f   :  { %v787_v63 = vmul.f32 0.2, %v701_v41  ;;  %vm761_vm11 = vcmp.ge.f32.partialorder %v701_v41, 0.0 }
 0x270   :  { %v703_v16 = vpop.f32.mrf.mxu1  ;;  %3209 = vmatmul.mubr.bf16.gmra.mxu0 %v831_v17 }
 0x271   :  { %v704_v3 = vadd.f32 %v4159_v40, %v703_v16  ;;  %3212 = vmatprep.mubr.msk.bf16.mxu0 %vm3720_vm0, %v3719_v6  ;;  %v813_v2 = vsel %vm761_vm11, %v701_v41, %v787_v63  ;;  %v3613_v63 = vld [vmem:[%s4668_s1 + $0x138] sm:$0xff]  }
 0x272   :  { %v3147_v47 = vpop.f32.mrf.mxu1  ;;  %3305 = vmatpush3.bf16.msra.mxu0 %v3613_v63 }
 0x273   :  { %vm762_vm12 = vcmp.ge.f32.partialorder %v704_v3, 0.0  ;;  %v788_v0 = vmul.f32 0.2, %v704_v3  ;;  %3306 = vmatprep.subr.bf16.mxu0 %v3719_v6  ;;  %v3616_v47 = vld [vmem:[%s4668_s1 + $0x120] sm:$0xff]  }
 0x274   :  { %v708_v46 = vpop.f32.mrf.mxu1 }
 0x275   :  { %v709_v4 = vadd.f32 %v4159_v40, %v708_v46  ;;  %v814_v7 = vsel %vm762_vm12, %v704_v3, %v788_v0  ;;  %v3615_v3 = vld [vmem:[%s4668_s1 + $0x128] sm:$0xff]   ;;  %v3617_v0 = vld [vmem:[%s4668_s1 + $0x118] sm:$0xff]   ;;  %v4248_v46 = vld [vmem:[%s4669_s2 + $0x2] ss:$0 sm:$0xff] }
 0x276   :  { %v3150_v51 = vpop.f32.mrf.mxu1  ;;  %v832_v52 = vpack.c.bf16 %v814_v7, %v813_v2 }
 0x277   :  { %v789_v56 = vmul.f32 0.2, %v709_v4  ;;  %vm763_vm13 = vcmp.ge.f32.partialorder %v709_v4, 0.0 }
 0x278   :  { %v711_v55 = vpop.f32.mrf.mxu1  ;;  %3213 = vmatmul.mubr.bf16.gmra.mxu0 %v832_v52  ;;  %v3619_v52 = vld [vmem:[%s4668_s1 + $0x108] sm:$0xff]  }
 0x279   :  { %v712_v8 = vadd.f32 %v4159_v40, %v711_v55  ;;  %3216 = vmatprep.mubr.msk.bf16.mxu0 %vm3720_vm0, %v3719_v6  ;;  %v815_v18 = vsel %vm763_vm13, %v709_v4, %v789_v56  ;;  %v3618_v4 = vld [vmem:[%s4668_s1 + $0x110] sm:$0xff]  }
 0x27a   :  { %v3151_v12 = vpop.f32.mrf.mxu1 }
 0x27b   :  { %vm764_vm14 = vcmp.ge.f32.partialorder %v712_v8, 0.0  ;;  %v790_v22 = vmul.f32 0.2, %v712_v8 }
 0x27c   :  { %v716_v21 = vpop.f32.mrf.mxu1 }
 0x27d   :  { %v717_v15 = vadd.f32 %v4159_v40, %v716_v21  ;;  %v816_v19 = vsel %vm764_vm14, %v712_v8, %v790_v22  ;;  %v3620_v22 = vld [vmem:[%s4668_s1 + $0x100] sm:$0xff]  }
 0x27e   :  { %v3154_v20 = vpop.f32.mrf.mxu1  ;;  %v833_v23 = vpack.c.bf16 %v816_v19, %v815_v18 }
 0x27f   :  { %v791_v5 = vmul.f32 0.2, %v717_v15  ;;  %vm765_vm15 = vcmp.ge.f32.partialorder %v717_v15, 0.0 }
 0x280   :  { %v719_v1 = vpop.f32.mrf.mxu1  ;;  %3217 = vmatmul.mubr.bf16.gmra.mxu0 %v833_v23 }
 0x281   :  { %v720_v24 = vadd.f32 %v4159_v40, %v719_v1  ;;  %3220 = vmatprep.mubr.msk.bf16.mxu0 %vm3720_vm0, %v3719_v6  ;;  %v817_v29 = vsel %vm765_vm15, %v717_v15, %v791_v5 }
 0x282   :  { %v3155_v25 = vpop.f32.mrf.mxu1 }
 0x283   :  { %vm766_vm1 = vcmp.ge.f32.partialorder %v720_v24, 0.0  ;;  %v792_v27 = vmul.f32 0.2, %v720_v24 }
 0x284   :  { %v724_v26 = vpop.f32.mrf.mxu1 }
 0x285   :  { %v725_v28 = vadd.f32 %v4159_v40, %v724_v26  ;;  %v818_v30 = vsel %vm766_vm1, %v720_v24, %v792_v27 }
 0x286   :  { %v3158_v33 = vpop.f32.mrf.mxu1  ;;  %v834_v34 = vpack.c.bf16 %v818_v30, %v817_v29 }
 0x287   :  { %v793_v9 = vmul.f32 0.2, %v725_v28  ;;  %vm767_vm2 = vcmp.ge.f32.partialorder %v725_v28, 0.0 }
 0x288   :  { %v727_v10 = vpop.f32.mrf.mxu1  ;;  %3221 = vmatmul.mubr.bf16.gmra.mxu0 %v834_v34 }
 0x289   :  { %v728_v35 = vadd.f32 %v4159_v40, %v727_v10  ;;  %3224 = vmatprep.mubr.msk.bf16.mxu0 %vm3720_vm0, %v3719_v6  ;;  %v819_v39 = vsel %vm767_vm2, %v725_v28, %v793_v9 }
 0x28a   :  { %v3159_v38 = vpop.f32.mrf.mxu1 }
 0x28b   :  { %vm768_vm3 = vcmp.ge.f32.partialorder %v728_v35, 0.0  ;;  %v794_v11 = vmul.f32 0.2, %v728_v35 }
 0x28c   :  { %v732_v32 = vpop.f32.mrf.mxu1 }
 0x28d   :  { %v733_v31 = vadd.f32 %v4159_v40, %v732_v32  ;;  %v820_v43 = vsel %vm768_vm3, %v728_v35, %v794_v11 }
 0x28e   :  { %v3162_v44 = vpop.f32.mrf.mxu1  ;;  %v835_v45 = vpack.c.bf16 %v820_v43, %v819_v39 }
 0x28f   :  { %v795_v49 = vmul.f32 0.2, %v733_v31  ;;  %vm769_vm4 = vcmp.ge.f32.partialorder %v733_v31, 0.0 }
 0x290   :  { %v735_v48 = vpop.f32.mrf.mxu1  ;;  %3225 = vmatmul.mubr.bf16.gmra.mxu0 %v835_v45 }
 0x291   :  { %v736_v14 = vadd.f32 %v4159_v40, %v735_v48  ;;  %3228 = vmatprep.mubr.msk.bf16.mxu0 %vm3720_vm0, %v3719_v6  ;;  %v821_v53 = vsel %vm769_vm4, %v733_v31, %v795_v49 }
 0x292   :  { %v3163_v13 = vpop.f32.mrf.mxu1 }
 0x293   :  { %vm770_vm5 = vcmp.ge.f32.partialorder %v736_v14, 0.0  ;;  %v796_v36 = vmul.f32 0.2, %v736_v14 }
 0x294   :  { %v740_v37 = vpop.f32.mrf.mxu1 }
 0x295   :  { %v741_v50 = vadd.f32 %v4159_v40, %v740_v37  ;;  %v822_v54 = vsel %vm770_vm5, %v736_v14, %v796_v36 }
 0x296   :  { %v3166_v57 = vpop.f32.mrf.mxu1  ;;  %v836_v58 = vpack.c.bf16 %v822_v54, %v821_v53 }
 0x297   :  { %v797_v60 = vmul.f32 0.2, %v741_v50  ;;  %vm771_vm6 = vcmp.ge.f32.partialorder %v741_v50, 0.0 }
 0x298   :  { %v743_v59 = vpop.f32.mrf.mxu1  ;;  %3229 = vmatmul.mubr.bf16.gmra.mxu0 %v836_v58 }
 0x299   :  { %v744_v41 = vadd.f32 %v4159_v40, %v743_v59  ;;  %3232 = vmatprep.mubr.msk.bf16.mxu0 %vm3720_vm0, %v3719_v6  ;;  %v823_v62 = vsel %vm771_vm6, %v741_v50, %v797_v60  ;;  %v3614_v40 = vld [vmem:[%s4668_s1 + $0x130] sm:$0xff]  }
 0x29a   :  { %v3167_v42 = vpop.f32.mrf.mxu1  ;;  %3307 = vmatpush3.bf16.msra.mxu0 %v3614_v40 }
 0x29b   :  { %vm772_vm7 = vcmp.ge.f32.partialorder %v744_v41, 0.0  ;;  %v798_v61 = vmul.f32 0.2, %v744_v41  ;;  %3308 = vmatprep.subr.bf16.mxu0 %v3719_v6 }
 0x29d   :  { %v824_v17 = vsel %vm772_vm7, %v744_v41, %v798_v61 }
 0x29e   :  { %v837_v16 = vpack.c.bf16 %v824_v17, %v823_v62  ;;  %3309 = vmatpush3.bf16.msra.mxu0 %v3615_v3 }
 0x29f   :  { %3310 = vmatprep.subr.bf16.mxu0 %v3719_v6 }
 0x2a0   :  { %3233 = vmatmul.mubr.bf16.gmra.mxu0 %v837_v16 }
 0x2a1   :  { %3320 = vmatprep.mubr.msk.bf16.mxu0 %vm3720_vm0, %v3719_v6 }
 0x2a2   :  { %3311 = vmatpush3.bf16.msra.mxu0 %v3616_v47 }
 0x2a3   :  { %3312 = vmatprep.subr.bf16.mxu0 %v3719_v6 }
 0x2a6   :  { %3313 = vmatpush3.bf16.msra.mxu0 %v3617_v0 }
 0x2a7   :  { %3314 = vmatprep.subr.bf16.mxu0 %v3719_v6 }
 0x2aa   :  { %3315 = vmatpush3.bf16.msra.mxu0 %v3618_v4 }
 0x2ab   :  { %3316 = vmatprep.subr.bf16.mxu0 %v3719_v6 }
 0x2ae   :  { %3317 = vmatpush3.bf16.msra.mxu0 %v3619_v52 }
 0x2af   :  { %3318 = vmatprep.subr.bf16.mxu0 %v3719_v6 }
 0x2b2   :  { %3319 = vmatpush3.bf16.msra.mxu0 %v3620_v22 }
 0x2b3   :  { %3440 = vmatprep.subr.bf16.mxu0 %v3719_v6 }
 0x300   :  { %v945_v2 = vpop.f32.mrf.mxu0 }
 0x301   :  { %v946_v7 = vadd.f32 %v4248_v46, %v945_v2 }
 0x302   :  { %v3186_v51 = vpop.f32.mrf.mxu0 }
 0x303   :  { %v1074_v56 = vmul.f32 0.2, %v946_v7  ;;  %vm1048_vm8 = vcmp.ge.f32.partialorder %v946_v7, 0.0 }
 0x304   :  { %v948_v55 = vpop.f32.mrf.mxu0 }
 0x305   :  { %v949_v8 = vadd.f32 %v4248_v46, %v948_v55  ;;  %v1100_v18 = vsel %vm1048_vm8, %v946_v7, %v1074_v56 }
 0x306   :  { %v3187_v12 = vpop.f32.mrf.mxu0 }
 0x307   :  { %vm1049_vm9 = vcmp.ge.f32.partialorder %v949_v8, 0.0  ;;  %v1075_v21 = vmul.f32 0.2, %v949_v8 }
 0x308   :  { %v953_v15 = vpop.f32.mrf.mxu0 }
 0x309   :  { %v1101_v19 = vsel %vm1049_vm9, %v949_v8, %v1075_v21  ;;  %v954_v20 = vadd.f32 %v4248_v46, %v953_v15 }
 0x30a   :  { %v1126_v23 = vpack.c.bf16 %v1101_v19, %v1100_v18  ;;  %v3190_v1 = vpop.f32.mrf.mxu0 }
 0x30b   :  { %v1076_v24 = vmul.f32 0.2, %v954_v20  ;;  %vm1050_vm10 = vcmp.ge.f32.partialorder %v954_v20, 0.0 }
 0x30c   :  { %v956_v5 = vpop.f32.mrf.mxu0  ;;  %3253 = vmatmul.mubr.bf16.vlgmr.msra.gmra.mxu1 %v1126_v23 }
 0x30d   :  { %v957_v25 = vadd.f32 %v4248_v46, %v956_v5  ;;  %3256 = vmatprep.mubr.msk.bf16.mxu1 %vm3720_vm0, %v3719_v6  ;;  %v1102_v30 = vsel %vm1050_vm10, %v954_v20, %v1076_v24 }
 0x30e   :  { %v3191_v27 = vpop.f32.mrf.mxu0 }
 0x30f   :  { %vm1051_vm11 = vcmp.ge.f32.partialorder %v957_v25, 0.0  ;;  %v1077_v26 = vmul.f32 0.2, %v957_v25 }
 0x310   :  { %v961_v28 = vpop.f32.mrf.mxu0 }
 0x311   :  { %v962_v29 = vadd.f32 %v4248_v46, %v961_v28  ;;  %v1103_v33 = vsel %vm1051_vm11, %v957_v25, %v1077_v26 }
 0x312   :  { %v3194_v34 = vpop.f32.mrf.mxu0  ;;  %v1127_v10 = vpack.c.bf16 %v1103_v33, %v1102_v30 }
 0x313   :  { %v1078_v35 = vmul.f32 0.2, %v962_v29  ;;  %vm1052_vm12 = vcmp.ge.f32.partialorder %v962_v29, 0.0 }
 0x314   :  { %v964_v9 = vpop.f32.mrf.mxu0  ;;  %3257 = vmatmul.mubr.bf16.gmra.mxu1 %v1127_v10 }
 0x315   :  { %v965_v38 = vadd.f32 %v4248_v46, %v964_v9  ;;  %3260 = vmatprep.mubr.msk.bf16.mxu1 %vm3720_vm0, %v3719_v6  ;;  %v1104_v43 = vsel %vm1052_vm12, %v962_v29, %v1078_v35 }
 0x316   :  { %v3195_v11 = vpop.f32.mrf.mxu0 }
 0x317   :  { %vm1053_vm13 = vcmp.ge.f32.partialorder %v965_v38, 0.0  ;;  %v1079_v32 = vmul.f32 0.2, %v965_v38 }
 0x318   :  { %v969_v31 = vpop.f32.mrf.mxu0 }
 0x319   :  { %v970_v39 = vadd.f32 %v4248_v46, %v969_v31  ;;  %v1105_v44 = vsel %vm1053_vm13, %v965_v38, %v1079_v32 }
 0x31a   :  { %v3198_v45 = vpop.f32.mrf.mxu0  ;;  %v1128_v48 = vpack.c.bf16 %v1105_v44, %v1104_v43 }
 0x31b   :  { %v1080_v14 = vmul.f32 0.2, %v970_v39  ;;  %vm1054_vm14 = vcmp.ge.f32.partialorder %v970_v39, 0.0 }
 0x31c   :  { %v972_v49 = vpop.f32.mrf.mxu0  ;;  %3261 = vmatmul.mubr.bf16.gmra.mxu1 %v1128_v48 }
 0x31d   :  { %v973_v13 = vadd.f32 %v4248_v46, %v972_v49  ;;  %3264 = vmatprep.mubr.msk.bf16.mxu1 %vm3720_vm0, %v3719_v6  ;;  %v1106_v54 = vsel %vm1054_vm14, %v970_v39, %v1080_v14 }
 0x31e   :  { %v3199_v36 = vpop.f32.mrf.mxu0 }
 0x31f   :  { %vm1055_vm15 = vcmp.ge.f32.partialorder %v973_v13, 0.0  ;;  %v1081_v37 = vmul.f32 0.2, %v973_v13 }
 0x320   :  { %v977_v50 = vpop.f32.mrf.mxu0 }
 0x321   :  { %v978_v53 = vadd.f32 %v4248_v46, %v977_v50  ;;  %v1107_v57 = vsel %vm1055_vm15, %v973_v13, %v1081_v37 }
 0x322   :  { %v3202_v58 = vpop.f32.mrf.mxu0  ;;  %v1129_v59 = vpack.c.bf16 %v1107_v57, %v1106_v54 }
 0x323   :  { %v1082_v41 = vmul.f32 0.2, %v978_v53  ;;  %vm1056_vm1 = vcmp.ge.f32.partialorder %v978_v53, 0.0 }
 0x324   :  { %v980_v60 = vpop.f32.mrf.mxu0  ;;  %3265 = vmatmul.mubr.bf16.gmra.mxu1 %v1129_v59 }
 0x325   :  { %v981_v42 = vadd.f32 %v4248_v46, %v980_v60  ;;  %3268 = vmatprep.mubr.msk.bf16.mxu1 %vm3720_vm0, %v3719_v6  ;;  %v1108_v63 = vsel %vm1056_vm1, %v978_v53, %v1082_v41 }
 0x326   :  { %v3203_v61 = vpop.f32.mrf.mxu0 }
 0x327   :  { %vm1057_vm2 = vcmp.ge.f32.partialorder %v981_v42, 0.0  ;;  %v1083_v62 = vmul.f32 0.2, %v981_v42 }
 0x328   :  { %v985_v17 = vpop.f32.mrf.mxu0 }
 0x329   :  { %v986_v16 = vadd.f32 %v4248_v46, %v985_v17  ;;  %v1109_v40 = vsel %vm1057_vm2, %v981_v42, %v1083_v62 }
 0x32a   :  { %v3206_v3 = vpop.f32.mrf.mxu0  ;;  %v1130_v47 = vpack.c.bf16 %v1109_v40, %v1108_v63 }
 0x32b   :  { %v1084_v4 = vmul.f32 0.2, %v986_v16  ;;  %vm1058_vm3 = vcmp.ge.f32.partialorder %v986_v16, 0.0 }
 0x32c   :  { %v988_v0 = vpop.f32.mrf.mxu0  ;;  %3269 = vmatmul.mubr.bf16.gmra.mxu1 %v1130_v47 }
 0x32d   :  { %v989_v2 = vadd.f32 %v4248_v46, %v988_v0  ;;  %3272 = vmatprep.mubr.msk.bf16.mxu1 %vm3720_vm0, %v3719_v6  ;;  %v1110_v56 = vsel %vm1058_vm3, %v986_v16, %v1084_v4 }
 0x32e   :  { %v3207_v7 = vpop.f32.mrf.mxu0 }
 0x32f   :  { %vm1059_vm4 = vcmp.ge.f32.partialorder %v989_v2, 0.0  ;;  %v1085_v51 = vmul.f32 0.2, %v989_v2 }
 0x330   :  { %v993_v52 = vpop.f32.mrf.mxu0 }
 0x331   :  { %v994_v55 = vadd.f32 %v4248_v46, %v993_v52  ;;  %v1111_v8 = vsel %vm1059_vm4, %v989_v2, %v1085_v51 }
 0x332   :  { %v3210_v12 = vpop.f32.mrf.mxu0  ;;  %v1131_v22 = vpack.c.bf16 %v1111_v8, %v1110_v56 }
 0x333   :  { %v1086_v15 = vmul.f32 0.2, %v994_v55  ;;  %vm1060_vm5 = vcmp.ge.f32.partialorder %v994_v55, 0.0 }
 0x334   :  { %v996_v21 = vpop.f32.mrf.mxu0  ;;  %3273 = vmatmul.mubr.bf16.gmra.mxu1 %v1131_v22 }
 0x335   :  { %v997_v18 = vadd.f32 %v4248_v46, %v996_v21  ;;  %3276 = vmatprep.mubr.msk.bf16.mxu1 %vm3720_vm0, %v3719_v6  ;;  %v1112_v5 = vsel %vm1060_vm5, %v994_v55, %v1086_v15 }
 0x336   :  { %v3211_v19 = vpop.f32.mrf.mxu0 }
 0x337   :  { %vm1061_vm6 = vcmp.ge.f32.partialorder %v997_v18, 0.0  ;;  %v1087_v20 = vmul.f32 0.2, %v997_v18 }
 0x338   :  { %v1001_v23 = vpop.f32.mrf.mxu0 }
 0x339   :  { %v1002_v1 = vadd.f32 %v4248_v46, %v1001_v23  ;;  %v1113_v24 = vsel %vm1061_vm6, %v997_v18, %v1087_v20 }
 0x33a   :  { %v3214_v25 = vpop.f32.mrf.mxu0  ;;  %v1132_v27 = vpack.c.bf16 %v1113_v24, %v1112_v5 }
 0x33b   :  { %v1088_v28 = vmul.f32 0.2, %v1002_v1  ;;  %vm1062_vm7 = vcmp.ge.f32.partialorder %v1002_v1, 0.0 }
 0x33c   :  { %v1004_v26 = vpop.f32.mrf.mxu0  ;;  %3277 = vmatmul.mubr.bf16.gmra.mxu1 %v1132_v27 }
 0x33d   :  { %v1005_v29 = vadd.f32 %v4248_v46, %v1004_v26  ;;  %3280 = vmatprep.mubr.msk.bf16.mxu1 %vm3720_vm0, %v3719_v6  ;;  %v1114_v9 = vsel %vm1062_vm7, %v1002_v1, %v1088_v28  ;;  %v3621_v28 = vld [vmem:[%s4668_s1 + $0x178] sm:$0xff]  }
 0x33e   :  { %v3215_v30 = vpop.f32.mrf.mxu0  ;;  %3373 = vmatpush3.bf16.msra.mxu1 %v3621_v28 }
 0x33f   :  { %vm1063_vm8 = vcmp.ge.f32.partialorder %v1005_v29, 0.0  ;;  %v1089_v33 = vmul.f32 0.2, %v1005_v29  ;;  %3374 = vmatprep.subr.bf16.mxu1 %v3719_v6  ;;  %v3624_v30 = vld [vmem:[%s4668_s1 + $0x160] sm:$0xff]  }
 0x340   :  { %v1009_v34 = vpop.f32.mrf.mxu0 }
 0x341   :  { %v1010_v10 = vadd.f32 %v4248_v46, %v1009_v34  ;;  %v1115_v35 = vsel %vm1063_vm8, %v1005_v29, %v1089_v33  ;;  %v3623_v29 = vld [vmem:[%s4668_s1 + $0x168] sm:$0xff]   ;;  %v3625_v33 = vld [vmem:[%s4668_s1 + $0x158] sm:$0xff]   ;;  %v4337_v34 = vld [vmem:[%s4669_s2 + $0x3] ss:$0 sm:$0xff] }
 0x342   :  { %v3218_v38 = vpop.f32.mrf.mxu0  ;;  %v1133_v11 = vpack.c.bf16 %v1115_v35, %v1114_v9 }
 0x343   :  { %v1090_v31 = vmul.f32 0.2, %v1010_v10  ;;  %vm1064_vm9 = vcmp.ge.f32.partialorder %v1010_v10, 0.0 }
 0x344   :  { %v1012_v32 = vpop.f32.mrf.mxu0  ;;  %3281 = vmatmul.mubr.bf16.gmra.mxu1 %v1133_v11  ;;  %v3627_v11 = vld [vmem:[%s4668_s1 + $0x148] sm:$0xff]  }
 0x345   :  { %v1013_v39 = vadd.f32 %v4248_v46, %v1012_v32  ;;  %3284 = vmatprep.mubr.msk.bf16.mxu1 %vm3720_vm0, %v3719_v6  ;;  %v1116_v49 = vsel %vm1064_vm9, %v1010_v10, %v1090_v31  ;;  %v3626_v10 = vld [vmem:[%s4668_s1 + $0x150] sm:$0xff]  }
 0x346   :  { %v3219_v43 = vpop.f32.mrf.mxu0 }
 0x347   :  { %vm1065_vm10 = vcmp.ge.f32.partialorder %v1013_v39, 0.0  ;;  %v1091_v44 = vmul.f32 0.2, %v1013_v39 }
 0x348   :  { %v1017_v45 = vpop.f32.mrf.mxu0 }
 0x349   :  { %v1018_v48 = vadd.f32 %v4248_v46, %v1017_v45  ;;  %v1117_v14 = vsel %vm1065_vm10, %v1013_v39, %v1091_v44  ;;  %v3628_v44 = vld [vmem:[%s4668_s1 + $0x140] sm:$0xff]  }
 0x34a   :  { %v3222_v13 = vpop.f32.mrf.mxu0  ;;  %v1134_v36 = vpack.c.bf16 %v1117_v14, %v1116_v49 }
 0x34b   :  { %v1092_v50 = vmul.f32 0.2, %v1018_v48  ;;  %vm1066_vm11 = vcmp.ge.f32.partialorder %v1018_v48, 0.0 }
 0x34c   :  { %v1020_v37 = vpop.f32.mrf.mxu0  ;;  %3285 = vmatmul.mubr.bf16.gmra.mxu1 %v1134_v36 }
 0x34d   :  { %v1021_v53 = vadd.f32 %v4248_v46, %v1020_v37  ;;  %3288 = vmatprep.mubr.msk.bf16.mxu1 %vm3720_vm0, %v3719_v6  ;;  %v1118_v60 = vsel %vm1066_vm11, %v1018_v48, %v1092_v50 }
 0x34e   :  { %v3223_v54 = vpop.f32.mrf.mxu0 }
 0x34f   :  { %vm1067_vm12 = vcmp.ge.f32.partialorder %v1021_v53, 0.0  ;;  %v1093_v57 = vmul.f32 0.2, %v1021_v53 }
 0x350   :  { %v1025_v58 = vpop.f32.mrf.mxu0 }
 0x351   :  { %v1026_v59 = vadd.f32 %v4248_v46, %v1025_v58  ;;  %v1119_v41 = vsel %vm1067_vm12, %v1021_v53, %v1093_v57 }
 0x352   :  { %v3226_v42 = vpop.f32.mrf.mxu0  ;;  %v1135_v61 = vpack.c.bf16 %v1119_v41, %v1118_v60 }
 0x353   :  { %v1094_v17 = vmul.f32 0.2, %v1026_v59  ;;  %vm1068_vm13 = vcmp.ge.f32.partialorder %v1026_v59, 0.0 }
 0x354   :  { %v1028_v62 = vpop.f32.mrf.mxu0  ;;  %3289 = vmatmul.mubr.bf16.gmra.mxu1 %v1135_v61 }
 0x355   :  { %v1029_v16 = vadd.f32 %v4248_v46, %v1028_v62  ;;  %3292 = vmatprep.mubr.msk.bf16.mxu1 %vm3720_vm0, %v3719_v6  ;;  %v1120_v0 = vsel %vm1068_vm13, %v1026_v59, %v1094_v17 }
 0x356   :  { %v3227_v63 = vpop.f32.mrf.mxu0 }
 0x357   :  { %vm1069_vm14 = vcmp.ge.f32.partialorder %v1029_v16, 0.0  ;;  %v1095_v40 = vmul.f32 0.2, %v1029_v16 }
 0x358   :  { %v1033_v3 = vpop.f32.mrf.mxu0 }
 0x359   :  { %v1034_v47 = vadd.f32 %v4248_v46, %v1033_v3  ;;  %v1121_v4 = vsel %vm1069_vm14, %v1029_v16, %v1095_v40 }
 0x35a   :  { %v3230_v2 = vpop.f32.mrf.mxu0  ;;  %v1136_v7 = vpack.c.bf16 %v1121_v4, %v1120_v0 }
 0x35b   :  { %v1096_v52 = vmul.f32 0.2, %v1034_v47  ;;  %vm1070_vm15 = vcmp.ge.f32.partialorder %v1034_v47, 0.0 }
 0x35c   :  { %v1036_v51 = vpop.f32.mrf.mxu0  ;;  %3293 = vmatmul.mubr.bf16.gmra.mxu1 %v1136_v7 }
 0x35d   :  { %v1037_v55 = vadd.f32 %v4248_v46, %v1036_v51  ;;  %3296 = vmatprep.mubr.msk.bf16.mxu1 %vm3720_vm0, %v3719_v6  ;;  %v1122_v21 = vsel %vm1070_vm15, %v1034_v47, %v1096_v52 }
 0x35e   :  { %v3231_v56 = vpop.f32.mrf.mxu0 }
 0x35f   :  { %vm1071_vm1 = vcmp.ge.f32.partialorder %v1037_v55, 0.0  ;;  %v1097_v8 = vmul.f32 0.2, %v1037_v55 }
 0x360   :  { %v1041_v12 = vpop.f32.mrf.mxu0 }
 0x361   :  { %v1042_v22 = vadd.f32 %v4248_v46, %v1041_v12  ;;  %v1123_v15 = vsel %vm1071_vm1, %v1037_v55, %v1097_v8 }
 0x362   :  { %v3234_v18 = vpop.f32.mrf.mxu0  ;;  %v1137_v19 = vpack.c.bf16 %v1123_v15, %v1122_v21 }
 0x363   :  { %v1098_v23 = vmul.f32 0.2, %v1042_v22  ;;  %vm1072_vm2 = vcmp.ge.f32.partialorder %v1042_v22, 0.0 }
 0x364   :  { %v1044_v20 = vpop.f32.mrf.mxu0  ;;  %3297 = vmatmul.mubr.bf16.gmra.mxu1 %v1137_v19 }
 0x365   :  { %v1045_v1 = vadd.f32 %v4248_v46, %v1044_v20  ;;  %3300 = vmatprep.mubr.msk.bf16.mxu1 %vm3720_vm0, %v3719_v6  ;;  %v1124_v25 = vsel %vm1072_vm2, %v1042_v22, %v1098_v23  ;;  %v3622_v46 = vld [vmem:[%s4668_s1 + $0x170] sm:$0xff]  }
 0x366   :  { %v3235_v5 = vpop.f32.mrf.mxu0  ;;  %3375 = vmatpush3.bf16.msra.mxu1 %v3622_v46 }
 0x367   :  { %vm1073_vm3 = vcmp.ge.f32.partialorder %v1045_v1, 0.0  ;;  %v1099_v24 = vmul.f32 0.2, %v1045_v1  ;;  %3376 = vmatprep.subr.bf16.mxu1 %v3719_v6 }
 0x369   :  { %v1125_v27 = vsel %vm1073_vm3, %v1045_v1, %v1099_v24 }
 0x36a   :  { %v1138_v26 = vpack.c.bf16 %v1125_v27, %v1124_v25  ;;  %3377 = vmatpush3.bf16.msra.mxu1 %v3623_v29 }
 0x36b   :  { %3378 = vmatprep.subr.bf16.mxu1 %v3719_v6 }
 0x36c   :  { %3301 = vmatmul.mubr.bf16.gmra.mxu1 %v1138_v26 }
 0x36d   :  { %3388 = vmatprep.mubr.msk.bf16.mxu1 %vm3720_vm0, %v3719_v6 }
 0x36e   :  { %3379 = vmatpush3.bf16.msra.mxu1 %v3624_v30 }
 0x36f   :  { %3380 = vmatprep.subr.bf16.mxu1 %v3719_v6 }
 0x372   :  { %3381 = vmatpush3.bf16.msra.mxu1 %v3625_v33 }
 0x373   :  { %3382 = vmatprep.subr.bf16.mxu1 %v3719_v6 }
 0x376   :  { %3383 = vmatpush3.bf16.msra.mxu1 %v3626_v10 }
 0x377   :  { %3384 = vmatprep.subr.bf16.mxu1 %v3719_v6 }
 0x37a   :  { %3385 = vmatpush3.bf16.msra.mxu1 %v3627_v11 }
 0x37b   :  { %3386 = vmatprep.subr.bf16.mxu1 %v3719_v6 }
 0x37e   :  { %3387 = vmatpush3.bf16.msra.mxu1 %v3628_v44 }
 0x37f   :  { %3508 = vmatprep.subr.bf16.mxu1 %v3719_v6 }
 0x3cc   :  { %v1246_v9 = vpop.f32.mrf.mxu1 }
 0x3cd   :  { %v1247_v35 = vadd.f32 %v4337_v34, %v1246_v9 }
 0x3ce   :  { %v3254_v38 = vpop.f32.mrf.mxu1 }
 0x3cf   :  { %v1375_v31 = vmul.f32 0.2, %v1247_v35  ;;  %vm1349_vm4 = vcmp.ge.f32.partialorder %v1247_v35, 0.0 }
 0x3d0   :  { %v1249_v32 = vpop.f32.mrf.mxu1 }
 0x3d1   :  { %v1250_v39 = vadd.f32 %v4337_v34, %v1249_v32  ;;  %v1401_v49 = vsel %vm1349_vm4, %v1247_v35, %v1375_v31 }
 0x3d2   :  { %v3255_v43 = vpop.f32.mrf.mxu1 }
 0x3d3   :  { %vm1350_vm5 = vcmp.ge.f32.partialorder %v1250_v39, 0.0  ;;  %v1376_v45 = vmul.f32 0.2, %v1250_v39 }
 0x3d4   :  { %v1254_v48 = vpop.f32.mrf.mxu1 }
 0x3d5   :  { %v1402_v14 = vsel %vm1350_vm5, %v1250_v39, %v1376_v45  ;;  %v1255_v13 = vadd.f32 %v4337_v34, %v1254_v48 }
 0x3d6   :  { %v1427_v36 = vpack.c.bf16 %v1402_v14, %v1401_v49  ;;  %v3258_v37 = vpop.f32.mrf.mxu1 }
 0x3d7   :  { %v1377_v53 = vmul.f32 0.2, %v1255_v13  ;;  %vm1351_vm6 = vcmp.ge.f32.partialorder %v1255_v13, 0.0 }
 0x3d8   :  { %v1257_v50 = vpop.f32.mrf.mxu1  ;;  %3321 = vmatmul.mubr.bf16.vlgmr.msra.gmra.mxu0 %v1427_v36 }
 0x3d9   :  { %v1258_v54 = vadd.f32 %v4337_v34, %v1257_v50  ;;  %3324 = vmatprep.mubr.msk.bf16.mxu0 %vm3720_vm0, %v3719_v6  ;;  %v1403_v41 = vsel %vm1351_vm6, %v1255_v13, %v1377_v53 }
 0x3da   :  { %v3259_v57 = vpop.f32.mrf.mxu1 }
 0x3db   :  { %vm1352_vm7 = vcmp.ge.f32.partialorder %v1258_v54, 0.0  ;;  %v1378_v58 = vmul.f32 0.2, %v1258_v54 }
 0x3dc   :  { %v1262_v59 = vpop.f32.mrf.mxu1 }
 0x3dd   :  { %v1263_v60 = vadd.f32 %v4337_v34, %v1262_v59  ;;  %v1404_v42 = vsel %vm1352_vm7, %v1258_v54, %v1378_v58 }
 0x3de   :  { %v3262_v61 = vpop.f32.mrf.mxu1  ;;  %v1428_v62 = vpack.c.bf16 %v1404_v42, %v1403_v41 }
 0x3df   :  { %v1379_v16 = vmul.f32 0.2, %v1263_v60  ;;  %vm1353_vm8 = vcmp.ge.f32.partialorder %v1263_v60, 0.0 }
 0x3e0   :  { %v1265_v17 = vpop.f32.mrf.mxu1  ;;  %3325 = vmatmul.mubr.bf16.gmra.mxu0 %v1428_v62 }
 0x3e1   :  { %v1266_v63 = vadd.f32 %v4337_v34, %v1265_v17  ;;  %3328 = vmatprep.mubr.msk.bf16.mxu0 %vm3720_vm0, %v3719_v6  ;;  %v1405_v0 = vsel %vm1353_vm8, %v1263_v60, %v1379_v16 }
 0x3e2   :  { %v3263_v40 = vpop.f32.mrf.mxu1 }
 0x3e3   :  { %vm1354_vm9 = vcmp.ge.f32.partialorder %v1266_v63, 0.0  ;;  %v1380_v3 = vmul.f32 0.2, %v1266_v63 }
 0x3e4   :  { %v1270_v47 = vpop.f32.mrf.mxu1 }
 0x3e5   :  { %v1406_v4 = vsel %vm1354_vm9, %v1266_v63, %v1380_v3  ;;  %v1271_v2 = vadd.f32 %v4337_v34, %v1270_v47 }
 0x3e6   :  { %v1429_v7 = vpack.c.bf16 %v1406_v4, %v1405_v0  ;;  %v3266_v51 = vpop.f32.mrf.mxu1 }
 0x3e7   :  { %v1381_v55 = vmul.f32 0.2, %v1271_v2  ;;  %vm1355_vm10 = vcmp.ge.f32.partialorder %v1271_v2, 0.0 }
 0x3e8   :  { %v1273_v52 = vpop.f32.mrf.mxu1  ;;  %3329 = vmatmul.mubr.bf16.gmra.mxu0 %v1429_v7 }
 0x3e9   :  { %v1274_v56 = vadd.f32 %v4337_v34, %v1273_v52  ;;  %3332 = vmatprep.mubr.msk.bf16.mxu0 %vm3720_vm0, %v3719_v6  ;;  %v1407_v21 = vsel %vm1355_vm10, %v1271_v2, %v1381_v55 }
 0x3ea   :  { %v3267_v8 = vpop.f32.mrf.mxu1 }
 0x3eb   :  { %vm1356_vm11 = vcmp.ge.f32.partialorder %v1274_v56, 0.0  ;;  %v1382_v12 = vmul.f32 0.2, %v1274_v56 }
 0x3ec   :  { %v1278_v22 = vpop.f32.mrf.mxu1 }
 0x3ed   :  { %v1408_v15 = vsel %vm1356_vm11, %v1274_v56, %v1382_v12  ;;  %v1279_v18 = vadd.f32 %v4337_v34, %v1278_v22 }
 0x3ee   :  { %v1430_v19 = vpack.c.bf16 %v1408_v15, %v1407_v21  ;;  %v3270_v20 = vpop.f32.mrf.mxu1 }
 0x3ef   :  { %v1383_v1 = vmul.f32 0.2, %v1279_v18  ;;  %vm1357_vm12 = vcmp.ge.f32.partialorder %v1279_v18, 0.0 }
 0x3f0   :  { %v1281_v23 = vpop.f32.mrf.mxu1  ;;  %3333 = vmatmul.mubr.bf16.gmra.mxu0 %v1430_v19 }
 0x3f1   :  { %v1282_v5 = vadd.f32 %v4337_v34, %v1281_v23  ;;  %3336 = vmatprep.mubr.msk.bf16.mxu0 %vm3720_vm0, %v3719_v6  ;;  %v1409_v26 = vsel %vm1357_vm12, %v1279_v18, %v1383_v1 }
 0x3f2   :  { %v3271_v24 = vpop.f32.mrf.mxu1 }
 0x3f3   :  { %vm1358_vm13 = vcmp.ge.f32.partialorder %v1282_v5, 0.0  ;;  %v1384_v25 = vmul.f32 0.2, %v1282_v5 }
 0x3f4   :  { %v1286_v27 = vpop.f32.mrf.mxu1 }
 0x3f5   :  { %v1410_v28 = vsel %vm1358_vm13, %v1282_v5, %v1384_v25  ;;  %v1287_v46 = vadd.f32 %v4337_v34, %v1286_v27 }
 0x3f6   :  { %v1431_v29 = vpack.c.bf16 %v1410_v28, %v1409_v26  ;;  %v3274_v30 = vpop.f32.mrf.mxu1 }
 0x3f7   :  { %v1385_v10 = vmul.f32 0.2, %v1287_v46  ;;  %vm1359_vm14 = vcmp.ge.f32.partialorder %v1287_v46, 0.0 }
 0x3f8   :  { %v1289_v33 = vpop.f32.mrf.mxu1  ;;  %3337 = vmatmul.mubr.bf16.gmra.mxu0 %v1431_v29 }
 0x3f9   :  { %v1290_v9 = vadd.f32 %v4337_v34, %v1289_v33  ;;  %3340 = vmatprep.mubr.msk.bf16.mxu0 %vm3720_vm0, %v3719_v6  ;;  %v1411_v32 = vsel %vm1359_vm14, %v1287_v46, %v1385_v10 }
 0x3fa   :  { %v3275_v35 = vpop.f32.mrf.mxu1 }
 0x3fb   :  { %vm1360_vm15 = vcmp.ge.f32.partialorder %v1290_v9, 0.0  ;;  %v1386_v38 = vmul.f32 0.2, %v1290_v9 }
 0x3fc   :  { %v1294_v11 = vpop.f32.mrf.mxu1 }
 0x3fd   :  { %v1412_v31 = vsel %vm1360_vm15, %v1290_v9, %v1386_v38  ;;  %v1295_v39 = vadd.f32 %v4337_v34, %v1294_v11 }
 0x3fe   :  { %v1432_v43 = vpack.c.bf16 %v1412_v31, %v1411_v32  ;;  %v3278_v44 = vpop.f32.mrf.mxu1 }
 0x3ff   :  { %v1387_v48 = vmul.f32 0.2, %v1295_v39  ;;  %vm1361_vm1 = vcmp.ge.f32.partialorder %v1295_v39, 0.0 }
 0x400   :  { %v1297_v45 = vpop.f32.mrf.mxu1  ;;  %3341 = vmatmul.mubr.bf16.gmra.mxu0 %v1432_v43 }
 0x401   :  { %v1298_v49 = vadd.f32 %v4337_v34, %v1297_v45  ;;  %3344 = vmatprep.mubr.msk.bf16.mxu0 %vm3720_vm0, %v3719_v6  ;;  %v1413_v37 = vsel %vm1361_vm1, %v1295_v39, %v1387_v48 }
 0x402   :  { %v3279_v14 = vpop.f32.mrf.mxu1 }
 0x403   :  { %vm1362_vm2 = vcmp.ge.f32.partialorder %v1298_v49, 0.0  ;;  %v1388_v13 = vmul.f32 0.2, %v1298_v49 }
 0x404   :  { %v1302_v36 = vpop.f32.mrf.mxu1 }
 0x405   :  { %v1414_v50 = vsel %vm1362_vm2, %v1298_v49, %v1388_v13  ;;  %v1303_v53 = vadd.f32 %v4337_v34, %v1302_v36 }
 0x406   :  { %v1433_v54 = vpack.c.bf16 %v1414_v50, %v1413_v37  ;;  %v3282_v57 = vpop.f32.mrf.mxu1 }
 0x407   :  { %v1389_v59 = vmul.f32 0.2, %v1303_v53  ;;  %vm1363_vm3 = vcmp.ge.f32.partialorder %v1303_v53, 0.0 }
 0x408   :  { %v1305_v58 = vpop.f32.mrf.mxu1  ;;  %3345 = vmatmul.mubr.bf16.gmra.mxu0 %v1433_v54 }
 0x409   :  { %v1306_v60 = vadd.f32 %v4337_v34, %v1305_v58  ;;  %3348 = vmatprep.mubr.msk.bf16.mxu0 %vm3720_vm0, %v3719_v6  ;;  %v1415_v62 = vsel %vm1363_vm3, %v1303_v53, %v1389_v59  ;;  %v3629_v59 = vld [vmem:[%s4668_s1 + $0x1b8] sm:$0xff]  }
 0x40a   :  { %v3283_v41 = vpop.f32.mrf.mxu1  ;;  %3441 = vmatpush3.bf16.msra.mxu0 %v3629_v59 }
 0x40b   :  { %vm1364_vm4 = vcmp.ge.f32.partialorder %v1306_v60, 0.0  ;;  %v1390_v42 = vmul.f32 0.2, %v1306_v60  ;;  %3442 = vmatprep.subr.bf16.mxu0 %v3719_v6  ;;  %v3632_v41 = vld [vmem:[%s4668_s1 + $0x1a0] sm:$0xff]  }
 0x40c   :  { %v1310_v61 = vpop.f32.mrf.mxu1 }
 0x40d   :  { %v1416_v17 = vsel %vm1364_vm4, %v1306_v60, %v1390_v42  ;;  %v1311_v16 = vadd.f32 %v4337_v34, %v1310_v61  ;;  %v3631_v60 = vld [vmem:[%s4668_s1 + $0x1a8] sm:$0xff]   ;;  %v3633_v42 = vld [vmem:[%s4668_s1 + $0x198] sm:$0xff]   ;;  %v4426_v61 = vld [vmem:[%s4669_s2 + $0x4] ss:$0 sm:$0xff] }
 0x40e   :  { %v1434_v63 = vpack.c.bf16 %v1416_v17, %v1415_v62  ;;  %v3286_v40 = vpop.f32.mrf.mxu1  ;;  %v3634_v62 = vld [vmem:[%s4668_s1 + $0x190] sm:$0xff]  }
 0x40f   :  { %v1391_v47 = vmul.f32 0.2, %v1311_v16  ;;  %vm1365_vm5 = vcmp.ge.f32.partialorder %v1311_v16, 0.0  ;;  %v3635_v40 = vld [vmem:[%s4668_s1 + $0x188] sm:$0xff]  }
 0x410   :  { %v1313_v3 = vpop.f32.mrf.mxu1  ;;  %3349 = vmatmul.mubr.bf16.gmra.mxu0 %v1434_v63 }
 0x411   :  { %v1314_v0 = vadd.f32 %v4337_v34, %v1313_v3  ;;  %3352 = vmatprep.mubr.msk.bf16.mxu0 %vm3720_vm0, %v3719_v6  ;;  %v1417_v51 = vsel %vm1365_vm5, %v1311_v16, %v1391_v47 }
 0x412   :  { %v3287_v4 = vpop.f32.mrf.mxu1 }
 0x413   :  { %vm1366_vm6 = vcmp.ge.f32.partialorder %v1314_v0, 0.0  ;;  %v1392_v2 = vmul.f32 0.2, %v1314_v0 }
 0x414   :  { %v1318_v7 = vpop.f32.mrf.mxu1 }
 0x415   :  { %v1418_v52 = vsel %vm1366_vm6, %v1314_v0, %v1392_v2  ;;  %v1319_v55 = vadd.f32 %v4337_v34, %v1318_v7  ;;  %v3636_v2 = vld [vmem:[%s4668_s1 + $0x180] sm:$0xff]  }
 0x416   :  { %v1435_v56 = vpack.c.bf16 %v1418_v52, %v1417_v51  ;;  %v3290_v8 = vpop.f32.mrf.mxu1 }
 0x417   :  { %v1393_v22 = vmul.f32 0.2, %v1319_v55  ;;  %vm1367_vm7 = vcmp.ge.f32.partialorder %v1319_v55, 0.0 }
 0x418   :  { %v1321_v12 = vpop.f32.mrf.mxu1  ;;  %3353 = vmatmul.mubr.bf16.gmra.mxu0 %v1435_v56 }
 0x419   :  { %v1322_v21 = vadd.f32 %v4337_v34, %v1321_v12  ;;  %3356 = vmatprep.mubr.msk.bf16.mxu0 %vm3720_vm0, %v3719_v6  ;;  %v1419_v20 = vsel %vm1367_vm7, %v1319_v55, %v1393_v22 }
 0x41a   :  { %v3291_v15 = vpop.f32.mrf.mxu1 }
 0x41b   :  { %vm1368_vm8 = vcmp.ge.f32.partialorder %v1322_v21, 0.0  ;;  %v1394_v18 = vmul.f32 0.2, %v1322_v21 }
 0x41c   :  { %v1326_v19 = vpop.f32.mrf.mxu1 }
 0x41d   :  { %v1420_v23 = vsel %vm1368_vm8, %v1322_v21, %v1394_v18  ;;  %v1327_v1 = vadd.f32 %v4337_v34, %v1326_v19 }
 0x41e   :  { %v1436_v5 = vpack.c.bf16 %v1420_v23, %v1419_v20  ;;  %v3294_v24 = vpop.f32.mrf.mxu1 }
 0x41f   :  { %v1395_v27 = vmul.f32 0.2, %v1327_v1  ;;  %vm1369_vm9 = vcmp.ge.f32.partialorder %v1327_v1, 0.0 }
 0x420   :  { %v1329_v25 = vpop.f32.mrf.mxu1  ;;  %3357 = vmatmul.mubr.bf16.gmra.mxu0 %v1436_v5 }
 0x421   :  { %v1330_v26 = vadd.f32 %v4337_v34, %v1329_v25  ;;  %3360 = vmatprep.mubr.msk.bf16.mxu0 %vm3720_vm0, %v3719_v6  ;;  %v1421_v30 = vsel %vm1369_vm9, %v1327_v1, %v1395_v27 }
 0x422   :  { %v3295_v28 = vpop.f32.mrf.mxu1 }
 0x423   :  { %vm1370_vm10 = vcmp.ge.f32.partialorder %v1330_v26, 0.0  ;;  %v1396_v46 = vmul.f32 0.2, %v1330_v26 }
 0x424   :  { %v1334_v29 = vpop.f32.mrf.mxu1 }
 0x425   :  { %v1422_v33 = vsel %vm1370_vm10, %v1330_v26, %v1396_v46  ;;  %v1335_v10 = vadd.f32 %v4337_v34, %v1334_v29 }
 0x426   :  { %v1437_v9 = vpack.c.bf16 %v1422_v33, %v1421_v30  ;;  %v3298_v35 = vpop.f32.mrf.mxu1 }
 0x427   :  { %v1397_v11 = vmul.f32 0.2, %v1335_v10  ;;  %vm1371_vm11 = vcmp.ge.f32.partialorder %v1335_v10, 0.0 }
 0x428   :  { %v1337_v38 = vpop.f32.mrf.mxu1  ;;  %3361 = vmatmul.mubr.bf16.gmra.mxu0 %v1437_v9 }
 0x429   :  { %v1338_v32 = vadd.f32 %v4337_v34, %v1337_v38  ;;  %3364 = vmatprep.mubr.msk.bf16.mxu0 %vm3720_vm0, %v3719_v6  ;;  %v1423_v44 = vsel %vm1371_vm11, %v1335_v10, %v1397_v11 }
 0x42a   :  { %v3299_v31 = vpop.f32.mrf.mxu1 }
 0x42b   :  { %vm1372_vm12 = vcmp.ge.f32.partialorder %v1338_v32, 0.0  ;;  %v1398_v39 = vmul.f32 0.2, %v1338_v32 }
 0x42c   :  { %v1342_v43 = vpop.f32.mrf.mxu1 }
 0x42d   :  { %v1424_v45 = vsel %vm1372_vm12, %v1338_v32, %v1398_v39  ;;  %v1343_v48 = vadd.f32 %v4337_v34, %v1342_v43 }
 0x42e   :  { %v1438_v49 = vpack.c.bf16 %v1424_v45, %v1423_v44  ;;  %v3302_v14 = vpop.f32.mrf.mxu1 }
 0x42f   :  { %v1399_v36 = vmul.f32 0.2, %v1343_v48  ;;  %vm1373_vm13 = vcmp.ge.f32.partialorder %v1343_v48, 0.0 }
 0x430   :  { %v1345_v13 = vpop.f32.mrf.mxu1  ;;  %3365 = vmatmul.mubr.bf16.gmra.mxu0 %v1438_v49 }
 0x431   :  { %v1346_v37 = vadd.f32 %v4337_v34, %v1345_v13  ;;  %3368 = vmatprep.mubr.msk.bf16.mxu0 %vm3720_vm0, %v3719_v6  ;;  %v1425_v54 = vsel %vm1373_vm13, %v1343_v48, %v1399_v36  ;;  %v3630_v34 = vld [vmem:[%s4668_s1 + $0x1b0] sm:$0xff]  }
 0x432   :  { %v3303_v50 = vpop.f32.mrf.mxu1  ;;  %3443 = vmatpush3.bf16.msra.mxu0 %v3630_v34 }
 0x433   :  { %vm1374_vm14 = vcmp.ge.f32.partialorder %v1346_v37, 0.0  ;;  %v1400_v53 = vmul.f32 0.2, %v1346_v37  ;;  %3444 = vmatprep.subr.bf16.mxu0 %v3719_v6 }
 0x435   :  { %v1426_v57 = vsel %vm1374_vm14, %v1346_v37, %v1400_v53 }
 0x436   :  { %v1439_v58 = vpack.c.bf16 %v1426_v57, %v1425_v54  ;;  %3445 = vmatpush3.bf16.msra.mxu0 %v3631_v60 }
 0x437   :  { %3446 = vmatprep.subr.bf16.mxu0 %v3719_v6 }
 0x438   :  { %3369 = vmatmul.mubr.bf16.gmra.mxu0 %v1439_v58 }
 0x439   :  { %3456 = vmatprep.mubr.msk.bf16.mxu0 %vm3720_vm0, %v3719_v6 }
 0x43a   :  { %3447 = vmatpush3.bf16.msra.mxu0 %v3632_v41 }
 0x43b   :  { %3448 = vmatprep.subr.bf16.mxu0 %v3719_v6 }
 0x43e   :  { %3449 = vmatpush3.bf16.msra.mxu0 %v3633_v42 }
 0x43f   :  { %3450 = vmatprep.subr.bf16.mxu0 %v3719_v6 }
 0x442   :  { %3451 = vmatpush3.bf16.msra.mxu0 %v3634_v62 }
 0x443   :  { %3452 = vmatprep.subr.bf16.mxu0 %v3719_v6 }
 0x446   :  { %3453 = vmatpush3.bf16.msra.mxu0 %v3635_v40 }
 0x447   :  { %3454 = vmatprep.subr.bf16.mxu0 %v3719_v6 }
 0x44a   :  { %3455 = vmatpush3.bf16.msra.mxu0 %v3636_v2 }
 0x498   :  { %v1547_v17 = vpop.f32.mrf.mxu0 }
 0x499   :  { %v1548_v16 = vadd.f32 %v4426_v61, %v1547_v17 }
 0x49a   :  { %v3322_v63 = vpop.f32.mrf.mxu0 }
 0x49b   :  { %v1676_v47 = vmul.f32 0.2, %v1548_v16  ;;  %vm1650_vm15 = vcmp.ge.f32.partialorder %v1548_v16, 0.0 }
 0x49c   :  { %v1550_v3 = vpop.f32.mrf.mxu0 }
 0x49d   :  { %v1551_v0 = vadd.f32 %v4426_v61, %v1550_v3  ;;  %v1702_v52 = vsel %vm1650_vm15, %v1548_v16, %v1676_v47 }
 0x49e   :  { %v3323_v4 = vpop.f32.mrf.mxu0 }
 0x49f   :  { %vm1651_vm1 = vcmp.ge.f32.partialorder %v1551_v0, 0.0  ;;  %v1677_v7 = vmul.f32 0.2, %v1551_v0 }
 0x4a0   :  { %v1555_v51 = vpop.f32.mrf.mxu0 }
 0x4a1   :  { %v1703_v55 = vsel %vm1651_vm1, %v1551_v0, %v1677_v7  ;;  %v1556_v56 = vadd.f32 %v4426_v61, %v1555_v51 }
 0x4a2   :  { %v1728_v8 = vpack.c.bf16 %v1703_v55, %v1702_v52  ;;  %v3326_v12 = vpop.f32.mrf.mxu0 }
 0x4a3   :  { %v1678_v21 = vmul.f32 0.2, %v1556_v56  ;;  %vm1652_vm2 = vcmp.ge.f32.partialorder %v1556_v56, 0.0 }
 0x4a4   :  { %v1558_v22 = vpop.f32.mrf.mxu0  ;;  %3389 = vmatmul.mubr.bf16.vlgmr.msra.gmra.mxu1 %v1728_v8 }
 0x4a5   :  { %v1559_v15 = vadd.f32 %v4426_v61, %v1558_v22  ;;  %3392 = vmatprep.mubr.msk.bf16.mxu1 %vm3720_vm0, %v3719_v6  ;;  %v1704_v1 = vsel %vm1652_vm2, %v1556_v56, %v1678_v21 }
 0x4a6   :  { %v3327_v18 = vpop.f32.mrf.mxu0 }
 0x4a7   :  { %vm1653_vm3 = vcmp.ge.f32.partialorder %v1559_v15, 0.0  ;;  %v1679_v19 = vmul.f32 0.2, %v1559_v15 }
 0x4a8   :  { %v1563_v20 = vpop.f32.mrf.mxu0 }
 0x4a9   :  { %v1564_v23 = vadd.f32 %v4426_v61, %v1563_v20  ;;  %v1705_v5 = vsel %vm1653_vm3, %v1559_v15, %v1679_v19 }
 0x4aa   :  { %v3330_v24 = vpop.f32.mrf.mxu0  ;;  %v1729_v25 = vpack.c.bf16 %v1705_v5, %v1704_v1 }
 0x4ab   :  { %v1680_v26 = vmul.f32 0.2, %v1564_v23  ;;  %vm1654_vm4 = vcmp.ge.f32.partialorder %v1564_v23, 0.0 }
 0x4ac   :  { %v1566_v27 = vpop.f32.mrf.mxu0  ;;  %3393 = vmatmul.mubr.bf16.gmra.mxu1 %v1729_v25 }
 0x4ad   :  { %v1567_v28 = vadd.f32 %v4426_v61, %v1566_v27  ;;  %3396 = vmatprep.mubr.msk.bf16.mxu1 %vm3720_vm0, %v3719_v6  ;;  %v1706_v33 = vsel %vm1654_vm4, %v1564_v23, %v1680_v26 }
 0x4ae   :  { %v3331_v46 = vpop.f32.mrf.mxu0 }
 0x4af   :  { %vm1655_vm5 = vcmp.ge.f32.partialorder %v1567_v28, 0.0  ;;  %v1681_v29 = vmul.f32 0.2, %v1567_v28 }
 0x4b0   :  { %v1571_v30 = vpop.f32.mrf.mxu0 }
 0x4b1   :  { %v1707_v10 = vsel %vm1655_vm5, %v1567_v28, %v1681_v29  ;;  %v1572_v9 = vadd.f32 %v4426_v61, %v1571_v30 }
 0x4b2   :  { %v1730_v35 = vpack.c.bf16 %v1707_v10, %v1706_v33  ;;  %v3334_v38 = vpop.f32.mrf.mxu0 }
 0x4b3   :  { %v1682_v32 = vmul.f32 0.2, %v1572_v9  ;;  %vm1656_vm6 = vcmp.ge.f32.partialorder %v1572_v9, 0.0 }
 0x4b4   :  { %v1574_v11 = vpop.f32.mrf.mxu0  ;;  %3397 = vmatmul.mubr.bf16.gmra.mxu1 %v1730_v35 }
 0x4b5   :  { %v1575_v31 = vadd.f32 %v4426_v61, %v1574_v11  ;;  %3400 = vmatprep.mubr.msk.bf16.mxu1 %vm3720_vm0, %v3719_v6  ;;  %v1708_v45 = vsel %vm1656_vm6, %v1572_v9, %v1682_v32 }
 0x4b6   :  { %v3335_v39 = vpop.f32.mrf.mxu0 }
 0x4b7   :  { %vm1657_vm7 = vcmp.ge.f32.partialorder %v1575_v31, 0.0  ;;  %v1683_v43 = vmul.f32 0.2, %v1575_v31 }
 0x4b8   :  { %v1579_v44 = vpop.f32.mrf.mxu0 }
 0x4b9   :  { %v1709_v48 = vsel %vm1657_vm7, %v1575_v31, %v1683_v43  ;;  %v1580_v49 = vadd.f32 %v4426_v61, %v1579_v44 }
 0x4ba   :  { %v1731_v14 = vpack.c.bf16 %v1709_v48, %v1708_v45  ;;  %v3338_v13 = vpop.f32.mrf.mxu0 }
 0x4bb   :  { %v1684_v37 = vmul.f32 0.2, %v1580_v49  ;;  %vm1658_vm8 = vcmp.ge.f32.partialorder %v1580_v49, 0.0 }
 0x4bc   :  { %v1582_v36 = vpop.f32.mrf.mxu0  ;;  %3401 = vmatmul.mubr.bf16.gmra.mxu1 %v1731_v14 }
 0x4bd   :  { %v1583_v50 = vadd.f32 %v4426_v61, %v1582_v36  ;;  %3404 = vmatprep.mubr.msk.bf16.mxu1 %vm3720_vm0, %v3719_v6  ;;  %v1710_v58 = vsel %vm1658_vm8, %v1580_v49, %v1684_v37 }
 0x4be   :  { %v3339_v53 = vpop.f32.mrf.mxu0 }
 0x4bf   :  { %vm1659_vm9 = vcmp.ge.f32.partialorder %v1583_v50, 0.0  ;;  %v1685_v54 = vmul.f32 0.2, %v1583_v50 }
 0x4c0   :  { %v1587_v57 = vpop.f32.mrf.mxu0 }
 0x4c1   :  { %v1711_v59 = vsel %vm1659_vm9, %v1583_v50, %v1685_v54  ;;  %v1588_v34 = vadd.f32 %v4426_v61, %v1587_v57 }
 0x4c2   :  { %v1732_v60 = vpack.c.bf16 %v1711_v59, %v1710_v58  ;;  %v3342_v41 = vpop.f32.mrf.mxu0 }
 0x4c3   :  { %v1686_v62 = vmul.f32 0.2, %v1588_v34  ;;  %vm1660_vm10 = vcmp.ge.f32.partialorder %v1588_v34, 0.0 }
 0x4c4   :  { %v1590_v42 = vpop.f32.mrf.mxu0  ;;  %3405 = vmatmul.mubr.bf16.gmra.mxu1 %v1732_v60 }
 0x4c5   :  { %v1591_v17 = vadd.f32 %v4426_v61, %v1590_v42  ;;  %3408 = vmatprep.mubr.msk.bf16.mxu1 %vm3720_vm0, %v3719_v6  ;;  %v1712_v3 = vsel %vm1660_vm10, %v1588_v34, %v1686_v62 }
 0x4c6   :  { %v3343_v16 = vpop.f32.mrf.mxu0 }
 0x4c7   :  { %vm1661_vm11 = vcmp.ge.f32.partialorder %v1591_v17, 0.0  ;;  %v1687_v63 = vmul.f32 0.2, %v1591_v17 }
 0x4c8   :  { %v1595_v40 = vpop.f32.mrf.mxu0 }
 0x4c9   :  { %v1713_v47 = vsel %vm1661_vm11, %v1591_v17, %v1687_v63  ;;  %v1596_v0 = vadd.f32 %v4426_v61, %v1595_v40 }
 0x4ca   :  { %v1733_v4 = vpack.c.bf16 %v1713_v47, %v1712_v3  ;;  %v3346_v2 = vpop.f32.mrf.mxu0 }
 0x4cb   :  { %v1688_v51 = vmul.f32 0.2, %v1596_v0  ;;  %vm1662_vm12 = vcmp.ge.f32.partialorder %v1596_v0, 0.0 }
 0x4cc   :  { %v1598_v7 = vpop.f32.mrf.mxu0  ;;  %3409 = vmatmul.mubr.bf16.gmra.mxu1 %v1733_v4 }
 0x4cd   :  { %v1599_v52 = vadd.f32 %v4426_v61, %v1598_v7  ;;  %3412 = vmatprep.mubr.msk.bf16.mxu1 %vm3720_vm0, %v3719_v6  ;;  %v1714_v12 = vsel %vm1662_vm12, %v1596_v0, %v1688_v51 }
 0x4ce   :  { %v3347_v55 = vpop.f32.mrf.mxu0 }
 0x4cf   :  { %vm1663_vm13 = vcmp.ge.f32.partialorder %v1599_v52, 0.0  ;;  %v1689_v56 = vmul.f32 0.2, %v1599_v52 }
 0x4d0   :  { %v1603_v8 = vpop.f32.mrf.mxu0 }
 0x4d1   :  { %v1715_v22 = vsel %vm1663_vm13, %v1599_v52, %v1689_v56  ;;  %v1604_v21 = vadd.f32 %v4426_v61, %v1603_v8 }
 0x4d2   :  { %v1734_v15 = vpack.c.bf16 %v1715_v22, %v1714_v12  ;;  %v3350_v18 = vpop.f32.mrf.mxu0 }
 0x4d3   :  { %v1690_v20 = vmul.f32 0.2, %v1604_v21  ;;  %vm1664_vm14 = vcmp.ge.f32.partialorder %v1604_v21, 0.0 }
 0x4d4   :  { %v1606_v19 = vpop.f32.mrf.mxu0  ;;  %3413 = vmatmul.mubr.bf16.gmra.mxu1 %v1734_v15 }
 0x4d5   :  { %v1607_v23 = vadd.f32 %v4426_v61, %v1606_v19  ;;  %3416 = vmatprep.mubr.msk.bf16.mxu1 %vm3720_vm0, %v3719_v6  ;;  %v1716_v25 = vsel %vm1664_vm14, %v1604_v21, %v1690_v20  ;;  %v3637_v20 = vld [vmem:[%s4668_s1 + $0x1f8] sm:$0xff]  }
 0x4d6   :  { %v3351_v1 = vpop.f32.mrf.mxu0  ;;  %3509 = vmatpush3.bf16.msra.mxu1 %v3637_v20 }
 0x4d7   :  { %vm1665_vm15 = vcmp.ge.f32.partialorder %v1607_v23, 0.0  ;;  %v1691_v5 = vmul.f32 0.2, %v1607_v23  ;;  %3510 = vmatprep.subr.bf16.mxu1 %v3719_v6  ;;  %v3640_v1 = vld [vmem:[%s4668_s1 + $0x1e0] sm:$0xff]  }
 0x4d8   :  { %v1611_v24 = vpop.f32.mrf.mxu0 }
 0x4d9   :  { %v1717_v27 = vsel %vm1665_vm15, %v1607_v23, %v1691_v5  ;;  %v1612_v26 = vadd.f32 %v4426_v61, %v1611_v24  ;;  %v3639_v23 = vld [vmem:[%s4668_s1 + $0x1e8] sm:$0xff]   ;;  %v3641_v5 = vld [vmem:[%s4668_s1 + $0x1d8] sm:$0xff]   ;;  %v4514_v24 = vld [vmem:[%s4669_s2 + $0x5] ss:$0 sm:$0xff] }
 0x4da   :  { %v1735_v28 = vpack.c.bf16 %v1717_v27, %v1716_v25  ;;  %v3354_v46 = vpop.f32.mrf.mxu0  ;;  %v3642_v25 = vld [vmem:[%s4668_s1 + $0x1d0] sm:$0xff]  }
 0x4db   :  { %v1692_v30 = vmul.f32 0.2, %v1612_v26  ;;  %vm1666_vm1 = vcmp.ge.f32.partialorder %v1612_v26, 0.0  ;;  %v3643_v46 = vld [vmem:[%s4668_s1 + $0x1c8] sm:$0xff]  }
 0x4dc   :  { %v1614_v29 = vpop.f32.mrf.mxu0  ;;  %3417 = vmatmul.mubr.bf16.gmra.mxu1 %v1735_v28 }
 0x4dd   :  { %v1615_v33 = vadd.f32 %v4426_v61, %v1614_v29  ;;  %3420 = vmatprep.mubr.msk.bf16.mxu1 %vm3720_vm0, %v3719_v6  ;;  %v1718_v38 = vsel %vm1666_vm1, %v1612_v26, %v1692_v30 }
 0x4de   :  { %v3355_v10 = vpop.f32.mrf.mxu0 }
 0x4df   :  { %vm1667_vm2 = vcmp.ge.f32.partialorder %v1615_v33, 0.0  ;;  %v1693_v9 = vmul.f32 0.2, %v1615_v33 }
 0x4e0   :  { %v1619_v35 = vpop.f32.mrf.mxu0 }
 0x4e1   :  { %v1719_v11 = vsel %vm1667_vm2, %v1615_v33, %v1693_v9  ;;  %v1620_v32 = vadd.f32 %v4426_v61, %v1619_v35  ;;  %v3644_v9 = vld [vmem:[%s4668_s1 + $0x1c0] sm:$0xff]  }
 0x4e2   :  { %v1736_v31 = vpack.c.bf16 %v1719_v11, %v1718_v38  ;;  %v3358_v39 = vpop.f32.mrf.mxu0 }
 0x4e3   :  { %v1694_v44 = vmul.f32 0.2, %v1620_v32  ;;  %vm1668_vm3 = vcmp.ge.f32.partialorder %v1620_v32, 0.0 }
 0x4e4   :  { %v1622_v43 = vpop.f32.mrf.mxu0  ;;  %3421 = vmatmul.mubr.bf16.gmra.mxu1 %v1736_v31 }
 0x4e5   :  { %v1623_v45 = vadd.f32 %v4426_v61, %v1622_v43  ;;  %3424 = vmatprep.mubr.msk.bf16.mxu1 %vm3720_vm0, %v3719_v6  ;;  %v1720_v13 = vsel %vm1668_vm3, %v1620_v32, %v1694_v44 }
 0x4e6   :  { %v3359_v48 = vpop.f32.mrf.mxu0 }
 0x4e7   :  { %vm1669_vm4 = vcmp.ge.f32.partialorder %v1623_v45, 0.0  ;;  %v1695_v49 = vmul.f32 0.2, %v1623_v45 }
 0x4e8   :  { %v1627_v14 = vpop.f32.mrf.mxu0 }
 0x4e9   :  { %v1721_v36 = vsel %vm1669_vm4, %v1623_v45, %v1695_v49  ;;  %v1628_v37 = vadd.f32 %v4426_v61, %v1627_v14 }
 0x4ea   :  { %v1737_v50 = vpack.c.bf16 %v1721_v36, %v1720_v13  ;;  %v3362_v53 = vpop.f32.mrf.mxu0 }
 0x4eb   :  { %v1696_v57 = vmul.f32 0.2, %v1628_v37  ;;  %vm1670_vm5 = vcmp.ge.f32.partialorder %v1628_v37, 0.0 }
 0x4ec   :  { %v1630_v54 = vpop.f32.mrf.mxu0  ;;  %3425 = vmatmul.mubr.bf16.gmra.mxu1 %v1737_v50 }
 0x4ed   :  { %v1631_v58 = vadd.f32 %v4426_v61, %v1630_v54  ;;  %3428 = vmatprep.mubr.msk.bf16.mxu1 %vm3720_vm0, %v3719_v6  ;;  %v1722_v41 = vsel %vm1670_vm5, %v1628_v37, %v1696_v57 }
 0x4ee   :  { %v3363_v59 = vpop.f32.mrf.mxu0 }
 0x4ef   :  { %vm1671_vm6 = vcmp.ge.f32.partialorder %v1631_v58, 0.0  ;;  %v1697_v34 = vmul.f32 0.2, %v1631_v58 }
 0x4f0   :  { %v1635_v60 = vpop.f32.mrf.mxu0 }
 0x4f1   :  { %v1723_v42 = vsel %vm1671_vm6, %v1631_v58, %v1697_v34  ;;  %v1636_v62 = vadd.f32 %v4426_v61, %v1635_v60 }
 0x4f2   :  { %v1738_v17 = vpack.c.bf16 %v1723_v42, %v1722_v41  ;;  %v3366_v16 = vpop.f32.mrf.mxu0 }
 0x4f3   :  { %v1698_v40 = vmul.f32 0.2, %v1636_v62  ;;  %vm1672_vm7 = vcmp.ge.f32.partialorder %v1636_v62, 0.0 }
 0x4f4   :  { %v1638_v63 = vpop.f32.mrf.mxu0  ;;  %3429 = vmatmul.mubr.bf16.gmra.mxu1 %v1738_v17 }
 0x4f5   :  { %v1639_v3 = vadd.f32 %v4426_v61, %v1638_v63  ;;  %3432 = vmatprep.mubr.msk.bf16.mxu1 %vm3720_vm0, %v3719_v6  ;;  %v1724_v2 = vsel %vm1672_vm7, %v1636_v62, %v1698_v40 }
 0x4f6   :  { %v3367_v47 = vpop.f32.mrf.mxu0 }
 0x4f7   :  { %vm1673_vm8 = vcmp.ge.f32.partialorder %v1639_v3, 0.0  ;;  %v1699_v0 = vmul.f32 0.2, %v1639_v3 }
 0x4f8   :  { %v1643_v4 = vpop.f32.mrf.mxu0 }
 0x4f9   :  { %v1725_v7 = vsel %vm1673_vm8, %v1639_v3, %v1699_v0  ;;  %v1644_v51 = vadd.f32 %v4426_v61, %v1643_v4 }
 0x4fa   :  { %v1739_v52 = vpack.c.bf16 %v1725_v7, %v1724_v2  ;;  %v3370_v55 = vpop.f32.mrf.mxu0 }
 0x4fb   :  { %v1700_v8 = vmul.f32 0.2, %v1644_v51  ;;  %vm1674_vm9 = vcmp.ge.f32.partialorder %v1644_v51, 0.0 }
 0x4fc   :  { %v1646_v56 = vpop.f32.mrf.mxu0  ;;  %3433 = vmatmul.mubr.bf16.gmra.mxu1 %v1739_v52 }
 0x4fd   :  { %v1647_v12 = vadd.f32 %v4426_v61, %v1646_v56  ;;  %3436 = vmatprep.mubr.msk.bf16.mxu1 %vm3720_vm0, %v3719_v6  ;;  %v1726_v15 = vsel %vm1674_vm9, %v1644_v51, %v1700_v8  ;;  %v3638_v61 = vld [vmem:[%s4668_s1 + $0x1f0] sm:$0xff]  }
 0x4fe   :  { %v3371_v22 = vpop.f32.mrf.mxu0  ;;  %3511 = vmatpush3.bf16.msra.mxu1 %v3638_v61 }
 0x4ff   :  { %vm1675_vm10 = vcmp.ge.f32.partialorder %v1647_v12, 0.0  ;;  %v1701_v21 = vmul.f32 0.2, %v1647_v12  ;;  %3512 = vmatprep.subr.bf16.mxu1 %v3719_v6 }
 0x501   :  { %v1727_v18 = vsel %vm1675_vm10, %v1647_v12, %v1701_v21 }
 0x502   :  { %v1740_v19 = vpack.c.bf16 %v1727_v18, %v1726_v15  ;;  %3513 = vmatpush3.bf16.msra.mxu1 %v3639_v23 }
 0x503   :  { %3514 = vmatprep.subr.bf16.mxu1 %v3719_v6 }
 0x504   :  { %3437 = vmatmul.mubr.bf16.gmra.mxu1 %v1740_v19 }
 0x505   :  { %3524 = vmatprep.mubr.msk.bf16.mxu1 %vm3720_vm0, %v3719_v6 }
 0x506   :  { %3515 = vmatpush3.bf16.msra.mxu1 %v3640_v1 }
 0x507   :  { %3516 = vmatprep.subr.bf16.mxu1 %v3719_v6 }
 0x50a   :  { %3517 = vmatpush3.bf16.msra.mxu1 %v3641_v5 }
 0x50b   :  { %3518 = vmatprep.subr.bf16.mxu1 %v3719_v6 }
 0x50e   :  { %3519 = vmatpush3.bf16.msra.mxu1 %v3642_v25 }
 0x50f   :  { %3520 = vmatprep.subr.bf16.mxu1 %v3719_v6 }
 0x512   :  { %3521 = vmatpush3.bf16.msra.mxu1 %v3643_v46 }
 0x513   :  { %3522 = vmatprep.subr.bf16.mxu1 %v3719_v6 }
 0x516   :  { %3523 = vmatpush3.bf16.msra.mxu1 %v3644_v9 }
 0x564   :  { %v1848_v27 = vpop.f32.mrf.mxu1 }
 0x565   :  { %v1849_v26 = vadd.f32 %v4514_v24, %v1848_v27 }
 0x566   :  { %v3390_v28 = vpop.f32.mrf.mxu1 }
 0x567   :  { %v1977_v30 = vmul.f32 0.2, %v1849_v26  ;;  %vm1951_vm11 = vcmp.ge.f32.partialorder %v1849_v26, 0.0 }
 0x568   :  { %v1851_v29 = vpop.f32.mrf.mxu1 }
 0x569   :  { %v1852_v33 = vadd.f32 %v4514_v24, %v1851_v29  ;;  %v2003_v11 = vsel %vm1951_vm11, %v1849_v26, %v1977_v30 }
 0x56a   :  { %v3391_v10 = vpop.f32.mrf.mxu1 }
 0x56b   :  { %vm1952_vm12 = vcmp.ge.f32.partialorder %v1852_v33, 0.0  ;;  %v1978_v35 = vmul.f32 0.2, %v1852_v33 }
 0x56c   :  { %v1856_v38 = vpop.f32.mrf.mxu1 }
 0x56d   :  { %v2004_v32 = vsel %vm1952_vm12, %v1852_v33, %v1978_v35  ;;  %v1857_v31 = vadd.f32 %v4514_v24, %v1856_v38 }
 0x56e   :  { %v2029_v39 = vpack.c.bf16 %v2004_v32, %v2003_v11  ;;  %v3394_v43 = vpop.f32.mrf.mxu1 }
 0x56f   :  { %v1979_v45 = vmul.f32 0.2, %v1857_v31  ;;  %vm1953_vm13 = vcmp.ge.f32.partialorder %v1857_v31, 0.0 }
 0x570   :  { %v1859_v44 = vpop.f32.mrf.mxu1  ;;  %3457 = vmatmul.mubr.bf16.vlgmr.msra.gmra.mxu0 %v2029_v39 }
 0x571   :  { %v1860_v48 = vadd.f32 %v4514_v24, %v1859_v44  ;;  %3460 = vmatprep.mubr.msk.bf16.mxu0 %vm3720_vm0, %v3719_v6  ;;  %v2005_v36 = vsel %vm1953_vm13, %v1857_v31, %v1979_v45 }
 0x572   :  { %v3395_v49 = vpop.f32.mrf.mxu1 }
 0x573   :  { %vm1954_vm14 = vcmp.ge.f32.partialorder %v1860_v48, 0.0  ;;  %v1980_v14 = vmul.f32 0.2, %v1860_v48 }
 0x574   :  { %v1864_v13 = vpop.f32.mrf.mxu1 }
 0x575   :  { %v2006_v37 = vsel %vm1954_vm14, %v1860_v48, %v1980_v14  ;;  %v1865_v50 = vadd.f32 %v4514_v24, %v1864_v13 }
 0x576   :  { %v2030_v53 = vpack.c.bf16 %v2006_v37, %v2005_v36  ;;  %v3398_v54 = vpop.f32.mrf.mxu1 }
 0x577   :  { %v1981_v58 = vmul.f32 0.2, %v1865_v50  ;;  %vm1955_vm15 = vcmp.ge.f32.partialorder %v1865_v50, 0.0 }
 0x578   :  { %v1867_v57 = vpop.f32.mrf.mxu1  ;;  %3461 = vmatmul.mubr.bf16.gmra.mxu0 %v2030_v53 }
 0x579   :  { %v1868_v59 = vadd.f32 %v4514_v24, %v1867_v57  ;;  %3464 = vmatprep.mubr.msk.bf16.mxu0 %vm3720_vm0, %v3719_v6  ;;  %v2007_v42 = vsel %vm1955_vm15, %v1865_v50, %v1981_v58 }
 0x57a   :  { %v3399_v34 = vpop.f32.mrf.mxu1 }
 0x57b   :  { %vm1956_vm1 = vcmp.ge.f32.partialorder %v1868_v59, 0.0  ;;  %v1982_v60 = vmul.f32 0.2, %v1868_v59 }
 0x57c   :  { %v1872_v41 = vpop.f32.mrf.mxu1 }
 0x57d   :  { %v2008_v62 = vsel %vm1956_vm1, %v1868_v59, %v1982_v60  ;;  %v1873_v17 = vadd.f32 %v4514_v24, %v1872_v41 }
 0x57e   :  { %v2031_v16 = vpack.c.bf16 %v2008_v62, %v2007_v42  ;;  %v3402_v63 = vpop.f32.mrf.mxu1 }
 0x57f   :  { %v1983_v3 = vmul.f32 0.2, %v1873_v17  ;;  %vm1957_vm2 = vcmp.ge.f32.partialorder %v1873_v17, 0.0 }
 0x580   :  { %v1875_v40 = vpop.f32.mrf.mxu1  ;;  %3465 = vmatmul.mubr.bf16.gmra.mxu0 %v2031_v16 }
 0x581   :  { %v1876_v47 = vadd.f32 %v4514_v24, %v1875_v40  ;;  %3468 = vmatprep.mubr.msk.bf16.mxu0 %vm3720_vm0, %v3719_v6  ;;  %v2009_v7 = vsel %vm1957_vm2, %v1873_v17, %v1983_v3 }
 0x582   :  { %v3403_v0 = vpop.f32.mrf.mxu1 }
 0x583   :  { %vm1958_vm3 = vcmp.ge.f32.partialorder %v1876_v47, 0.0  ;;  %v1984_v4 = vmul.f32 0.2, %v1876_v47 }
 0x584   :  { %v1880_v2 = vpop.f32.mrf.mxu1 }
 0x585   :  { %v2010_v51 = vsel %vm1958_vm3, %v1876_v47, %v1984_v4  ;;  %v1881_v52 = vadd.f32 %v4514_v24, %v1880_v2 }
 0x586   :  { %v2032_v55 = vpack.c.bf16 %v2010_v51, %v2009_v7  ;;  %v3406_v56 = vpop.f32.mrf.mxu1 }
 0x587   :  { %v1985_v12 = vmul.f32 0.2, %v1881_v52  ;;  %vm1959_vm4 = vcmp.ge.f32.partialorder %v1881_v52, 0.0 }
 0x588   :  { %v1883_v8 = vpop.f32.mrf.mxu1  ;;  %3469 = vmatmul.mubr.bf16.gmra.mxu0 %v2032_v55 }
 0x589   :  { %v1884_v22 = vadd.f32 %v4514_v24, %v1883_v8  ;;  %3472 = vmatprep.mubr.msk.bf16.mxu0 %vm3720_vm0, %v3719_v6  ;;  %v2011_v19 = vsel %vm1959_vm4, %v1881_v52, %v1985_v12 }
 0x58a   :  { %v3407_v21 = vpop.f32.mrf.mxu1 }
 0x58b   :  { %vm1960_vm5 = vcmp.ge.f32.partialorder %v1884_v22, 0.0  ;;  %v1986_v15 = vmul.f32 0.2, %v1884_v22 }
 0x58c   :  { %v1888_v18 = vpop.f32.mrf.mxu1 }
 0x58d   :  { %v2012_v20 = vsel %vm1960_vm5, %v1884_v22, %v1986_v15  ;;  %v1889_v61 = vadd.f32 %v4514_v24, %v1888_v18 }
 0x58e   :  { %v2033_v23 = vpack.c.bf16 %v2012_v20, %v2011_v19  ;;  %v3410_v1 = vpop.f32.mrf.mxu1 }
 0x58f   :  { %v1987_v25 = vmul.f32 0.2, %v1889_v61  ;;  %vm1961_vm6 = vcmp.ge.f32.partialorder %v1889_v61, 0.0 }
 0x590   :  { %v1891_v5 = vpop.f32.mrf.mxu1  ;;  %3473 = vmatmul.mubr.bf16.gmra.mxu0 %v2033_v23 }
 0x591   :  { %v1892_v27 = vadd.f32 %v4514_v24, %v1891_v5  ;;  %3476 = vmatprep.mubr.msk.bf16.mxu0 %vm3720_vm0, %v3719_v6  ;;  %v2013_v29 = vsel %vm1961_vm6, %v1889_v61, %v1987_v25 }
 0x592   :  { %v3411_v26 = vpop.f32.mrf.mxu1 }
 0x593   :  { %vm1962_vm7 = vcmp.ge.f32.partialorder %v1892_v27, 0.0  ;;  %v1988_v28 = vmul.f32 0.2, %v1892_v27 }
 0x594   :  { %v1896_v46 = vpop.f32.mrf.mxu1 }
 0x595   :  { %v2014_v30 = vsel %vm1962_vm7, %v1892_v27, %v1988_v28  ;;  %v1897_v33 = vadd.f32 %v4514_v24, %v1896_v46 }
 0x596   :  { %v2034_v10 = vpack.c.bf16 %v2014_v30, %v2013_v29  ;;  %v3414_v9 = vpop.f32.mrf.mxu1 }
 0x597   :  { %v1989_v38 = vmul.f32 0.2, %v1897_v33  ;;  %vm1963_vm8 = vcmp.ge.f32.partialorder %v1897_v33, 0.0 }
 0x598   :  { %v1899_v35 = vpop.f32.mrf.mxu1  ;;  %3477 = vmatmul.mubr.bf16.gmra.mxu0 %v2034_v10 }
 0x599   :  { %v1900_v11 = vadd.f32 %v4514_v24, %v1899_v35  ;;  %3480 = vmatprep.mubr.msk.bf16.mxu0 %vm3720_vm0, %v3719_v6  ;;  %v2015_v43 = vsel %vm1963_vm8, %v1897_v33, %v1989_v38 }
 0x59a   :  { %v3415_v32 = vpop.f32.mrf.mxu1 }
 0x59b   :  { %vm1964_vm9 = vcmp.ge.f32.partialorder %v1900_v11, 0.0  ;;  %v1990_v31 = vmul.f32 0.2, %v1900_v11 }
 0x59c   :  { %v1904_v39 = vpop.f32.mrf.mxu1 }
 0x59d   :  { %v2016_v44 = vsel %vm1964_vm9, %v1900_v11, %v1990_v31  ;;  %v1905_v45 = vadd.f32 %v4514_v24, %v1904_v39 }
 0x59e   :  { %v2035_v48 = vpack.c.bf16 %v2016_v44, %v2015_v43  ;;  %v3418_v49 = vpop.f32.mrf.mxu1 }
 0x59f   :  { %v1991_v13 = vmul.f32 0.2, %v1905_v45  ;;  %vm1965_vm10 = vcmp.ge.f32.partialorder %v1905_v45, 0.0 }
 0x5a0   :  { %v1907_v14 = vpop.f32.mrf.mxu1  ;;  %3481 = vmatmul.mubr.bf16.gmra.mxu0 %v2035_v48 }
 0x5a1   :  { %v1908_v36 = vadd.f32 %v4514_v24, %v1907_v14  ;;  %3484 = vmatprep.mubr.msk.bf16.mxu0 %vm3720_vm0, %v3719_v6  ;;  %v2017_v54 = vsel %vm1965_vm10, %v1905_v45, %v1991_v13  ;;  %v4581_v13 = vld [vmem:[%s4669_s2 + $0x6] ss:$0 sm:$0xff] }
 0x5a2   :  { %v3419_v37 = vpop.f32.mrf.mxu1 }
 0x5a3   :  { %vm1966_vm11 = vcmp.ge.f32.partialorder %v1908_v36, 0.0  ;;  %v1992_v50 = vmul.f32 0.2, %v1908_v36 }
 0x5a4   :  { %v1912_v53 = vpop.f32.mrf.mxu1 }
 0x5a5   :  { %v2018_v57 = vsel %vm1966_vm11, %v1908_v36, %v1992_v50  ;;  %v1913_v58 = vadd.f32 %v4514_v24, %v1912_v53 }
 0x5a6   :  { %v2036_v59 = vpack.c.bf16 %v2018_v57, %v2017_v54  ;;  %v3422_v34 = vpop.f32.mrf.mxu1 }
 0x5a7   :  { %v1993_v41 = vmul.f32 0.2, %v1913_v58  ;;  %vm1967_vm12 = vcmp.ge.f32.partialorder %v1913_v58, 0.0 }
 0x5a8   :  { %v1915_v60 = vpop.f32.mrf.mxu1  ;;  %3485 = vmatmul.mubr.bf16.gmra.mxu0 %v2036_v59 }
 0x5a9   :  { %v1916_v42 = vadd.f32 %v4514_v24, %v1915_v60  ;;  %3488 = vmatprep.mubr.msk.bf16.mxu0 %vm3720_vm0, %v3719_v6  ;;  %v2019_v63 = vsel %vm1967_vm12, %v1913_v58, %v1993_v41 }
 0x5aa   :  { %v3423_v62 = vpop.f32.mrf.mxu1 }
 0x5ab   :  { %vm1968_vm13 = vcmp.ge.f32.partialorder %v1916_v42, 0.0  ;;  %v1994_v17 = vmul.f32 0.2, %v1916_v42 }
 0x5ac   :  { %v1920_v16 = vpop.f32.mrf.mxu1 }
 0x5ad   :  { %v2020_v40 = vsel %vm1968_vm13, %v1916_v42, %v1994_v17  ;;  %v1921_v3 = vadd.f32 %v4514_v24, %v1920_v16 }
 0x5ae   :  { %v2037_v47 = vpack.c.bf16 %v2020_v40, %v2019_v63  ;;  %v3426_v0 = vpop.f32.mrf.mxu1 }
 0x5af   :  { %v1995_v2 = vmul.f32 0.2, %v1921_v3  ;;  %vm1969_vm14 = vcmp.ge.f32.partialorder %v1921_v3, 0.0 }
 0x5b0   :  { %v1923_v4 = vpop.f32.mrf.mxu1  ;;  %3489 = vmatmul.mubr.bf16.gmra.mxu0 %v2037_v47 }
 0x5b1   :  { %v1924_v7 = vadd.f32 %v4514_v24, %v1923_v4  ;;  %3492 = vmatprep.mubr.msk.bf16.mxu0 %vm3720_vm0, %v3719_v6  ;;  %v2021_v56 = vsel %vm1969_vm14, %v1921_v3, %v1995_v2 }
 0x5b2   :  { %v3427_v51 = vpop.f32.mrf.mxu1 }
 0x5b3   :  { %vm1970_vm15 = vcmp.ge.f32.partialorder %v1924_v7, 0.0  ;;  %v1996_v52 = vmul.f32 0.2, %v1924_v7 }
 0x5b4   :  { %v1928_v55 = vpop.f32.mrf.mxu1 }
 0x5b5   :  { %v2022_v8 = vsel %vm1970_vm15, %v1924_v7, %v1996_v52  ;;  %v1929_v12 = vadd.f32 %v4514_v24, %v1928_v55 }
 0x5b6   :  { %v2038_v22 = vpack.c.bf16 %v2022_v8, %v2021_v56  ;;  %v3430_v21 = vpop.f32.mrf.mxu1 }
 0x5b7   :  { %v1997_v18 = vmul.f32 0.2, %v1929_v12  ;;  %vm1971_vm1 = vcmp.ge.f32.partialorder %v1929_v12, 0.0 }
 0x5b8   :  { %v1931_v15 = vpop.f32.mrf.mxu1  ;;  %3493 = vmatmul.mubr.bf16.gmra.mxu0 %v2038_v22 }
 0x5b9   :  { %v1932_v19 = vadd.f32 %v4514_v24, %v1931_v15  ;;  %3496 = vmatprep.mubr.msk.bf16.mxu0 %vm3720_vm0, %v3719_v6  ;;  %v2023_v1 = vsel %vm1971_vm1, %v1929_v12, %v1997_v18 }
 0x5ba   :  { %v3431_v20 = vpop.f32.mrf.mxu1 }
 0x5bb   :  { %vm1972_vm2 = vcmp.ge.f32.partialorder %v1932_v19, 0.0  ;;  %v1998_v61 = vmul.f32 0.2, %v1932_v19 }
 0x5bc   :  { %v1936_v23 = vpop.f32.mrf.mxu1 }
 0x5bd   :  { %v2024_v5 = vsel %vm1972_vm2, %v1932_v19, %v1998_v61  ;;  %v1937_v25 = vadd.f32 %v4514_v24, %v1936_v23 }
 0x5be   :  { %v2039_v27 = vpack.c.bf16 %v2024_v5, %v2023_v1  ;;  %v3434_v26 = vpop.f32.mrf.mxu1 }
 0x5bf   :  { %v1999_v46 = vmul.f32 0.2, %v1937_v25  ;;  %vm1973_vm3 = vcmp.ge.f32.partialorder %v1937_v25, 0.0 }
 0x5c0   :  { %v1939_v28 = vpop.f32.mrf.mxu1  ;;  %3497 = vmatmul.mubr.bf16.gmra.mxu0 %v2039_v27 }
 0x5c1   :  { %v1940_v29 = vadd.f32 %v4514_v24, %v1939_v28  ;;  %3500 = vmatprep.mubr.msk.bf16.mxu0 %vm3720_vm0, %v3719_v6  ;;  %v2025_v9 = vsel %vm1973_vm3, %v1937_v25, %v1999_v46 }
 0x5c2   :  { %v3435_v30 = vpop.f32.mrf.mxu1 }
 0x5c3   :  { %vm1974_vm4 = vcmp.ge.f32.partialorder %v1940_v29, 0.0  ;;  %v2000_v33 = vmul.f32 0.2, %v1940_v29 }
 0x5c4   :  { %v1944_v10 = vpop.f32.mrf.mxu1 }
 0x5c5   :  { %v2026_v35 = vsel %vm1974_vm4, %v1940_v29, %v2000_v33  ;;  %v1945_v38 = vadd.f32 %v4514_v24, %v1944_v10 }
 0x5c6   :  { %v2040_v11 = vpack.c.bf16 %v2026_v35, %v2025_v9  ;;  %v3438_v32 = vpop.f32.mrf.mxu1 }
 0x5c7   :  { %v2001_v39 = vmul.f32 0.2, %v1945_v38  ;;  %vm1975_vm5 = vcmp.ge.f32.partialorder %v1945_v38, 0.0 }
 0x5c8   :  { %v1947_v31 = vpop.f32.mrf.mxu1  ;;  %3501 = vmatmul.mubr.bf16.gmra.mxu0 %v2040_v11 }
 0x5c9   :  { %v1948_v43 = vadd.f32 %v4514_v24, %v1947_v31  ;;  %3504 = vmatprep.mubr.msk.bf16.mxu0 %vm3720_vm0, %v3719_v6  ;;  %v2027_v48 = vsel %vm1975_vm5, %v1945_v38, %v2001_v39 }
 0x5ca   :  { %v3439_v44 = vpop.f32.mrf.mxu1 }
 0x5cb   :  { %vm1976_vm6 = vcmp.ge.f32.partialorder %v1948_v43, 0.0  ;;  %v2002_v45 = vmul.f32 0.2, %v1948_v43 }
 0x5cd   :  { %v2028_v49 = vsel %vm1976_vm6, %v1948_v43, %v2002_v45 }
 0x5ce   :  { %v2041_v14 = vpack.c.bf16 %v2028_v49, %v2027_v48 }
 0x5d0   :  { %3505 = vmatmul.mubr.bf16.gmra.mxu0 %v2041_v14 }
 0x630   :  { %v2149_v36 = vpop.f32.mrf.mxu0 }
 0x631   :  { %v2150_v37 = vadd.f32 %v4581_v13, %v2149_v36 }
 0x632   :  { %v3458_v24 = vpop.f32.mrf.mxu0 }
 0x633   :  { %v2278_v53 = vmul.f32 0.2, %v2150_v37  ;;  %vm2252_vm7 = vcmp.ge.f32.partialorder %v2150_v37, 0.0 }
 0x634   :  { %v2152_v50 = vpop.f32.mrf.mxu0 }
 0x635   :  { %v2153_v54 = vadd.f32 %v4581_v13, %v2152_v50  ;;  %v2304_v34 = vsel %vm2252_vm7, %v2150_v37, %v2278_v53 }
 0x636   :  { %v3459_v57 = vpop.f32.mrf.mxu0 }
 0x637   :  { %vm2253_vm8 = vcmp.ge.f32.partialorder %v2153_v54, 0.0  ;;  %v2279_v58 = vmul.f32 0.2, %v2153_v54 }
 0x638   :  { %v2157_v59 = vpop.f32.mrf.mxu0 }
 0x639   :  { %v2305_v60 = vsel %vm2253_vm8, %v2153_v54, %v2279_v58  ;;  %v2158_v41 = vadd.f32 %v4581_v13, %v2157_v59 }
 0x63a   :  { %v2330_v42 = vpack.c.bf16 %v2305_v60, %v2304_v34  ;;  %v3462_v62 = vpop.f32.mrf.mxu0 }
 0x63b   :  { %v2280_v16 = vmul.f32 0.2, %v2158_v41  ;;  %vm2254_vm9 = vcmp.ge.f32.partialorder %v2158_v41, 0.0 }
 0x63c   :  { %v2160_v17 = vpop.f32.mrf.mxu0  ;;  %3525 = vmatmul.mubr.bf16.vlgmr.msra.gmra.mxu1 %v2330_v42 }
 0x63d   :  { %v2161_v63 = vadd.f32 %v4581_v13, %v2160_v17  ;;  %3528 = vmatprep.mubr.msk.bf16.mxu1 %vm3720_vm0, %v3719_v6  ;;  %v2306_v0 = vsel %vm2254_vm9, %v2158_v41, %v2280_v16 }
 0x63e   :  { %v3463_v40 = vpop.f32.mrf.mxu0 }
 0x63f   :  { %vm2255_vm10 = vcmp.ge.f32.partialorder %v2161_v63, 0.0  ;;  %v2281_v3 = vmul.f32 0.2, %v2161_v63 }
 0x640   :  { %v2165_v47 = vpop.f32.mrf.mxu0 }
 0x641   :  { %v2307_v4 = vsel %vm2255_vm10, %v2161_v63, %v2281_v3  ;;  %v2166_v2 = vadd.f32 %v4581_v13, %v2165_v47 }
 0x642   :  { %v2331_v7 = vpack.c.bf16 %v2307_v4, %v2306_v0  ;;  %v3466_v51 = vpop.f32.mrf.mxu0 }
 0x643   :  { %v2282_v55 = vmul.f32 0.2, %v2166_v2  ;;  %vm2256_vm11 = vcmp.ge.f32.partialorder %v2166_v2, 0.0 }
 0x644   :  { %v2168_v52 = vpop.f32.mrf.mxu0  ;;  %3529 = vmatmul.mubr.bf16.gmra.mxu1 %v2331_v7 }
 0x645   :  { %v2169_v56 = vadd.f32 %v4581_v13, %v2168_v52  ;;  %3532 = vmatprep.mubr.msk.bf16.mxu1 %vm3720_vm0, %v3719_v6  ;;  %v2308_v21 = vsel %vm2256_vm11, %v2166_v2, %v2282_v55 }
 0x646   :  { %v3467_v8 = vpop.f32.mrf.mxu0 }
 0x647   :  { %vm2257_vm12 = vcmp.ge.f32.partialorder %v2169_v56, 0.0  ;;  %v2283_v12 = vmul.f32 0.2, %v2169_v56 }
 0x648   :  { %v2173_v22 = vpop.f32.mrf.mxu0 }
 0x649   :  { %v2309_v15 = vsel %vm2257_vm12, %v2169_v56, %v2283_v12  ;;  %v2174_v18 = vadd.f32 %v4581_v13, %v2173_v22 }
 0x64a   :  { %v2332_v19 = vpack.c.bf16 %v2309_v15, %v2308_v21  ;;  %v3470_v20 = vpop.f32.mrf.mxu0 }
 0x64b   :  { %v2284_v23 = vmul.f32 0.2, %v2174_v18  ;;  %vm2258_vm13 = vcmp.ge.f32.partialorder %v2174_v18, 0.0 }
 0x64c   :  { %v2176_v61 = vpop.f32.mrf.mxu0  ;;  %3533 = vmatmul.mubr.bf16.gmra.mxu1 %v2332_v19 }
 0x64d   :  { %v2177_v1 = vadd.f32 %v4581_v13, %v2176_v61  ;;  %3536 = vmatprep.mubr.msk.bf16.mxu1 %vm3720_vm0, %v3719_v6  ;;  %v2310_v26 = vsel %vm2258_vm13, %v2174_v18, %v2284_v23 }
 0x64e   :  { %v3471_v5 = vpop.f32.mrf.mxu0 }
 0x64f   :  { %vm2259_vm14 = vcmp.ge.f32.partialorder %v2177_v1, 0.0  ;;  %v2285_v25 = vmul.f32 0.2, %v2177_v1 }
 0x650   :  { %v2181_v27 = vpop.f32.mrf.mxu0 }
 0x651   :  { %v2311_v28 = vsel %vm2259_vm14, %v2177_v1, %v2285_v25  ;;  %v2182_v46 = vadd.f32 %v4581_v13, %v2181_v27 }
 0x652   :  { %v2333_v29 = vpack.c.bf16 %v2311_v28, %v2310_v26  ;;  %v3474_v30 = vpop.f32.mrf.mxu0 }
 0x653   :  { %v2286_v10 = vmul.f32 0.2, %v2182_v46  ;;  %vm2260_vm15 = vcmp.ge.f32.partialorder %v2182_v46, 0.0 }
 0x654   :  { %v2184_v33 = vpop.f32.mrf.mxu0  ;;  %3537 = vmatmul.mubr.bf16.gmra.mxu1 %v2333_v29 }
 0x655   :  { %v2185_v9 = vadd.f32 %v4581_v13, %v2184_v33  ;;  %3540 = vmatprep.mubr.msk.bf16.mxu1 %vm3720_vm0, %v3719_v6  ;;  %v2312_v32 = vsel %vm2260_vm15, %v2182_v46, %v2286_v10 }
 0x656   :  { %v3475_v35 = vpop.f32.mrf.mxu0 }
 0x657   :  { %vm2261_vm1 = vcmp.ge.f32.partialorder %v2185_v9, 0.0  ;;  %v2287_v38 = vmul.f32 0.2, %v2185_v9 }
 0x658   :  { %v2189_v11 = vpop.f32.mrf.mxu0 }
 0x659   :  { %v2313_v31 = vsel %vm2261_vm1, %v2185_v9, %v2287_v38  ;;  %v2190_v39 = vadd.f32 %v4581_v13, %v2189_v11 }
 0x65a   :  { %v2334_v43 = vpack.c.bf16 %v2313_v31, %v2312_v32  ;;  %v3478_v44 = vpop.f32.mrf.mxu0 }
 0x65b   :  { %v2288_v48 = vmul.f32 0.2, %v2190_v39  ;;  %vm2262_vm2 = vcmp.ge.f32.partialorder %v2190_v39, 0.0 }
 0x65c   :  { %v2192_v45 = vpop.f32.mrf.mxu0  ;;  %3541 = vmatmul.mubr.bf16.gmra.mxu1 %v2334_v43 }
 0x65d   :  { %v2193_v49 = vadd.f32 %v4581_v13, %v2192_v45  ;;  %3544 = vmatprep.mubr.msk.bf16.mxu1 %vm3720_vm0, %v3719_v6  ;;  %v2314_v24 = vsel %vm2262_vm2, %v2190_v39, %v2288_v48 }
 0x65e   :  { %v3479_v14 = vpop.f32.mrf.mxu0 }
 0x65f   :  { %vm2263_vm3 = vcmp.ge.f32.partialorder %v2193_v49, 0.0  ;;  %v2289_v36 = vmul.f32 0.2, %v2193_v49 }
 0x660   :  { %v2197_v37 = vpop.f32.mrf.mxu0 }
 0x661   :  { %v2315_v50 = vsel %vm2263_vm3, %v2193_v49, %v2289_v36  ;;  %v2198_v53 = vadd.f32 %v4581_v13, %v2197_v37 }
 0x662   :  { %v2335_v54 = vpack.c.bf16 %v2315_v50, %v2314_v24  ;;  %v3482_v57 = vpop.f32.mrf.mxu0 }
 0x663   :  { %v2290_v59 = vmul.f32 0.2, %v2198_v53  ;;  %vm2264_vm4 = vcmp.ge.f32.partialorder %v2198_v53, 0.0 }
 0x664   :  { %v2200_v58 = vpop.f32.mrf.mxu0  ;;  %3545 = vmatmul.mubr.bf16.gmra.mxu1 %v2335_v54 }
 0x665   :  { %v2201_v34 = vadd.f32 %v4581_v13, %v2200_v58  ;;  %3548 = vmatprep.mubr.msk.bf16.mxu1 %vm3720_vm0, %v3719_v6  ;;  %v2316_v62 = vsel %vm2264_vm4, %v2198_v53, %v2290_v59 }
 0x666   :  { %v3483_v60 = vpop.f32.mrf.mxu0 }
 0x667   :  { %vm2265_vm5 = vcmp.ge.f32.partialorder %v2201_v34, 0.0  ;;  %v2291_v41 = vmul.f32 0.2, %v2201_v34 }
 0x668   :  { %v2205_v42 = vpop.f32.mrf.mxu0 }
 0x669   :  { %v2317_v17 = vsel %vm2265_vm5, %v2201_v34, %v2291_v41  ;;  %v2206_v16 = vadd.f32 %v4581_v13, %v2205_v42 }
 0x66a   :  { %v2336_v63 = vpack.c.bf16 %v2317_v17, %v2316_v62  ;;  %v3486_v40 = vpop.f32.mrf.mxu0 }
 0x66b   :  { %v2292_v47 = vmul.f32 0.2, %v2206_v16  ;;  %vm2266_vm6 = vcmp.ge.f32.partialorder %v2206_v16, 0.0 }
 0x66c   :  { %v2208_v3 = vpop.f32.mrf.mxu0  ;;  %3549 = vmatmul.mubr.bf16.gmra.mxu1 %v2336_v63 }
 0x66d   :  { %v2209_v0 = vadd.f32 %v4581_v13, %v2208_v3  ;;  %3552 = vmatprep.mubr.msk.bf16.mxu1 %vm3720_vm0, %v3719_v6  ;;  %v2318_v51 = vsel %vm2266_vm6, %v2206_v16, %v2292_v47  ;;  %v4636_v47 = vld [vmem:[%s4669_s2 + $0x7] ss:$0 sm:$0xff]  ;;  %s3721_s2 = smov [#allocation2]  }
 0x66e   :  { %v3487_v4 = vpop.f32.mrf.mxu0  ;;  %s2662_s13 = sshll.u32 %s3721_s2, 4  ;;  %s2663_s13 = int_to_ptr.vmem [resolvable:$true] %s2662_s13 }
 0x66f   :  { %vm2267_vm7 = vcmp.ge.f32.partialorder %v2209_v0, 0.0  ;;  %v2293_v2 = vmul.f32 0.2, %v2209_v0  ;;  %s3697_s14 = scalar_lea.vmem %s2663_s13, 3328  ;;  %p3702_p1 = scmp.lt.s32.totalorder %s2663_s13, %s2663_s13 }
 0x670   :  { %v2213_v7 = vpop.f32.mrf.mxu0  ;;  %p3698_p0 = scmp.ne.s32.totalorder %s2663_s13, %s3697_s14  ;;  %p3703_p2 = scmp.lt.s32.totalorder %s3697_s14, %s3697_s14 }
 0x671   :  { %v2319_v52 = vsel %vm2267_vm7, %v2209_v0, %v2293_v2  ;;  %v2214_v55 = vadd.f32 %v4581_v13, %v2213_v7 }
 0x672   :  { %v2337_v56 = vpack.c.bf16 %v2319_v52, %v2318_v51  ;;  %v3490_v8 = vpop.f32.mrf.mxu0  ;;  %p3704_p3 = por %p3703_p2, %p3702_p1 }
 0x673   :  { %v2294_v22 = vmul.f32 0.2, %v2214_v55  ;;  %vm2268_vm8 = vcmp.ge.f32.partialorder %v2214_v55, 0.0 }
 0x674   :  { %v2216_v12 = vpop.f32.mrf.mxu0  ;;  %3553 = vmatmul.mubr.bf16.gmra.mxu1 %v2337_v56  ;;  %p3705_p4 = pnand %p3704_p3, %p3698_p0 }
 0x675   :  { %v2217_v21 = vadd.f32 %v4581_v13, %v2216_v12  ;;  %3556 = vmatprep.mubr.msk.bf16.mxu1 %vm3720_vm0, %v3719_v6  ;;  %v2320_v20 = vsel %vm2268_vm8, %v2214_v55, %v2294_v22 }
 0x676   :  { %v3491_v15 = vpop.f32.mrf.mxu0 }
 0x677   :  { %vm2269_vm9 = vcmp.ge.f32.partialorder %v2217_v21, 0.0  ;;  %v2295_v18 = vmul.f32 0.2, %v2217_v21 }
 0x678   :  { %v2221_v19 = vpop.f32.mrf.mxu0 }
 0x679   :  { %v2321_v61 = vsel %vm2269_vm9, %v2217_v21, %v2295_v18  ;;  %v2222_v23 = vadd.f32 %v4581_v13, %v2221_v19 }
 0x67a   :  { %v2338_v1 = vpack.c.bf16 %v2321_v61, %v2320_v20  ;;  %v3494_v5 = vpop.f32.mrf.mxu0 }
 0x67b   :  { %v2296_v27 = vmul.f32 0.2, %v2222_v23  ;;  %vm2270_vm10 = vcmp.ge.f32.partialorder %v2222_v23, 0.0 }
 0x67c   :  { %v2224_v25 = vpop.f32.mrf.mxu0  ;;  %3557 = vmatmul.mubr.bf16.gmra.mxu1 %v2338_v1 }
 0x67d   :  { %v2225_v26 = vadd.f32 %v4581_v13, %v2224_v25  ;;  %3560 = vmatprep.mubr.msk.bf16.mxu1 %vm3720_vm0, %v3719_v6  ;;  %v2322_v30 = vsel %vm2270_vm10, %v2222_v23, %v2296_v27 }
 0x67e   :  { %v3495_v28 = vpop.f32.mrf.mxu0 }
 0x67f   :  { %vm2271_vm11 = vcmp.ge.f32.partialorder %v2225_v26, 0.0  ;;  %v2297_v46 = vmul.f32 0.2, %v2225_v26 }
 0x680   :  { %v2229_v29 = vpop.f32.mrf.mxu0 }
 0x681   :  { %v2323_v33 = vsel %vm2271_vm11, %v2225_v26, %v2297_v46  ;;  %v2230_v10 = vadd.f32 %v4581_v13, %v2229_v29 }
 0x682   :  { %v2339_v9 = vpack.c.bf16 %v2323_v33, %v2322_v30  ;;  %v3498_v35 = vpop.f32.mrf.mxu0 }
 0x683   :  { %v2298_v11 = vmul.f32 0.2, %v2230_v10  ;;  %vm2272_vm12 = vcmp.ge.f32.partialorder %v2230_v10, 0.0 }
 0x684   :  { %v2232_v38 = vpop.f32.mrf.mxu0  ;;  %3561 = vmatmul.mubr.bf16.gmra.mxu1 %v2339_v9 }
 0x685   :  { %v2233_v32 = vadd.f32 %v4581_v13, %v2232_v38  ;;  %3564 = vmatprep.mubr.msk.bf16.mxu1 %vm3720_vm0, %v3719_v6  ;;  %v2324_v44 = vsel %vm2272_vm12, %v2230_v10, %v2298_v11 }
 0x686   :  { %v3499_v31 = vpop.f32.mrf.mxu0 }
 0x687   :  { %vm2273_vm13 = vcmp.ge.f32.partialorder %v2233_v32, 0.0  ;;  %v2299_v39 = vmul.f32 0.2, %v2233_v32 }
 0x688   :  { %v2237_v43 = vpop.f32.mrf.mxu0 }
 0x689   :  { %v2325_v45 = vsel %vm2273_vm13, %v2233_v32, %v2299_v39  ;;  %v2238_v48 = vadd.f32 %v4581_v13, %v2237_v43 }
 0x68a   :  { %v2340_v49 = vpack.c.bf16 %v2325_v45, %v2324_v44  ;;  %v3502_v14 = vpop.f32.mrf.mxu0 }
 0x68b   :  { %v2300_v37 = vmul.f32 0.2, %v2238_v48  ;;  %vm2274_vm14 = vcmp.ge.f32.partialorder %v2238_v48, 0.0 }
 0x68c   :  { %v2240_v36 = vpop.f32.mrf.mxu0  ;;  %3565 = vmatmul.mubr.bf16.gmra.mxu1 %v2340_v49 }
 0x68d   :  { %v2241_v24 = vadd.f32 %v4581_v13, %v2240_v36  ;;  %3568 = vmatprep.mubr.msk.bf16.mxu1 %vm3720_vm0, %v3719_v6  ;;  %v2326_v57 = vsel %vm2274_vm14, %v2238_v48, %v2300_v37 }
 0x68e   :  { %v3503_v50 = vpop.f32.mrf.mxu0 }
 0x68f   :  { %vm2275_vm15 = vcmp.ge.f32.partialorder %v2241_v24, 0.0  ;;  %v2301_v53 = vmul.f32 0.2, %v2241_v24 }
 0x690   :  { %v2245_v54 = vpop.f32.mrf.mxu0 }
 0x691   :  { %v2327_v58 = vsel %vm2275_vm15, %v2241_v24, %v2301_v53  ;;  %v2246_v59 = vadd.f32 %v4581_v13, %v2245_v54 }
 0x692   :  { %v2341_v34 = vpack.c.bf16 %v2327_v58, %v2326_v57  ;;  %v3506_v60 = vpop.f32.mrf.mxu0 }
 0x693   :  { %v2302_v42 = vmul.f32 0.2, %v2246_v59  ;;  %vm2276_vm1 = vcmp.ge.f32.partialorder %v2246_v59, 0.0 }
 0x694   :  { %v2248_v41 = vpop.f32.mrf.mxu0  ;;  %3569 = vmatmul.mubr.bf16.gmra.mxu1 %v2341_v34 }
 0x695   :  { %v2249_v62 = vadd.f32 %v4581_v13, %v2248_v41  ;;  %3572 = vmatprep.mubr.msk.bf16.mxu1 %vm3720_vm0, %v3719_v6  ;;  %v2328_v63 = vsel %vm2276_vm1, %v2246_v59, %v2302_v42 }
 0x696   :  { %v3507_v17 = vpop.f32.mrf.mxu0 }
 0x697   :  { %vm2277_vm2 = vcmp.ge.f32.partialorder %v2249_v62, 0.0  ;;  %v2303_v16 = vmul.f32 0.2, %v2249_v62 }
 0x699   :  { %v2329_v40 = vsel %vm2277_vm2, %v2249_v62, %v2303_v16 }
 0x69a   :  { %v2342_v3 = vpack.c.bf16 %v2329_v40, %v2328_v63 }
 0x69c   :  { %3573 = vmatmul.mubr.bf16.gmra.mxu1 %v2342_v3 }
 0x6fc   :  { %v2450_v0 = vpop.f32.mrf.mxu1 }
 0x6fd   :  { %v2451_v4 = vadd.f32 %v4636_v47, %v2450_v0 }
 0x6fe   :  { %v3526_v13 = vpop.f32.mrf.mxu1 }
 0x6ff   :  { %vm2553_vm3 = vcmp.ge.f32.partialorder %v2451_v4, 0.0  ;;  %v2579_v2 = vmul.f32 0.2, %v2451_v4 }
 0x700   :  { %v2453_v6 = vpop.f32.mrf.mxu1 }
 0x701   :  { %v2605_v7 = vsel %vm2553_vm3, %v2451_v4, %v2579_v2  ;;  %v2454_v51 = vadd.f32 %v4636_v47, %v2453_v6 }
 0x702   :  { %2631 = vst [vmem:[#allocation2] sm:$0xff] %v2605_v7  ;;  %v3527_v52 = vpop.f32.mrf.mxu1 }
 0x703   :  { %vm2554_vm0 = vcmp.ge.f32.partialorder %v2454_v51, 0.0  ;;  %v2580_v55 = vmul.f32 0.2, %v2454_v51 }
 0x704   :  { %v2458_v56 = vpop.f32.mrf.mxu1 }
 0x705   :  { %v2606_v8 = vsel %vm2554_vm0, %v2454_v51, %v2580_v55  ;;  %v2459_v12 = vadd.f32 %v4636_v47, %v2458_v56 }
 0x706   :  { %2632 = vst [vmem:[#allocation2 + $0x8] sm:$0xff] %v2606_v8  ;;  %v3530_v22 = vpop.f32.mrf.mxu1 }
 0x707   :  { %vm2555_vm4 = vcmp.ge.f32.partialorder %v2459_v12, 0.0  ;;  %v2581_v21 = vmul.f32 0.2, %v2459_v12 }
 0x708   :  { %v2461_v15 = vpop.f32.mrf.mxu1 }
 0x709   :  { %v2607_v18 = vsel %vm2555_vm4, %v2459_v12, %v2581_v21  ;;  %v2462_v19 = vadd.f32 %v4636_v47, %v2461_v15 }
 0x70a   :  { %2633 = vst [vmem:[#allocation2 + $0x10] sm:$0xff] %v2607_v18  ;;  %v3531_v20 = vpop.f32.mrf.mxu1 }
 0x70b   :  { %vm2556_vm5 = vcmp.ge.f32.partialorder %v2462_v19, 0.0  ;;  %v2582_v61 = vmul.f32 0.2, %v2462_v19 }
 0x70c   :  { %v2466_v23 = vpop.f32.mrf.mxu1 }
 0x70d   :  { %v2608_v1 = vsel %vm2556_vm5, %v2462_v19, %v2582_v61  ;;  %v2467_v5 = vadd.f32 %v4636_v47, %v2466_v23 }
 0x70e   :  { %2634 = vst [vmem:[#allocation2 + $0x18] sm:$0xff] %v2608_v1  ;;  %v3534_v25 = vpop.f32.mrf.mxu1 }
 0x70f   :  { %vm2557_vm6 = vcmp.ge.f32.partialorder %v2467_v5, 0.0  ;;  %v2583_v27 = vmul.f32 0.2, %v2467_v5 }
 0x710   :  { %v2469_v26 = vpop.f32.mrf.mxu1 }
 0x711   :  { %v2609_v28 = vsel %vm2557_vm6, %v2467_v5, %v2583_v27  ;;  %v2470_v46 = vadd.f32 %v4636_v47, %v2469_v26 }
 0x712   :  { %2635 = vst [vmem:[#allocation2 + $0x20] sm:$0xff] %v2609_v28  ;;  %v3535_v29 = vpop.f32.mrf.mxu1 }
 0x713   :  { %vm2558_vm7 = vcmp.ge.f32.partialorder %v2470_v46, 0.0  ;;  %v2584_v30 = vmul.f32 0.2, %v2470_v46 }
 0x714   :  { %v2474_v33 = vpop.f32.mrf.mxu1 }
 0x715   :  { %v2610_v10 = vsel %vm2558_vm7, %v2470_v46, %v2584_v30  ;;  %v2475_v9 = vadd.f32 %v4636_v47, %v2474_v33 }
 0x716   :  { %2636 = vst [vmem:[#allocation2 + $0x28] sm:$0xff] %v2610_v10  ;;  %v3538_v35 = vpop.f32.mrf.mxu1 }
 0x717   :  { %vm2559_vm8 = vcmp.ge.f32.partialorder %v2475_v9, 0.0  ;;  %v2585_v38 = vmul.f32 0.2, %v2475_v9 }
 0x718   :  { %v2477_v11 = vpop.f32.mrf.mxu1 }
 0x719   :  { %v2611_v32 = vsel %vm2559_vm8, %v2475_v9, %v2585_v38  ;;  %v2478_v31 = vadd.f32 %v4636_v47, %v2477_v11 }
 0x71a   :  { %2637 = vst [vmem:[#allocation2 + $0x30] sm:$0xff] %v2611_v32  ;;  %v3539_v39 = vpop.f32.mrf.mxu1 }
 0x71b   :  { %vm2560_vm9 = vcmp.ge.f32.partialorder %v2478_v31, 0.0  ;;  %v2586_v43 = vmul.f32 0.2, %v2478_v31 }
 0x71c   :  { %v2482_v44 = vpop.f32.mrf.mxu1 }
 0x71d   :  { %v2612_v45 = vsel %vm2560_vm9, %v2478_v31, %v2586_v43  ;;  %v2483_v48 = vadd.f32 %v4636_v47, %v2482_v44 }
 0x71e   :  { %2638 = vst [vmem:[#allocation2 + $0x38] sm:$0xff] %v2612_v45  ;;  %v3542_v49 = vpop.f32.mrf.mxu1 }
 0x71f   :  { %vm2561_vm10 = vcmp.ge.f32.partialorder %v2483_v48, 0.0  ;;  %v2587_v14 = vmul.f32 0.2, %v2483_v48 }
 0x720   :  { %v2485_v36 = vpop.f32.mrf.mxu1 }
 0x721   :  { %v2613_v37 = vsel %vm2561_vm10, %v2483_v48, %v2587_v14  ;;  %v2486_v24 = vadd.f32 %v4636_v47, %v2485_v36 }
 0x722   :  { %2639 = vst [vmem:[#allocation2 + $0x40] sm:$0xff] %v2613_v37  ;;  %v3543_v50 = vpop.f32.mrf.mxu1 }
 0x723   :  { %vm2562_vm11 = vcmp.ge.f32.partialorder %v2486_v24, 0.0  ;;  %v2588_v53 = vmul.f32 0.2, %v2486_v24 }
 0x724   :  { %v2490_v54 = vpop.f32.mrf.mxu1 }
 0x725   :  { %v2614_v57 = vsel %vm2562_vm11, %v2486_v24, %v2588_v53  ;;  %v2491_v58 = vadd.f32 %v4636_v47, %v2490_v54 }
 0x726   :  { %2640 = vst [vmem:[#allocation2 + $0x48] sm:$0xff] %v2614_v57  ;;  %v3546_v59 = vpop.f32.mrf.mxu1 }
 0x727   :  { %vm2563_vm12 = vcmp.ge.f32.partialorder %v2491_v58, 0.0  ;;  %v2589_v34 = vmul.f32 0.2, %v2491_v58 }
 0x728   :  { %v2493_v60 = vpop.f32.mrf.mxu1 }
 0x729   :  { %v2615_v41 = vsel %vm2563_vm12, %v2491_v58, %v2589_v34  ;;  %v2494_v42 = vadd.f32 %v4636_v47, %v2493_v60 }
 0x72a   :  { %2641 = vst [vmem:[#allocation2 + $0x50] sm:$0xff] %v2615_v41  ;;  %v3547_v62 = vpop.f32.mrf.mxu1 }
 0x72b   :  { %vm2564_vm13 = vcmp.ge.f32.partialorder %v2494_v42, 0.0  ;;  %v2590_v17 = vmul.f32 0.2, %v2494_v42 }
 0x72c   :  { %v2498_v16 = vpop.f32.mrf.mxu1 }
 0x72d   :  { %v2616_v63 = vsel %vm2564_vm13, %v2494_v42, %v2590_v17  ;;  %v2499_v40 = vadd.f32 %v4636_v47, %v2498_v16 }
 0x72e   :  { %2642 = vst [vmem:[#allocation2 + $0x58] sm:$0xff] %v2616_v63  ;;  %v3550_v3 = vpop.f32.mrf.mxu1 }
 0x72f   :  { %vm2565_vm14 = vcmp.ge.f32.partialorder %v2499_v40, 0.0  ;;  %v2591_v0 = vmul.f32 0.2, %v2499_v40 }
 0x730   :  { %v2501_v4 = vpop.f32.mrf.mxu1 }
 0x731   :  { %v2617_v13 = vsel %vm2565_vm14, %v2499_v40, %v2591_v0  ;;  %v2502_v2 = vadd.f32 %v4636_v47, %v2501_v4 }
 0x732   :  { %2643 = vst [vmem:[#allocation2 + $0x60] sm:$0xff] %v2617_v13  ;;  %v3551_v6 = vpop.f32.mrf.mxu1 }
 0x733   :  { %vm2566_vm15 = vcmp.ge.f32.partialorder %v2502_v2, 0.0  ;;  %v2592_v7 = vmul.f32 0.2, %v2502_v2 }
 0x734   :  { %v2506_v51 = vpop.f32.mrf.mxu1 }
 0x735   :  { %v2618_v52 = vsel %vm2566_vm15, %v2502_v2, %v2592_v7  ;;  %v2507_v55 = vadd.f32 %v4636_v47, %v2506_v51 }
 0x736   :  { %2644 = vst [vmem:[#allocation2 + $0x68] sm:$0xff] %v2618_v52  ;;  %v3554_v56 = vpop.f32.mrf.mxu1 }
 0x737   :  { %vm2567_vm1 = vcmp.ge.f32.partialorder %v2507_v55, 0.0  ;;  %v2593_v8 = vmul.f32 0.2, %v2507_v55 }
 0x738   :  { %v2509_v12 = vpop.f32.mrf.mxu1 }
 0x739   :  { %v2619_v22 = vsel %vm2567_vm1, %v2507_v55, %v2593_v8  ;;  %v2510_v21 = vadd.f32 %v4636_v47, %v2509_v12 }
 0x73a   :  { %2645 = vst [vmem:[#allocation2 + $0x70] sm:$0xff] %v2619_v22  ;;  %v3555_v15 = vpop.f32.mrf.mxu1 }
 0x73b   :  { %vm2568_vm2 = vcmp.ge.f32.partialorder %v2510_v21, 0.0  ;;  %v2594_v18 = vmul.f32 0.2, %v2510_v21 }
 0x73c   :  { %v2514_v19 = vpop.f32.mrf.mxu1 }
 0x73d   :  { %v2620_v20 = vsel %vm2568_vm2, %v2510_v21, %v2594_v18  ;;  %v2515_v61 = vadd.f32 %v4636_v47, %v2514_v19 }
 0x73e   :  { %2646 = vst [vmem:[#allocation2 + $0x78] sm:$0xff] %v2620_v20  ;;  %v3558_v23 = vpop.f32.mrf.mxu1 }
 0x73f   :  { %vm2569_vm3 = vcmp.ge.f32.partialorder %v2515_v61, 0.0  ;;  %v2595_v1 = vmul.f32 0.2, %v2515_v61 }
 0x740   :  { %v2517_v5 = vpop.f32.mrf.mxu1 }
 0x741   :  { %v2621_v25 = vsel %vm2569_vm3, %v2515_v61, %v2595_v1  ;;  %v2518_v27 = vadd.f32 %v4636_v47, %v2517_v5 }
 0x742   :  { %2647 = vst [vmem:[#allocation2 + $0x80] sm:$0xff] %v2621_v25  ;;  %v3559_v26 = vpop.f32.mrf.mxu1 }
 0x743   :  { %vm2570_vm0 = vcmp.ge.f32.partialorder %v2518_v27, 0.0  ;;  %v2596_v28 = vmul.f32 0.2, %v2518_v27 }
 0x744   :  { %v2522_v46 = vpop.f32.mrf.mxu1 }
 0x745   :  { %v2622_v29 = vsel %vm2570_vm0, %v2518_v27, %v2596_v28  ;;  %v2523_v30 = vadd.f32 %v4636_v47, %v2522_v46 }
 0x746   :  { %2648 = vst [vmem:[#allocation2 + $0x88] sm:$0xff] %v2622_v29  ;;  %v3562_v33 = vpop.f32.mrf.mxu1 }
 0x747   :  { %vm2571_vm4 = vcmp.ge.f32.partialorder %v2523_v30, 0.0  ;;  %v2597_v10 = vmul.f32 0.2, %v2523_v30 }
 0x748   :  { %v2525_v9 = vpop.f32.mrf.mxu1 }
 0x749   :  { %v2623_v35 = vsel %vm2571_vm4, %v2523_v30, %v2597_v10  ;;  %v2526_v38 = vadd.f32 %v4636_v47, %v2525_v9 }
 0x74a   :  { %2649 = vst [vmem:[#allocation2 + $0x90] sm:$0xff] %v2623_v35  ;;  %v3563_v11 = vpop.f32.mrf.mxu1 }
 0x74b   :  { %vm2572_vm5 = vcmp.ge.f32.partialorder %v2526_v38, 0.0  ;;  %v2598_v32 = vmul.f32 0.2, %v2526_v38 }
 0x74c   :  { %v2530_v31 = vpop.f32.mrf.mxu1 }
 0x74d   :  { %v2624_v39 = vsel %vm2572_vm5, %v2526_v38, %v2598_v32  ;;  %v2531_v43 = vadd.f32 %v4636_v47, %v2530_v31 }
 0x74e   :  { %2650 = vst [vmem:[#allocation2 + $0x98] sm:$0xff] %v2624_v39  ;;  %v3566_v44 = vpop.f32.mrf.mxu1 }
 0x74f   :  { %vm2573_vm6 = vcmp.ge.f32.partialorder %v2531_v43, 0.0  ;;  %v2599_v45 = vmul.f32 0.2, %v2531_v43 }
 0x750   :  { %v2533_v48 = vpop.f32.mrf.mxu1 }
 0x751   :  { %v2625_v49 = vsel %vm2573_vm6, %v2531_v43, %v2599_v45  ;;  %v2534_v14 = vadd.f32 %v4636_v47, %v2533_v48 }
 0x752   :  { %2651 = vst [vmem:[#allocation2 + $0xa0] sm:$0xff] %v2625_v49  ;;  %v3567_v36 = vpop.f32.mrf.mxu1 }
 0x753   :  { %vm2574_vm7 = vcmp.ge.f32.partialorder %v2534_v14, 0.0  ;;  %v2600_v37 = vmul.f32 0.2, %v2534_v14 }
 0x754   :  { %v2538_v24 = vpop.f32.mrf.mxu1 }
 0x755   :  { %v2626_v50 = vsel %vm2574_vm7, %v2534_v14, %v2600_v37  ;;  %v2539_v53 = vadd.f32 %v4636_v47, %v2538_v24 }
 0x756   :  { %2652 = vst [vmem:[#allocation2 + $0xa8] sm:$0xff] %v2626_v50  ;;  %v3570_v54 = vpop.f32.mrf.mxu1 }
 0x757   :  { %vm2575_vm8 = vcmp.ge.f32.partialorder %v2539_v53, 0.0  ;;  %v2601_v57 = vmul.f32 0.2, %v2539_v53 }
 0x758   :  { %v2541_v58 = vpop.f32.mrf.mxu1 }
 0x759   :  { %v2627_v59 = vsel %vm2575_vm8, %v2539_v53, %v2601_v57  ;;  %v2542_v34 = vadd.f32 %v4636_v47, %v2541_v58 }
 0x75a   :  { %2653 = vst [vmem:[#allocation2 + $0xb0] sm:$0xff] %v2627_v59  ;;  %v3571_v60 = vpop.f32.mrf.mxu1 }
 0x75b   :  { %vm2576_vm9 = vcmp.ge.f32.partialorder %v2542_v34, 0.0  ;;  %v2602_v41 = vmul.f32 0.2, %v2542_v34 }
 0x75c   :  { %v2546_v42 = vpop.f32.mrf.mxu1 }
 0x75d   :  { %v2628_v62 = vsel %vm2576_vm9, %v2542_v34, %v2602_v41  ;;  %v2547_v17 = vadd.f32 %v4636_v47, %v2546_v42 }
 0x75e   :  { %2654 = vst [vmem:[#allocation2 + $0xb8] sm:$0xff] %v2628_v62  ;;  %v3574_v16 = vpop.f32.mrf.mxu1 }
 0x75f   :  { %vm2577_vm10 = vcmp.ge.f32.partialorder %v2547_v17, 0.0  ;;  %v2603_v63 = vmul.f32 0.2, %v2547_v17 }
 0x760   :  { %v2549_v40 = vpop.f32.mrf.mxu1 }
 0x761   :  { %v2629_v3 = vsel %vm2577_vm10, %v2547_v17, %v2603_v63  ;;  %v2550_v0 = vadd.f32 %v4636_v47, %v2549_v40 }
 0x762   :  { %2655 = vst [vmem:[#allocation2 + $0xc0] sm:$0xff] %v2629_v3  ;;  %v3575_v4 = vpop.f32.mrf.mxu1 }
 0x763   :  { %vm2578_vm11 = vcmp.ge.f32.partialorder %v2550_v0, 0.0  ;;  %v2604_v13 = vmul.f32 0.2, %v2550_v0 }
 0x765   :  { %v2630_v2 = vsel %vm2578_vm11, %v2550_v0, %v2604_v13 }
 0x766   :  { %2656 = vst [vmem:[#allocation2 + $0xc8] sm:$0xff] %v2630_v2 }
 0x767   :  { %3708 = shalt.err (!%p3705_p4)
}
 0x768   :  { %s3722_s15 = smov 128   ;;  %s3723_s16 = smov 8  }
 0x769   :  { %2668 = dma.vmem_to_hbm [thread:$0]  %s2663_s13, 3328, %s4670_s3, [#allocation3], %s3722_s15, %s3722_s15, %s3723_s16  }
 0x76a   :  { %3717 = dma.done.wait [#allocation3], 3328  }
 0x76b   :  { %3718 = vsyncadd [#allocation3], 4294963968 }
 0x76c   :  { %2672 = vsyncpa [#allocation3], 1 }

</bundles_post_ra>
